<compile_context>
chip_gen: v7x
topology: tpu7x:2x2x1
jax: 0.10.0
libtpu: 0.0.40
codegen_flags: <defaults>
</compile_context>

<pallas_src>
import jax
import jax.numpy as jnp
from jax.experimental import pallas as pl
from jax.experimental.pallas import tpu as pltpu

GROUPS = 32
EPS = 1e-6


# ------------------------------ kernel math ----------------------------------

def _swish(y):
    # y * sigmoid(y); sigmoid in exact tanh form -> one EUP op, no approx error.
    return y * (0.5 * jnp.tanh(0.5 * y) + 0.5)


def _gn_swish(x2d, a_ref, s_ref, g_ref, b_ref):
    """GroupNorm(32, C, eps=1e-6, affine) + swish on an fp32 (H*W, C) tile.

    a_ref: (C, GROUPS) 0/1 group membership, s_ref: (GROUPS, C) = a.T.  Group
    aggregation runs on tiny (1, C) vectors; the 1/(Cg*H*W) factor is a
    separate scalar (nothing spatial is baked into shipped matrices).
    """
    hw, c = x2d.shape
    inv_cnt = 1.0 / float((c // GROUPS) * hw)

    def group_bcast(v_1c):   # (1, C) -> per-group sum broadcast back to channels
        per_group = jnp.dot(v_1c, a_ref[...], preferred_element_type=jnp.float32)
        return jnp.dot(per_group, s_ref[...], preferred_element_type=jnp.float32)

    ch_sum = jnp.sum(x2d, axis=0, keepdims=True)                  # (1, C)
    mean = group_bcast(ch_sum) * inv_cnt
    d = x2d - mean                                                 # centered (reused)
    ssq = jnp.sum(d * d, axis=0, keepdims=True)                    # two-pass: stable
    var = group_bcast(ssq) * inv_cnt                               # biased (torch)
    y = d * (jax.lax.rsqrt(var + EPS) * g_ref[...]) + b_ref[...]
    return _swish(y)


def _conv3x3(h, w_ref, b_ref, H, W, C, Cout):
    """3x3 stride-1 pad-1 conv by tap accumulation (no scratch buffers).

    h: fp32 (H*W, C).  w_ref: compute-dtype (9*C, Cout), rows ordered
    (dy, dx, cin).  Single cast of h to the matmul dtype, zero padding built as
    a value, 9 window slices each feeding one K=C matmul with fp32 accumulation.
    """
    cdt = w_ref.dtype
    hb = h.astype(cdt).reshape(H, W, C)                            # single cast
    zr = jnp.zeros((1, W, C), cdt)
    hp = jnp.concatenate([zr, hb, zr], axis=0)                     # (H+2, W,   C)
    zc = jnp.zeros((H + 2, 1, C), cdt)
    hp = jnp.concatenate([zc, hp, zc], axis=1)                     # (H+2, W+2, C)

    acc = jnp.zeros((H * W, Cout), jnp.float32)
    for k in range(9):                                             # static unroll
        dy, dx = k // 3, k % 3
        win = hp[dy:dy + H, dx:dx + W, :].reshape(H * W, C)
        acc = acc + jnp.dot(win, w_ref[k * C:(k + 1) * C, :],
                            preferred_element_type=jnp.float32)
    return acc + b_ref[...]


# ------------------------------ kernel ----------------------------------------

def _make_kernel(res_proj):
    """res_proj=True -> 1x1 conv shortcut (wres/bres passed); False -> identity."""

    def kernel(x_ref, a1_ref, s1_ref, g1_ref, b1_ref, w1_ref, cb1_ref,
               a2_ref, s2_ref, g2_ref, b2_ref, w2_ref, cb2_ref, *rest):
        if res_proj:
            wres_ref, bres_ref, out_ref = rest
        else:
            (out_ref,) = rest

        H, W, Cin = x_ref.shape
        Cout = out_ref.shape[-1]
        HW = H * W

        h = _gn_swish(x_ref[...].astype(jnp.float32).reshape(HW, Cin),
                      a1_ref, s1_ref, g1_ref, b1_ref)              # norm1 + swish
        h = _conv3x3(h, w1_ref, cb1_ref, H, W, Cin, Cout)          # conv1
        h = _gn_swish(h, a2_ref, s2_ref, g2_ref, b2_ref)           # norm2 + swish
        h = _conv3x3(h, w2_ref, cb2_ref, H, W, Cout, Cout)         # conv2

        # Shortcut: re-read x from VMEM here instead of keeping it live in
        # vregs across the GN/conv stages above.
        if res_proj:       # 1x1 conv shortcut (in_channels != out_channels)
            xr = x_ref[...].astype(wres_ref.dtype).reshape(HW, Cin)
            res = jnp.dot(xr, wres_ref[...],
                          preferred_element_type=jnp.float32) + bres_ref[...]
        else:              # identity shortcut: no matmul, no weight DMA
            res = x_ref[...].astype(jnp.float32).reshape(HW, Cin)

        out_ref[...] = (h + res).reshape(H, W, Cout).astype(out_ref.dtype)

    return kernel


# ------------------------------ wrapper ----------------------------------------

def _group_onehot(C):
    cg = C // GROUPS
    gather = (jnp.arange(C)[:, None] // cg ==
              jnp.arange(GROUPS)[None, :]).astype(jnp.float32)      # (C, GROUPS)
    return gather, gather.T                                         # (GROUPS, C)


def _vmem_capacity_bytes():
    try:
        return int(pltpu.get_tpu_info().vmem_capacity_bytes)
    except Exception:
        return 64 << 20        # conservative fallback (v7x per-TensorCore)


def resblock_pallas(x, params, *, compute_dtype=jnp.bfloat16, out_dtype=None):
    """x: (N, H, W, Cin) NHWC. params: HWIO conv weights + GN affines."""
    N, H, W, Cin = x.shape
    Cout = params["w1"].shape[-1]
    res_proj = Cin != Cout
    if res_proj and "wres" not in params:
        raise ValueError("in_channels != out_channels requires conv_out weights")
    out_dtype = x.dtype if out_dtype is None else out_dtype

    f32 = jnp.float32
    a1, s1 = _group_onehot(Cin)
    a2, s2 = _group_onehot(Cout)
    g1 = params["g1"].reshape(1, Cin).astype(f32)
    b1 = params["b1"].reshape(1, Cin).astype(f32)
    g2 = params["g2"].reshape(1, Cout).astype(f32)
    b2 = params["b2"].reshape(1, Cout).astype(f32)
    w1r = params["w1"].reshape(9 * Cin, Cout).astype(compute_dtype)   # (dy,dx,cin) rows
    cb1 = params["cb1"].reshape(1, Cout).astype(f32)
    w2r = params["w2"].reshape(9 * Cout, Cout).astype(compute_dtype)
    cb2 = params["cb2"].reshape(1, Cout).astype(f32)

    def const_spec(arr):
        nd = arr.ndim
        return pl.BlockSpec(arr.shape, lambda n, _nd=nd: (0,) * _nd)

    inputs = [x, a1, s1, g1, b1, w1r, cb1, a2, s2, g2, b2, w2r, cb2]
    if res_proj:
        inputs += [params["wres"].reshape(Cin, Cout).astype(compute_dtype),
                   params["bres"].reshape(1, Cout).astype(f32)]
    in_specs = ([pl.BlockSpec((None, H, W, Cin), lambda n: (n, 0, 0, 0))]
                + [const_spec(a) for a in inputs[1:]])

    # --- VMEM budget, clamped to the chip's physical capacity -----------------
    cbytes = jnp.dtype(compute_dtype).itemsize
    const_bytes = sum(int(a.size) * a.dtype.itemsize for a in inputs[1:])
    block_bytes = (H * W * Cin * x.dtype.itemsize
                   + H * W * Cout * jnp.dtype(out_dtype).itemsize)
    internal_bytes = ((H + 2) * (W + 2) * max(Cin, Cout) * cbytes      # padded value
                      + H * W * Cout * 4                               # fp32 accumulator
                      + 4 * H * W * max(Cin, Cout) * 4)                # live fp32 temps
    need = 2 * block_bytes + 2 * const_bytes + internal_bytes + (8 << 20)
    vmem_limit = int(min(max(need, 32 << 20), _vmem_capacity_bytes() - (2 << 20)))

    # --- cost model for the XLA scheduler --------------------------------------
    flops_per_n = 2 * H * W * 9 * (Cin * Cout + Cout * Cout)
    if res_proj:
        flops_per_n += 2 * H * W * Cin * Cout
    flops_per_n += 8 * GROUPS * (Cin + Cout)           # tiny GN aggregation matmuls
    transcendentals_per_n = H * W * (Cin + Cout)       # one tanh per normed element
    bytes_accessed = (N * H * W * (Cin * x.dtype.itemsize
                                   + Cout * jnp.dtype(out_dtype).itemsize)
                      + const_bytes)

    return pl.pallas_call(
        _make_kernel(res_proj),
        out_shape=jax.ShapeDtypeStruct((N, H, W, Cout), out_dtype),
        grid_spec=pltpu.PrefetchScalarGridSpec(
            num_scalar_prefetch=0,
            grid=(N,),
            in_specs=in_specs,
            out_specs=pl.BlockSpec((None, H, W, Cout), lambda n: (n, 0, 0, 0)),
        ),
        compiler_params=pltpu.CompilerParams(
            dimension_semantics=("parallel",),   # images independent (2 TCs on v7x)
            vmem_limit_bytes=vmem_limit,
        ),
        cost_estimate=pl.CostEstimate(
            flops=int(N * flops_per_n),
            transcendentals=int(N * transcendentals_per_n),
            bytes_accessed=int(bytes_accessed),
        ),
    )(*inputs)


# --------------------------- pure-JAX reference --------------------------------

def _ref_group_norm(x, gamma, beta):
    N, H, W, C = x.shape
    xg = x.reshape(N, H, W, GROUPS, C // GROUPS)
    mean = xg.mean(axis=(1, 2, 4), keepdims=True)
    var = jnp.mean((xg - mean) ** 2, axis=(1, 2, 4), keepdims=True)
    y = (xg - mean) * jax.lax.rsqrt(var + EPS)
    return y.reshape(N, H, W, C) * gamma + beta


def _ref_conv(x, w, b):
    y = jax.lax.conv_general_dilated(
        x, w, window_strides=(1, 1), padding="SAME",
        dimension_numbers=("NHWC", "HWIO", "NHWC"))
    return y + b


def ref_forward(x, p):
    h = _ref_group_norm(x, p["g1"], p["b1"])
    h = h * jax.nn.sigmoid(h)
    h = _ref_conv(h, p["w1"], p["cb1"])
    h = _ref_group_norm(h, p["g2"], p["b2"])
    h = h * jax.nn.sigmoid(h)
    h = _ref_conv(h, p["w2"], p["cb2"])
    res = x
    if "wres" in p:
        res = _ref_conv(x, p["wres"], p["bres"])
    return h + res


# ------------------------------------ main --------------------------------------

def _make_params(key, Cin, Cout):
    ks = jax.random.split(key, 10)
    p = {
        "g1": 1.0 + 0.1 * jax.random.normal(ks[0], (Cin,), jnp.float32),
        "b1": 0.1 * jax.random.normal(ks[1], (Cin,), jnp.float32),
        "w1": 0.05 * jax.random.normal(ks[2], (3, 3, Cin, Cout), jnp.float32),
        "cb1": 0.05 * jax.random.normal(ks[3], (Cout,), jnp.float32),
        "g2": 1.0 + 0.1 * jax.random.normal(ks[4], (Cout,), jnp.float32),
        "b2": 0.1 * jax.random.normal(ks[5], (Cout,), jnp.float32),
        "w2": 0.05 * jax.random.normal(ks[6], (3, 3, Cout, Cout), jnp.float32),
        "cb2": 0.05 * jax.random.normal(ks[7], (Cout,), jnp.float32),
    }
    if Cin != Cout:   # conv_out only exists when channels differ (module spec)
        p["wres"] = 0.1 * jax.random.normal(ks[8], (1, 1, Cin, Cout), jnp.float32)
        p["bres"] = 0.05 * jax.random.normal(ks[9], (Cout,), jnp.float32)
    return p


if __name__ == "__main__":
    key = jax.random.PRNGKey(0)
    N, H, W = 2, 16, 16

    # (32, 64): projected shortcut (1x1 conv); (64, 64): identity shortcut.
    for (Cin, Cout) in [(32, 64), (64, 64)]:
        key, kp, kx = jax.random.split(key, 3)
        params = _make_params(kp, Cin, Cout)
        x = jax.random.normal(kx, (N, H, W, Cin), jnp.float32)

        ref = jax.block_until_ready(ref_forward(x, params))

        # fp32 compute path: tight check of the algorithm (all ops exact).
        out_f32 = jax.block_until_ready(
            resblock_pallas(x, params, compute_dtype=jnp.float32))
        if not bool(jnp.allclose(out_f32, ref, rtol=5e-3, atol=5e-3)):
            raise AssertionError(
                f"fp32 Pallas ResBlock mismatch (Cin={Cin}, Cout={Cout})")

        # bf16 matmul path (default): looser tolerance for bf16 rounding.
        out_bf16 = jax.block_until_ready(
            resblock_pallas(x, params, compute_dtype=jnp.bfloat16))
        if not bool(jnp.allclose(out_bf16, ref, rtol=5e-2, atol=5e-2)):
            raise AssertionError(
                f"bf16 Pallas ResBlock mismatch (Cin={Cin}, Cout={Cout})")

    print("KERNEL_OK")
</pallas_src>

<mosaic_0001>
module attributes {stable_mosaic.version = 11 : i64} {
  func.func @kernel(%arg0: i32, %arg1: memref<1x16x16x32xf32, #tpu.memory_space<vmem>>, %arg2: memref<32x32xf32, #tpu.memory_space<vmem>>, %arg3: memref<32x32xf32, #tpu.memory_space<vmem>>, %arg4: memref<1x32xf32, #tpu.memory_space<vmem>>, %arg5: memref<1x32xf32, #tpu.memory_space<vmem>>, %arg6: memref<288x64xf32, #tpu.memory_space<vmem>>, %arg7: memref<1x64xf32, #tpu.memory_space<vmem>>, %arg8: memref<64x32xf32, #tpu.memory_space<vmem>>, %arg9: memref<32x64xf32, #tpu.memory_space<vmem>>, %arg10: memref<1x64xf32, #tpu.memory_space<vmem>>, %arg11: memref<1x64xf32, #tpu.memory_space<vmem>>, %arg12: memref<576x64xf32, #tpu.memory_space<vmem>>, %arg13: memref<1x64xf32, #tpu.memory_space<vmem>>, %arg14: memref<32x64xf32, #tpu.memory_space<vmem>>, %arg15: memref<1x64xf32, #tpu.memory_space<vmem>>, %arg16: memref<1x16x16x64xf32, #tpu.memory_space<vmem>>) attributes {dimension_semantics = [#tpu.dimension_semantics<parallel>], iteration_bounds = array<i64: 2>, scalar_prefetch = 0 : i64, scratch_operands = 0 : i64, tpu.core_type = #tpu.core_type<tc>, window_params = [{transform_indices = @transform_0, window_bounds = array<i64: 1, 16, 16, 32>}, {pipeline_mode = #tpu.pipeline_mode<synchronous>, transform_indices = @transform_1, window_bounds = array<i64: 32, 32>}, {pipeline_mode = #tpu.pipeline_mode<synchronous>, transform_indices = @transform_2, window_bounds = array<i64: 32, 32>}, {pipeline_mode = #tpu.pipeline_mode<synchronous>, transform_indices = @transform_3, window_bounds = array<i64: 1, 32>}, {pipeline_mode = #tpu.pipeline_mode<synchronous>, transform_indices = @transform_4, window_bounds = array<i64: 1, 32>}, {pipeline_mode = #tpu.pipeline_mode<synchronous>, transform_indices = @transform_5, window_bounds = array<i64: 288, 64>}, {pipeline_mode = #tpu.pipeline_mode<synchronous>, transform_indices = @transform_6, window_bounds = array<i64: 1, 64>}, {pipeline_mode = #tpu.pipeline_mode<synchronous>, transform_indices = @transform_7, window_bounds = array<i64: 64, 32>}, {pipeline_mode = #tpu.pipeline_mode<synchronous>, transform_indices = @transform_8, window_bounds = array<i64: 32, 64>}, {pipeline_mode = #tpu.pipeline_mode<synchronous>, transform_indices = @transform_9, window_bounds = array<i64: 1, 64>}, {pipeline_mode = #tpu.pipeline_mode<synchronous>, transform_indices = @transform_10, window_bounds = array<i64: 1, 64>}, {pipeline_mode = #tpu.pipeline_mode<synchronous>, transform_indices = @transform_11, window_bounds = array<i64: 576, 64>}, {pipeline_mode = #tpu.pipeline_mode<synchronous>, transform_indices = @transform_12, window_bounds = array<i64: 1, 64>}, {pipeline_mode = #tpu.pipeline_mode<synchronous>, transform_indices = @transform_13, window_bounds = array<i64: 32, 64>}, {pipeline_mode = #tpu.pipeline_mode<synchronous>, transform_indices = @transform_14, window_bounds = array<i64: 1, 64>}, {transform_indices = @transform_15, window_bounds = array<i64: 1, 16, 16, 64>}]} {
    %c0 = arith.constant 0 : index
    %c0_0 = arith.constant 0 : index
    %c0_1 = arith.constant 0 : index
    %c0_2 = arith.constant 0 : index
    %0 = vector.load %arg1[%c0, %c0_0, %c0_1, %c0_2] : memref<1x16x16x32xf32, #tpu.memory_space<vmem>>, vector<1x16x16x32xf32>
    %1 = vector.shape_cast %0 : vector<1x16x16x32xf32> to vector<16x16x32xf32>
    %2 = vector.shape_cast %1 : vector<16x16x32xf32> to vector<256x32xf32>
    %cst = arith.constant dense<0.000000e+00> : vector<32xf32>
    %3 = vector.multi_reduction <add>, %2, %cst [0] : vector<256x32xf32> to vector<32xf32>
    %4 = vector.shape_cast %3 : vector<32xf32> to vector<1x32xf32>
    %c0_3 = arith.constant 0 : index
    %c0_4 = arith.constant 0 : index
    %5 = vector.load %arg2[%c0_3, %c0_4] : memref<32x32xf32, #tpu.memory_space<vmem>>, vector<32x32xf32>
    %cst_5 = arith.constant dense<0.000000e+00> : vector<1x32xf32>
    %6 = tpu.matmul %4, %5, %cst_5 {dimension_numbers = #tpu.dot_dimension_numbers<[1], [0], [0], [1], [0, 0, 1, 1], [], []>} : vector<1x32xf32>, vector<32x32xf32>, vector<1x32xf32> -> vector<1x32xf32>
    %c0_6 = arith.constant 0 : index
    %c0_7 = arith.constant 0 : index
    %7 = vector.load %arg3[%c0_6, %c0_7] : memref<32x32xf32, #tpu.memory_space<vmem>>, vector<32x32xf32>
    %cst_8 = arith.constant dense<0.000000e+00> : vector<1x32xf32>
    %8 = tpu.matmul %6, %7, %cst_8 {dimension_numbers = #tpu.dot_dimension_numbers<[1], [0], [0], [1], [0, 0, 1, 1], [], []>} : vector<1x32xf32>, vector<32x32xf32>, vector<1x32xf32> -> vector<1x32xf32>
    %cst_9 = arith.constant 3.906250e-03 : f32
    %9 = vector.broadcast %cst_9 : f32 to vector<1x32xf32>
    %10 = arith.mulf %8, %9 : vector<1x32xf32>
    %11 = vector.broadcast %10 : vector<1x32xf32> to vector<256x32xf32>
    %12 = arith.subf %2, %11 : vector<256x32xf32>
    %13 = arith.mulf %12, %12 : vector<256x32xf32>
    %cst_10 = arith.constant dense<0.000000e+00> : vector<32xf32>
    %14 = vector.multi_reduction <add>, %13, %cst_10 [0] : vector<256x32xf32> to vector<32xf32>
    %15 = vector.shape_cast %14 : vector<32xf32> to vector<1x32xf32>
    %c0_11 = arith.constant 0 : index
    %c0_12 = arith.constant 0 : index
    %16 = vector.load %arg2[%c0_11, %c0_12] : memref<32x32xf32, #tpu.memory_space<vmem>>, vector<32x32xf32>
    %cst_13 = arith.constant dense<0.000000e+00> : vector<1x32xf32>
    %17 = tpu.matmul %15, %16, %cst_13 {dimension_numbers = #tpu.dot_dimension_numbers<[1], [0], [0], [1], [0, 0, 1, 1], [], []>} : vector<1x32xf32>, vector<32x32xf32>, vector<1x32xf32> -> vector<1x32xf32>
    %c0_14 = arith.constant 0 : index
    %c0_15 = arith.constant 0 : index
    %18 = vector.load %arg3[%c0_14, %c0_15] : memref<32x32xf32, #tpu.memory_space<vmem>>, vector<32x32xf32>
    %cst_16 = arith.constant dense<0.000000e+00> : vector<1x32xf32>
    %19 = tpu.matmul %17, %18, %cst_16 {dimension_numbers = #tpu.dot_dimension_numbers<[1], [0], [0], [1], [0, 0, 1, 1], [], []>} : vector<1x32xf32>, vector<32x32xf32>, vector<1x32xf32> -> vector<1x32xf32>
    %cst_17 = arith.constant 3.906250e-03 : f32
    %20 = vector.broadcast %cst_17 : f32 to vector<1x32xf32>
    %21 = arith.mulf %19, %20 : vector<1x32xf32>
    %cst_18 = arith.constant 9.99999997E-7 : f32
    %22 = vector.broadcast %cst_18 : f32 to vector<1x32xf32>
    %23 = arith.addf %21, %22 : vector<1x32xf32>
    %24 = math.rsqrt %23 : vector<1x32xf32>
    %c0_19 = arith.constant 0 : index
    %c0_20 = arith.constant 0 : index
    %25 = vector.load %arg4[%c0_19, %c0_20] : memref<1x32xf32, #tpu.memory_space<vmem>>, vector<1x32xf32>
    %26 = arith.mulf %24, %25 : vector<1x32xf32>
    %27 = vector.broadcast %26 : vector<1x32xf32> to vector<256x32xf32>
    %28 = arith.mulf %12, %27 : vector<256x32xf32>
    %c0_21 = arith.constant 0 : index
    %c0_22 = arith.constant 0 : index
    %29 = vector.load %arg5[%c0_21, %c0_22] : memref<1x32xf32, #tpu.memory_space<vmem>>, vector<1x32xf32>
    %30 = vector.broadcast %29 : vector<1x32xf32> to vector<256x32xf32>
    %31 = arith.addf %28, %30 : vector<256x32xf32>
    %cst_23 = arith.constant 5.000000e-01 : f32
    %32 = vector.broadcast %cst_23 : f32 to vector<256x32xf32>
    %33 = arith.mulf %32, %31 : vector<256x32xf32>
    %34 = math.tanh %33 : vector<256x32xf32>
    %cst_24 = arith.constant 5.000000e-01 : f32
    %35 = vector.broadcast %cst_24 : f32 to vector<256x32xf32>
    %36 = arith.mulf %35, %34 : vector<256x32xf32>
    %cst_25 = arith.constant 5.000000e-01 : f32
    %37 = vector.broadcast %cst_25 : f32 to vector<256x32xf32>
    %38 = arith.addf %36, %37 : vector<256x32xf32>
    %39 = arith.mulf %31, %38 : vector<256x32xf32>
    %40 = vector.shape_cast %39 : vector<256x32xf32> to vector<16x16x32xf32>
    %cst_26 = arith.constant 0.000000e+00 : f32
    %41 = vector.broadcast %cst_26 : f32 to vector<1x16x32xf32>
    %42 = tpu.concatenate %41, %40, %41 in 0 : vector<1x16x32xf32>, vector<16x16x32xf32>, vector<1x16x32xf32> -> vector<18x16x32xf32>
    %cst_27 = arith.constant 0.000000e+00 : f32
    %43 = vector.broadcast %cst_27 : f32 to vector<18x1x32xf32>
    %44 = tpu.concatenate %43, %42, %43 in 1 : vector<18x1x32xf32>, vector<18x16x32xf32>, vector<18x1x32xf32> -> vector<18x18x32xf32>
    %cst_28 = arith.constant 0.000000e+00 : f32
    %45 = vector.broadcast %cst_28 : f32 to vector<256x64xf32>
    %46 = vector.extract_strided_slice %44 {offsets = [0, 0, 0], sizes = [16, 16, 32], strides = [1, 1, 1]} : vector<18x18x32xf32> to vector<16x16x32xf32>
    %47 = vector.shape_cast %46 : vector<16x16x32xf32> to vector<256x32xf32>
    %c0_29 = arith.constant 0 : index
    %c0_30 = arith.constant 0 : index
    %48 = vector.load %arg6[%c0_29, %c0_30] : memref<288x64xf32, #tpu.memory_space<vmem>>, vector<32x64xf32>
    %cst_31 = arith.constant dense<0.000000e+00> : vector<256x64xf32>
    %49 = tpu.matmul %47, %48, %cst_31 {dimension_numbers = #tpu.dot_dimension_numbers<[1], [0], [0], [1], [0, 0, 1, 1], [], []>} : vector<256x32xf32>, vector<32x64xf32>, vector<256x64xf32> -> vector<256x64xf32>
    %50 = arith.addf %45, %49 : vector<256x64xf32>
    %51 = vector.extract_strided_slice %44 {offsets = [0, 1, 0], sizes = [16, 16, 32], strides = [1, 1, 1]} : vector<18x18x32xf32> to vector<16x16x32xf32>
    %52 = vector.shape_cast %51 : vector<16x16x32xf32> to vector<256x32xf32>
    %c32 = arith.constant 32 : index
    %c0_32 = arith.constant 0 : index
    %53 = vector.load %arg6[%c32, %c0_32] : memref<288x64xf32, #tpu.memory_space<vmem>>, vector<32x64xf32>
    %cst_33 = arith.constant dense<0.000000e+00> : vector<256x64xf32>
    %54 = tpu.matmul %52, %53, %cst_33 {dimension_numbers = #tpu.dot_dimension_numbers<[1], [0], [0], [1], [0, 0, 1, 1], [], []>} : vector<256x32xf32>, vector<32x64xf32>, vector<256x64xf32> -> vector<256x64xf32>
    %55 = arith.addf %50, %54 : vector<256x64xf32>
    %56 = vector.extract_strided_slice %44 {offsets = [0, 2, 0], sizes = [16, 16, 32], strides = [1, 1, 1]} : vector<18x18x32xf32> to vector<16x16x32xf32>
    %57 = vector.shape_cast %56 : vector<16x16x32xf32> to vector<256x32xf32>
    %c64 = arith.constant 64 : index
    %c0_34 = arith.constant 0 : index
    %58 = vector.load %arg6[%c64, %c0_34] : memref<288x64xf32, #tpu.memory_space<vmem>>, vector<32x64xf32>
    %cst_35 = arith.constant dense<0.000000e+00> : vector<256x64xf32>
    %59 = tpu.matmul %57, %58, %cst_35 {dimension_numbers = #tpu.dot_dimension_numbers<[1], [0], [0], [1], [0, 0, 1, 1], [], []>} : vector<256x32xf32>, vector<32x64xf32>, vector<256x64xf32> -> vector<256x64xf32>
    %60 = arith.addf %55, %59 : vector<256x64xf32>
    %61 = vector.extract_strided_slice %44 {offsets = [1, 0, 0], sizes = [16, 16, 32], strides = [1, 1, 1]} : vector<18x18x32xf32> to vector<16x16x32xf32>
    %62 = vector.shape_cast %61 : vector<16x16x32xf32> to vector<256x32xf32>
    %c96 = arith.constant 96 : index
    %c0_36 = arith.constant 0 : index
    %63 = vector.load %arg6[%c96, %c0_36] : memref<288x64xf32, #tpu.memory_space<vmem>>, vector<32x64xf32>
    %cst_37 = arith.constant dense<0.000000e+00> : vector<256x64xf32>
    %64 = tpu.matmul %62, %63, %cst_37 {dimension_numbers = #tpu.dot_dimension_numbers<[1], [0], [0], [1], [0, 0, 1, 1], [], []>} : vector<256x32xf32>, vector<32x64xf32>, vector<256x64xf32> -> vector<256x64xf32>
    %65 = arith.addf %60, %64 : vector<256x64xf32>
    %66 = vector.extract_strided_slice %44 {offsets = [1, 1, 0], sizes = [16, 16, 32], strides = [1, 1, 1]} : vector<18x18x32xf32> to vector<16x16x32xf32>
    %67 = vector.shape_cast %66 : vector<16x16x32xf32> to vector<256x32xf32>
    %c128 = arith.constant 128 : index
    %c0_38 = arith.constant 0 : index
    %68 = vector.load %arg6[%c128, %c0_38] : memref<288x64xf32, #tpu.memory_space<vmem>>, vector<32x64xf32>
    %cst_39 = arith.constant dense<0.000000e+00> : vector<256x64xf32>
    %69 = tpu.matmul %67, %68, %cst_39 {dimension_numbers = #tpu.dot_dimension_numbers<[1], [0], [0], [1], [0, 0, 1, 1], [], []>} : vector<256x32xf32>, vector<32x64xf32>, vector<256x64xf32> -> vector<256x64xf32>
    %70 = arith.addf %65, %69 : vector<256x64xf32>
    %71 = vector.extract_strided_slice %44 {offsets = [1, 2, 0], sizes = [16, 16, 32], strides = [1, 1, 1]} : vector<18x18x32xf32> to vector<16x16x32xf32>
    %72 = vector.shape_cast %71 : vector<16x16x32xf32> to vector<256x32xf32>
    %c160 = arith.constant 160 : index
    %c0_40 = arith.constant 0 : index
    %73 = vector.load %arg6[%c160, %c0_40] : memref<288x64xf32, #tpu.memory_space<vmem>>, vector<32x64xf32>
    %cst_41 = arith.constant dense<0.000000e+00> : vector<256x64xf32>
    %74 = tpu.matmul %72, %73, %cst_41 {dimension_numbers = #tpu.dot_dimension_numbers<[1], [0], [0], [1], [0, 0, 1, 1], [], []>} : vector<256x32xf32>, vector<32x64xf32>, vector<256x64xf32> -> vector<256x64xf32>
    %75 = arith.addf %70, %74 : vector<256x64xf32>
    %76 = vector.extract_strided_slice %44 {offsets = [2, 0, 0], sizes = [16, 16, 32], strides = [1, 1, 1]} : vector<18x18x32xf32> to vector<16x16x32xf32>
    %77 = vector.shape_cast %76 : vector<16x16x32xf32> to vector<256x32xf32>
    %c192 = arith.constant 192 : index
    %c0_42 = arith.constant 0 : index
    %78 = vector.load %arg6[%c192, %c0_42] : memref<288x64xf32, #tpu.memory_space<vmem>>, vector<32x64xf32>
    %cst_43 = arith.constant dense<0.000000e+00> : vector<256x64xf32>
    %79 = tpu.matmul %77, %78, %cst_43 {dimension_numbers = #tpu.dot_dimension_numbers<[1], [0], [0], [1], [0, 0, 1, 1], [], []>} : vector<256x32xf32>, vector<32x64xf32>, vector<256x64xf32> -> vector<256x64xf32>
    %80 = arith.addf %75, %79 : vector<256x64xf32>
    %81 = vector.extract_strided_slice %44 {offsets = [2, 1, 0], sizes = [16, 16, 32], strides = [1, 1, 1]} : vector<18x18x32xf32> to vector<16x16x32xf32>
    %82 = vector.shape_cast %81 : vector<16x16x32xf32> to vector<256x32xf32>
    %c224 = arith.constant 224 : index
    %c0_44 = arith.constant 0 : index
    %83 = vector.load %arg6[%c224, %c0_44] : memref<288x64xf32, #tpu.memory_space<vmem>>, vector<32x64xf32>
    %cst_45 = arith.constant dense<0.000000e+00> : vector<256x64xf32>
    %84 = tpu.matmul %82, %83, %cst_45 {dimension_numbers = #tpu.dot_dimension_numbers<[1], [0], [0], [1], [0, 0, 1, 1], [], []>} : vector<256x32xf32>, vector<32x64xf32>, vector<256x64xf32> -> vector<256x64xf32>
    %85 = arith.addf %80, %84 : vector<256x64xf32>
    %86 = vector.extract_strided_slice %44 {offsets = [2, 2, 0], sizes = [16, 16, 32], strides = [1, 1, 1]} : vector<18x18x32xf32> to vector<16x16x32xf32>
    %87 = vector.shape_cast %86 : vector<16x16x32xf32> to vector<256x32xf32>
    %c256 = arith.constant 256 : index
    %c0_46 = arith.constant 0 : index
    %88 = vector.load %arg6[%c256, %c0_46] : memref<288x64xf32, #tpu.memory_space<vmem>>, vector<32x64xf32>
    %cst_47 = arith.constant dense<0.000000e+00> : vector<256x64xf32>
    %89 = tpu.matmul %87, %88, %cst_47 {dimension_numbers = #tpu.dot_dimension_numbers<[1], [0], [0], [1], [0, 0, 1, 1], [], []>} : vector<256x32xf32>, vector<32x64xf32>, vector<256x64xf32> -> vector<256x64xf32>
    %90 = arith.addf %85, %89 : vector<256x64xf32>
    %c0_48 = arith.constant 0 : index
    %c0_49 = arith.constant 0 : index
    %91 = vector.load %arg7[%c0_48, %c0_49] : memref<1x64xf32, #tpu.memory_space<vmem>>, vector<1x64xf32>
    %92 = vector.broadcast %91 : vector<1x64xf32> to vector<256x64xf32>
    %93 = arith.addf %90, %92 : vector<256x64xf32>
    %cst_50 = arith.constant dense<0.000000e+00> : vector<64xf32>
    %94 = vector.multi_reduction <add>, %93, %cst_50 [0] : vector<256x64xf32> to vector<64xf32>
    %95 = vector.shape_cast %94 : vector<64xf32> to vector<1x64xf32>
    %c0_51 = arith.constant 0 : index
    %c0_52 = arith.constant 0 : index
    %96 = vector.load %arg8[%c0_51, %c0_52] : memref<64x32xf32, #tpu.memory_space<vmem>>, vector<64x32xf32>
    %cst_53 = arith.constant dense<0.000000e+00> : vector<1x32xf32>
    %97 = tpu.matmul %95, %96, %cst_53 {dimension_numbers = #tpu.dot_dimension_numbers<[1], [0], [0], [1], [0, 0, 1, 1], [], []>} : vector<1x64xf32>, vector<64x32xf32>, vector<1x32xf32> -> vector<1x32xf32>
    %c0_54 = arith.constant 0 : index
    %c0_55 = arith.constant 0 : index
    %98 = vector.load %arg9[%c0_54, %c0_55] : memref<32x64xf32, #tpu.memory_space<vmem>>, vector<32x64xf32>
    %cst_56 = arith.constant dense<0.000000e+00> : vector<1x64xf32>
    %99 = tpu.matmul %97, %98, %cst_56 {dimension_numbers = #tpu.dot_dimension_numbers<[1], [0], [0], [1], [0, 0, 1, 1], [], []>} : vector<1x32xf32>, vector<32x64xf32>, vector<1x64xf32> -> vector<1x64xf32>
    %cst_57 = arith.constant 0.001953125 : f32
    %100 = vector.broadcast %cst_57 : f32 to vector<1x64xf32>
    %101 = arith.mulf %99, %100 : vector<1x64xf32>
    %102 = vector.broadcast %101 : vector<1x64xf32> to vector<256x64xf32>
    %103 = arith.subf %93, %102 : vector<256x64xf32>
    %104 = arith.mulf %103, %103 : vector<256x64xf32>
    %cst_58 = arith.constant dense<0.000000e+00> : vector<64xf32>
    %105 = vector.multi_reduction <add>, %104, %cst_58 [0] : vector<256x64xf32> to vector<64xf32>
    %106 = vector.shape_cast %105 : vector<64xf32> to vector<1x64xf32>
    %c0_59 = arith.constant 0 : index
    %c0_60 = arith.constant 0 : index
    %107 = vector.load %arg8[%c0_59, %c0_60] : memref<64x32xf32, #tpu.memory_space<vmem>>, vector<64x32xf32>
    %cst_61 = arith.constant dense<0.000000e+00> : vector<1x32xf32>
    %108 = tpu.matmul %106, %107, %cst_61 {dimension_numbers = #tpu.dot_dimension_numbers<[1], [0], [0], [1], [0, 0, 1, 1], [], []>} : vector<1x64xf32>, vector<64x32xf32>, vector<1x32xf32> -> vector<1x32xf32>
    %c0_62 = arith.constant 0 : index
    %c0_63 = arith.constant 0 : index
    %109 = vector.load %arg9[%c0_62, %c0_63] : memref<32x64xf32, #tpu.memory_space<vmem>>, vector<32x64xf32>
    %cst_64 = arith.constant dense<0.000000e+00> : vector<1x64xf32>
    %110 = tpu.matmul %108, %109, %cst_64 {dimension_numbers = #tpu.dot_dimension_numbers<[1], [0], [0], [1], [0, 0, 1, 1], [], []>} : vector<1x32xf32>, vector<32x64xf32>, vector<1x64xf32> -> vector<1x64xf32>
    %cst_65 = arith.constant 0.001953125 : f32
    %111 = vector.broadcast %cst_65 : f32 to vector<1x64xf32>
    %112 = arith.mulf %110, %111 : vector<1x64xf32>
    %cst_66 = arith.constant 9.99999997E-7 : f32
    %113 = vector.broadcast %cst_66 : f32 to vector<1x64xf32>
    %114 = arith.addf %112, %113 : vector<1x64xf32>
    %115 = math.rsqrt %114 : vector<1x64xf32>
    %c0_67 = arith.constant 0 : index
    %c0_68 = arith.constant 0 : index
    %116 = vector.load %arg10[%c0_67, %c0_68] : memref<1x64xf32, #tpu.memory_space<vmem>>, vector<1x64xf32>
    %117 = arith.mulf %115, %116 : vector<1x64xf32>
    %118 = vector.broadcast %117 : vector<1x64xf32> to vector<256x64xf32>
    %119 = arith.mulf %103, %118 : vector<256x64xf32>
    %c0_69 = arith.constant 0 : index
    %c0_70 = arith.constant 0 : index
    %120 = vector.load %arg11[%c0_69, %c0_70] : memref<1x64xf32, #tpu.memory_space<vmem>>, vector<1x64xf32>
    %121 = vector.broadcast %120 : vector<1x64xf32> to vector<256x64xf32>
    %122 = arith.addf %119, %121 : vector<256x64xf32>
    %cst_71 = arith.constant 5.000000e-01 : f32
    %123 = vector.broadcast %cst_71 : f32 to vector<256x64xf32>
    %124 = arith.mulf %123, %122 : vector<256x64xf32>
    %125 = math.tanh %124 : vector<256x64xf32>
    %cst_72 = arith.constant 5.000000e-01 : f32
    %126 = vector.broadcast %cst_72 : f32 to vector<256x64xf32>
    %127 = arith.mulf %126, %125 : vector<256x64xf32>
    %cst_73 = arith.constant 5.000000e-01 : f32
    %128 = vector.broadcast %cst_73 : f32 to vector<256x64xf32>
    %129 = arith.addf %127, %128 : vector<256x64xf32>
    %130 = arith.mulf %122, %129 : vector<256x64xf32>
    %131 = vector.shape_cast %130 : vector<256x64xf32> to vector<16x16x64xf32>
    %cst_74 = arith.constant 0.000000e+00 : f32
    %132 = vector.broadcast %cst_74 : f32 to vector<1x16x64xf32>
    %133 = tpu.concatenate %132, %131, %132 in 0 : vector<1x16x64xf32>, vector<16x16x64xf32>, vector<1x16x64xf32> -> vector<18x16x64xf32>
    %cst_75 = arith.constant 0.000000e+00 : f32
    %134 = vector.broadcast %cst_75 : f32 to vector<18x1x64xf32>
    %135 = tpu.concatenate %134, %133, %134 in 1 : vector<18x1x64xf32>, vector<18x16x64xf32>, vector<18x1x64xf32> -> vector<18x18x64xf32>
    %cst_76 = arith.constant 0.000000e+00 : f32
    %136 = vector.broadcast %cst_76 : f32 to vector<256x64xf32>
    %137 = vector.extract_strided_slice %135 {offsets = [0, 0, 0], sizes = [16, 16, 64], strides = [1, 1, 1]} : vector<18x18x64xf32> to vector<16x16x64xf32>
    %138 = vector.shape_cast %137 : vector<16x16x64xf32> to vector<256x64xf32>
    %c0_77 = arith.constant 0 : index
    %c0_78 = arith.constant 0 : index
    %139 = vector.load %arg12[%c0_77, %c0_78] : memref<576x64xf32, #tpu.memory_space<vmem>>, vector<64x64xf32>
    %cst_79 = arith.constant dense<0.000000e+00> : vector<256x64xf32>
    %140 = tpu.matmul %138, %139, %cst_79 {dimension_numbers = #tpu.dot_dimension_numbers<[1], [0], [0], [1], [0, 0, 1, 1], [], []>} : vector<256x64xf32>, vector<64x64xf32>, vector<256x64xf32> -> vector<256x64xf32>
    %141 = arith.addf %136, %140 : vector<256x64xf32>
    %142 = vector.extract_strided_slice %135 {offsets = [0, 1, 0], sizes = [16, 16, 64], strides = [1, 1, 1]} : vector<18x18x64xf32> to vector<16x16x64xf32>
    %143 = vector.shape_cast %142 : vector<16x16x64xf32> to vector<256x64xf32>
    %c64_80 = arith.constant 64 : index
    %c0_81 = arith.constant 0 : index
    %144 = vector.load %arg12[%c64_80, %c0_81] : memref<576x64xf32, #tpu.memory_space<vmem>>, vector<64x64xf32>
    %cst_82 = arith.constant dense<0.000000e+00> : vector<256x64xf32>
    %145 = tpu.matmul %143, %144, %cst_82 {dimension_numbers = #tpu.dot_dimension_numbers<[1], [0], [0], [1], [0, 0, 1, 1], [], []>} : vector<256x64xf32>, vector<64x64xf32>, vector<256x64xf32> -> vector<256x64xf32>
    %146 = arith.addf %141, %145 : vector<256x64xf32>
    %147 = vector.extract_strided_slice %135 {offsets = [0, 2, 0], sizes = [16, 16, 64], strides = [1, 1, 1]} : vector<18x18x64xf32> to vector<16x16x64xf32>
    %148 = vector.shape_cast %147 : vector<16x16x64xf32> to vector<256x64xf32>
    %c128_83 = arith.constant 128 : index
    %c0_84 = arith.constant 0 : index
    %149 = vector.load %arg12[%c128_83, %c0_84] : memref<576x64xf32, #tpu.memory_space<vmem>>, vector<64x64xf32>
    %cst_85 = arith.constant dense<0.000000e+00> : vector<256x64xf32>
    %150 = tpu.matmul %148, %149, %cst_85 {dimension_numbers = #tpu.dot_dimension_numbers<[1], [0], [0], [1], [0, 0, 1, 1], [], []>} : vector<256x64xf32>, vector<64x64xf32>, vector<256x64xf32> -> vector<256x64xf32>
    %151 = arith.addf %146, %150 : vector<256x64xf32>
    %152 = vector.extract_strided_slice %135 {offsets = [1, 0, 0], sizes = [16, 16, 64], strides = [1, 1, 1]} : vector<18x18x64xf32> to vector<16x16x64xf32>
    %153 = vector.shape_cast %152 : vector<16x16x64xf32> to vector<256x64xf32>
    %c192_86 = arith.constant 192 : index
    %c0_87 = arith.constant 0 : index
    %154 = vector.load %arg12[%c192_86, %c0_87] : memref<576x64xf32, #tpu.memory_space<vmem>>, vector<64x64xf32>
    %cst_88 = arith.constant dense<0.000000e+00> : vector<256x64xf32>
    %155 = tpu.matmul %153, %154, %cst_88 {dimension_numbers = #tpu.dot_dimension_numbers<[1], [0], [0], [1], [0, 0, 1, 1], [], []>} : vector<256x64xf32>, vector<64x64xf32>, vector<256x64xf32> -> vector<256x64xf32>
    %156 = arith.addf %151, %155 : vector<256x64xf32>
    %157 = vector.extract_strided_slice %135 {offsets = [1, 1, 0], sizes = [16, 16, 64], strides = [1, 1, 1]} : vector<18x18x64xf32> to vector<16x16x64xf32>
    %158 = vector.shape_cast %157 : vector<16x16x64xf32> to vector<256x64xf32>
    %c256_89 = arith.constant 256 : index
    %c0_90 = arith.constant 0 : index
    %159 = vector.load %arg12[%c256_89, %c0_90] : memref<576x64xf32, #tpu.memory_space<vmem>>, vector<64x64xf32>
    %cst_91 = arith.constant dense<0.000000e+00> : vector<256x64xf32>
    %160 = tpu.matmul %158, %159, %cst_91 {dimension_numbers = #tpu.dot_dimension_numbers<[1], [0], [0], [1], [0, 0, 1, 1], [], []>} : vector<256x64xf32>, vector<64x64xf32>, vector<256x64xf32> -> vector<256x64xf32>
    %161 = arith.addf %156, %160 : vector<256x64xf32>
    %162 = vector.extract_strided_slice %135 {offsets = [1, 2, 0], sizes = [16, 16, 64], strides = [1, 1, 1]} : vector<18x18x64xf32> to vector<16x16x64xf32>
    %163 = vector.shape_cast %162 : vector<16x16x64xf32> to vector<256x64xf32>
    %c320 = arith.constant 320 : index
    %c0_92 = arith.constant 0 : index
    %164 = vector.load %arg12[%c320, %c0_92] : memref<576x64xf32, #tpu.memory_space<vmem>>, vector<64x64xf32>
    %cst_93 = arith.constant dense<0.000000e+00> : vector<256x64xf32>
    %165 = tpu.matmul %163, %164, %cst_93 {dimension_numbers = #tpu.dot_dimension_numbers<[1], [0], [0], [1], [0, 0, 1, 1], [], []>} : vector<256x64xf32>, vector<64x64xf32>, vector<256x64xf32> -> vector<256x64xf32>
    %166 = arith.addf %161, %165 : vector<256x64xf32>
    %167 = vector.extract_strided_slice %135 {offsets = [2, 0, 0], sizes = [16, 16, 64], strides = [1, 1, 1]} : vector<18x18x64xf32> to vector<16x16x64xf32>
    %168 = vector.shape_cast %167 : vector<16x16x64xf32> to vector<256x64xf32>
    %c384 = arith.constant 384 : index
    %c0_94 = arith.constant 0 : index
    %169 = vector.load %arg12[%c384, %c0_94] : memref<576x64xf32, #tpu.memory_space<vmem>>, vector<64x64xf32>
    %cst_95 = arith.constant dense<0.000000e+00> : vector<256x64xf32>
    %170 = tpu.matmul %168, %169, %cst_95 {dimension_numbers = #tpu.dot_dimension_numbers<[1], [0], [0], [1], [0, 0, 1, 1], [], []>} : vector<256x64xf32>, vector<64x64xf32>, vector<256x64xf32> -> vector<256x64xf32>
    %171 = arith.addf %166, %170 : vector<256x64xf32>
    %172 = vector.extract_strided_slice %135 {offsets = [2, 1, 0], sizes = [16, 16, 64], strides = [1, 1, 1]} : vector<18x18x64xf32> to vector<16x16x64xf32>
    %173 = vector.shape_cast %172 : vector<16x16x64xf32> to vector<256x64xf32>
    %c448 = arith.constant 448 : index
    %c0_96 = arith.constant 0 : index
    %174 = vector.load %arg12[%c448, %c0_96] : memref<576x64xf32, #tpu.memory_space<vmem>>, vector<64x64xf32>
    %cst_97 = arith.constant dense<0.000000e+00> : vector<256x64xf32>
    %175 = tpu.matmul %173, %174, %cst_97 {dimension_numbers = #tpu.dot_dimension_numbers<[1], [0], [0], [1], [0, 0, 1, 1], [], []>} : vector<256x64xf32>, vector<64x64xf32>, vector<256x64xf32> -> vector<256x64xf32>
    %176 = arith.addf %171, %175 : vector<256x64xf32>
    %177 = vector.extract_strided_slice %135 {offsets = [2, 2, 0], sizes = [16, 16, 64], strides = [1, 1, 1]} : vector<18x18x64xf32> to vector<16x16x64xf32>
    %178 = vector.shape_cast %177 : vector<16x16x64xf32> to vector<256x64xf32>
    %c512 = arith.constant 512 : index
    %c0_98 = arith.constant 0 : index
    %179 = vector.load %arg12[%c512, %c0_98] : memref<576x64xf32, #tpu.memory_space<vmem>>, vector<64x64xf32>
    %cst_99 = arith.constant dense<0.000000e+00> : vector<256x64xf32>
    %180 = tpu.matmul %178, %179, %cst_99 {dimension_numbers = #tpu.dot_dimension_numbers<[1], [0], [0], [1], [0, 0, 1, 1], [], []>} : vector<256x64xf32>, vector<64x64xf32>, vector<256x64xf32> -> vector<256x64xf32>
    %181 = arith.addf %176, %180 : vector<256x64xf32>
    %c0_100 = arith.constant 0 : index
    %c0_101 = arith.constant 0 : index
    %182 = vector.load %arg13[%c0_100, %c0_101] : memref<1x64xf32, #tpu.memory_space<vmem>>, vector<1x64xf32>
    %183 = vector.broadcast %182 : vector<1x64xf32> to vector<256x64xf32>
    %184 = arith.addf %181, %183 : vector<256x64xf32>
    %c0_102 = arith.constant 0 : index
    %c0_103 = arith.constant 0 : index
    %c0_104 = arith.constant 0 : index
    %c0_105 = arith.constant 0 : index
    %185 = vector.load %arg1[%c0_102, %c0_103, %c0_104, %c0_105] : memref<1x16x16x32xf32, #tpu.memory_space<vmem>>, vector<1x16x16x32xf32>
    %186 = vector.shape_cast %185 : vector<1x16x16x32xf32> to vector<16x16x32xf32>
    %187 = vector.shape_cast %186 : vector<16x16x32xf32> to vector<256x32xf32>
    %c0_106 = arith.constant 0 : index
    %c0_107 = arith.constant 0 : index
    %188 = vector.load %arg14[%c0_106, %c0_107] : memref<32x64xf32, #tpu.memory_space<vmem>>, vector<32x64xf32>
    %cst_108 = arith.constant dense<0.000000e+00> : vector<256x64xf32>
    %189 = tpu.matmul %187, %188, %cst_108 {dimension_numbers = #tpu.dot_dimension_numbers<[1], [0], [0], [1], [0, 0, 1, 1], [], []>} : vector<256x32xf32>, vector<32x64xf32>, vector<256x64xf32> -> vector<256x64xf32>
    %c0_109 = arith.constant 0 : index
    %c0_110 = arith.constant 0 : index
    %190 = vector.load %arg15[%c0_109, %c0_110] : memref<1x64xf32, #tpu.memory_space<vmem>>, vector<1x64xf32>
    %191 = vector.broadcast %190 : vector<1x64xf32> to vector<256x64xf32>
    %192 = arith.addf %189, %191 : vector<256x64xf32>
    %193 = arith.addf %184, %192 : vector<256x64xf32>
    %194 = vector.shape_cast %193 : vector<256x64xf32> to vector<16x16x64xf32>
    %c0_111 = arith.constant 0 : index
    %c0_112 = arith.constant 0 : index
    %c0_113 = arith.constant 0 : index
    %c0_114 = arith.constant 0 : index
    %195 = vector.load %arg16[%c0_111, %c0_112, %c0_113, %c0_114] : memref<1x16x16x64xf32, #tpu.memory_space<vmem>>, vector<1x16x16x64xf32>
    %196 = vector.shape_cast %195 : vector<1x16x16x64xf32> to vector<16x16x64xf32>
    %197 = vector.shape_cast %194 : vector<16x16x64xf32> to vector<1x16x16x64xf32>
    tpu.vector_store %arg16[%c0_111, %c0_112, %c0_113, %c0_114], %197 {strides = array<i32>} : memref<1x16x16x64xf32, #tpu.memory_space<vmem>>, vector<1x16x16x64xf32>,
    return
  }
  func.func @transform_0(%arg0: i32) -> (i32, i32, i32, i32) {
    %c0_i32 = arith.constant 0 : i32
    %c0_i32_0 = arith.constant 0 : i32
    %c0_i32_1 = arith.constant 0 : i32
    %c0_i32_2 = arith.constant 0 : i32
    return %arg0, %c0_i32, %c0_i32_0, %c0_i32_1 : i32, i32, i32, i32
  }
  func.func @transform_1(%arg0: i32) -> (i32, i32) {
    %c0_i32 = arith.constant 0 : i32
    %c0_i32_0 = arith.constant 0 : i32
    %c0_i32_1 = arith.constant 0 : i32
    return %c0_i32, %c0_i32_0 : i32, i32
  }
  func.func @transform_2(%arg0: i32) -> (i32, i32) {
    %c0_i32 = arith.constant 0 : i32
    %c0_i32_0 = arith.constant 0 : i32
    %c0_i32_1 = arith.constant 0 : i32
    return %c0_i32, %c0_i32_0 : i32, i32
  }
  func.func @transform_3(%arg0: i32) -> (i32, i32) {
    %c0_i32 = arith.constant 0 : i32
    %c0_i32_0 = arith.constant 0 : i32
    %c0_i32_1 = arith.constant 0 : i32
    return %c0_i32, %c0_i32_0 : i32, i32
  }
  func.func @transform_4(%arg0: i32) -> (i32, i32) {
    %c0_i32 = arith.constant 0 : i32
    %c0_i32_0 = arith.constant 0 : i32
    %c0_i32_1 = arith.constant 0 : i32
    return %c0_i32, %c0_i32_0 : i32, i32
  }
  func.func @transform_5(%arg0: i32) -> (i32, i32) {
    %c0_i32 = arith.constant 0 : i32
    %c0_i32_0 = arith.constant 0 : i32
    %c0_i32_1 = arith.constant 0 : i32
    return %c0_i32, %c0_i32_0 : i32, i32
  }
  func.func @transform_6(%arg0: i32) -> (i32, i32) {
    %c0_i32 = arith.constant 0 : i32
    %c0_i32_0 = arith.constant 0 : i32
    %c0_i32_1 = arith.constant 0 : i32
    return %c0_i32, %c0_i32_0 : i32, i32
  }
  func.func @transform_7(%arg0: i32) -> (i32, i32) {
    %c0_i32 = arith.constant 0 : i32
    %c0_i32_0 = arith.constant 0 : i32
    %c0_i32_1 = arith.constant 0 : i32
    return %c0_i32, %c0_i32_0 : i32, i32
  }
  func.func @transform_8(%arg0: i32) -> (i32, i32) {
    %c0_i32 = arith.constant 0 : i32
    %c0_i32_0 = arith.constant 0 : i32
    %c0_i32_1 = arith.constant 0 : i32
    return %c0_i32, %c0_i32_0 : i32, i32
  }
  func.func @transform_9(%arg0: i32) -> (i32, i32) {
    %c0_i32 = arith.constant 0 : i32
    %c0_i32_0 = arith.constant 0 : i32
    %c0_i32_1 = arith.constant 0 : i32
    return %c0_i32, %c0_i32_0 : i32, i32
  }
  func.func @transform_10(%arg0: i32) -> (i32, i32) {
    %c0_i32 = arith.constant 0 : i32
    %c0_i32_0 = arith.constant 0 : i32
    %c0_i32_1 = arith.constant 0 : i32
    return %c0_i32, %c0_i32_0 : i32, i32
  }
  func.func @transform_11(%arg0: i32) -> (i32, i32) {
    %c0_i32 = arith.constant 0 : i32
    %c0_i32_0 = arith.constant 0 : i32
    %c0_i32_1 = arith.constant 0 : i32
    return %c0_i32, %c0_i32_0 : i32, i32
  }
  func.func @transform_12(%arg0: i32) -> (i32, i32) {
    %c0_i32 = arith.constant 0 : i32
    %c0_i32_0 = arith.constant 0 : i32
    %c0_i32_1 = arith.constant 0 : i32
    return %c0_i32, %c0_i32_0 : i32, i32
  }
  func.func @transform_13(%arg0: i32) -> (i32, i32) {
    %c0_i32 = arith.constant 0 : i32
    %c0_i32_0 = arith.constant 0 : i32
    %c0_i32_1 = arith.constant 0 : i32
    return %c0_i32, %c0_i32_0 : i32, i32
  }
  func.func @transform_14(%arg0: i32) -> (i32, i32) {
    %c0_i32 = arith.constant 0 : i32
    %c0_i32_0 = arith.constant 0 : i32
    %c0_i32_1 = arith.constant 0 : i32
    return %c0_i32, %c0_i32_0 : i32, i32
  }
  func.func @transform_15(%arg0: i32) -> (i32, i32, i32, i32) {
    %c0_i32 = arith.constant 0 : i32
    %c0_i32_0 = arith.constant 0 : i32
    %c0_i32_1 = arith.constant 0 : i32
    %c0_i32_2 = arith.constant 0 : i32
    return %arg0, %c0_i32, %c0_i32_0, %c0_i32_1 : i32, i32, i32, i32
  }
}

</mosaic_0001>

<bundles_post_ra>
// kernel: tpu_custom_call.1
= control target key start
LH: loop header
LB: loop body
LE: loop exit
PB: predicated region body
PF: predicated region fallthrough
CT: control target
= control target key end

     0   :  { %s16493_s0 = inlined_call_operand.vmem [shape: f32[2,16,16,32], index: 0, kind: input, shape index: {}]   ;;  %s16494_s1 = inlined_call_operand.vmem [shape: f32[32,32], index: 1, kind: input, shape index: {}]   ;;  %s16495_s2 = inlined_call_operand.vmem [shape: f32[32,32], index: 2, kind: input, shape index: {}]   ;;  %s16496_s3 = inlined_call_operand.vmem [shape: f32[1,32], index: 3, kind: input, shape index: {}]   ;;  %s16497_s4 = inlined_call_operand.vmem [shape: f32[1,32], index: 4, kind: input, shape index: {}]   ;;  %s16498_s5 = inlined_call_operand.vmem [shape: f32[288,64], index: 5, kind: input, shape index: {}]   ;;  %s16499_s6 = inlined_call_operand.vmem [shape: f32[1,64], index: 6, kind: input, shape index: {}]   ;;  %s16500_s7 = inlined_call_operand.vmem [shape: f32[64,32], index: 7, kind: input, shape index: {}]   ;;  %s16501_s8 = inlined_call_operand.vmem [shape: f32[32,64], index: 8, kind: input, shape index: {}]   ;;  %s16502_s9 = inlined_call_operand.vmem [shape: f32[1,64], index: 9, kind: input, shape index: {}]   ;;  %s16503_s10 = inlined_call_operand.vmem [shape: f32[1,64], index: 10, kind: input, shape index: {}]   ;;  %s16504_s11 = inlined_call_operand.vmem [shape: f32[576,64], index: 11, kind: input, shape index: {}]   ;;  %s16505_s12 = inlined_call_operand.vmem [shape: f32[1,64], index: 12, kind: input, shape index: {}]   ;;  %s16506_s13 = inlined_call_operand.vmem [shape: f32[32,64], index: 13, kind: input, shape index: {}]   ;;  %s16507_s14 = inlined_call_operand.vmem [shape: f32[1,64], index: 14, kind: input, shape index: {}]   ;;  %s16508_s15 = inlined_call_operand.hbm [shape: f32[2,16,16,64], index: 15, kind: output, shape index: {}]  }
   0x1   :  { %16708 = sst [smem:[#allocation63_spill]] %s16493_s0 }
   0x2   :  { %16709 = sst [smem:[#allocation64_spill]] %s16494_s1 }
   0x3   :  { %16710 = sst [smem:[#allocation65_spill]] %s16495_s2 }
   0x4   :  { %20 = vsyncpa [#allocation3], 0 }
   0x5   :  { %22 = vsyncpa [#allocation3 + $0x1], 0  ;;  %s12180_s18 = smov 0   ;;  %s12182_s19 = smov 0  }
   0x6   :  { %s12184_s20 = smov 0   ;;  %s12186_s21 = smov 0  }
   0x7 LB: > { %16711 = sst [smem:[#allocation5_spill]] %s12088_s20  ;;  %s12201_s22 = sadd.s32 4294967295, %s12092_s21   ;;  %s12092_s21 = sphi %s12186_s21, %s17011_s21   ;;  %s12088_s20 = sphi %s12184_s20, %s17008_s20   ;;  %s12084_s19 = sphi %s12182_s19, %s17010_s19   ;;  %s12080_s18 = sphi %s12180_s18, %s17009_s18  }
   0x8   : > { %s8282_s23 = sadd.s32 4294967294, %s12092_s21   ;;  %s12205_s24 = sadd.s32 1, %s12092_s21  }
   0x9   : > { %s355_s25 = sadd.s32 1, %s12088_s20  ;;  %s352_s26 = ssub.s32 %s12092_s21, %s12205_s24 }
   0xa   : > { %p365_p0 = scmp.ne.s32.totalorder %s12088_s20, %s12084_s19  ;;  %p353_p1 = scmp.eq.s32.totalorder %s352_s26, 0 }
   0xb   : > { %p366_p2 = scmp.eq.s32.totalorder %s12201_s22, 1  ;;  %p371_p3 = scmp.ne.s32.totalorder %s12084_s19, %s12080_s18 }
   0xc   : > { %p372_p4 = scmp.eq.s32.totalorder %s8282_s23, 1  ;;  %p8285_p7 = scmp.ge.s32.totalorder %s12092_s21, 1 }
   0xd   : > { %s12216_s27 = scalar_select %p353_p1, %s12088_s20, %s355_s25  }
   0xe   : > { %p12218_p5 = por %p366_p2, %p365_p0  ;;  %p12222_p6 = por %p372_p4, %p371_p3 }
   0xf   : > { %16712 = sst [smem:[#allocation6_spill]] %s12216_s27  ;;  %p440_p8 = scmp.lt.s32.totalorder %s12092_s21, 3 }
  0x11   : > { %p441_p9 = pnand %p8285_p7, %p440_p8 }
  0x13   : > { %444 = sbr.rel (%p441_p9) target bundleno = 3710 (0xe7e), region = 80 }
  0x1a   : > { %s16715_s1 = sld [smem:[#allocation64_spill]]  ;;  %v16512_v3 = vmov 0.0|0.0   ;;  %vm12095_vm0 = vmmov 0   ;;  %v16510_v6 = vmov 0.0   ;;  %p488_p10 = scmp.lt.s32.totalorder %s12201_s22, 1  ;;  %vm525_vm1 = vcmask 261120  }
  0x1b   : > { %10925 = vmatprep.subr.bf16.mxu0 %v16512_v3  ;;  %9693 = vmatprep.mubr.msk.f32.mxu0 %vm12095_vm0, %v16510_v6  ;;  %s16716_s2 = sld [smem:[#allocation65_spill]]  ;;  %s16717_s0 = sld [smem:[#allocation63_spill]]  ;;  %vm1306_vm2 = vcmask 1040384   ;;  %vm1460_vm3 = vcmask 1046528   ;;  %vm2123_vm4 = vcmask 1045504   ;;  %vm4158_vm5 = vcmask 523264  }
  0x1c   : > { %10931 = vmatprep.subr.bf16.mxu1 %v16512_v3  ;;  %9704 = vmatprep.mubr.msk.f32.mxu1 %vm12095_vm0, %v16510_v6  ;;  %s489_s30 = scalar_select %p488_p10, %s12201_s22, 1 }
  0x1d   : > { %s8916_s26 = sshll.u32 %s12201_s22, 12 }
  0x1e   : > { %s8915_s16 = sshll.u32 %s489_s30, 8 }
  0x20   : > { %v595_v0 = vld [vmem:[%s16715_s1] sm:$0xff]  ;;  %v596_v1 = vld [vmem:[%s16715_s1 + $0x8] sm:$0xff]  ;;  %v597_v2 = vld [vmem:[%s16715_s1 + $0x10] sm:$0xff] }
  0x21   : > { %v12238_v4 = vpack.c.bf16 %v596_v1, %v595_v0  ;;  %v598_v5 = vld [vmem:[%s16715_s1 + $0x18] sm:$0xff]  ;;  %v672_v7 = vld [vmem:[%s16716_s2] sm:$0xff]  ;;  %v673_v8 = vld [vmem:[%s16716_s2 + $0x8] sm:$0xff]  ;;  %s12275_s20 = scalar_lea.vmem %s16717_s0, %s8915_s16 }
  0x22   : > { %v12253_v9 = vpack.c.bf16 %v673_v8, %v672_v7  ;;  %v674_v10 = vld [vmem:[%s16716_s2 + $0x10] sm:$0xff]  ;;  %v675_v11 = vld [vmem:[%s16716_s2 + $0x18] sm:$0xff]  ;;  %v12264_v12 = vpack.c.bf16 %v598_v5, %v597_v2  ;;  %v12279_v14 = vld [vmem:[%s12275_s20] sm:$0xff]  ;;  %s485_s2 = sand.u32 1, %s12084_s19  }
  0x23   : > { %10927 = vmatpush3.bf16.msra.mxu0 %v12238_v4  ;;  %v12269_v13 = vpack.c.bf16 %v675_v11, %v674_v10  ;;  %v12282_v15 = vld [vmem:[%s12275_s20 + $0x8] sm:$0xff]  ;;  %v12285_v16 = vld [vmem:[%s12275_s20 + $0x10] sm:$0xff]  ;;  %v12288_v17 = vld [vmem:[%s12275_s20 + $0x18] sm:$0xff]  ;;  %v526_v18 = vsel %vm525_vm1, %v12279_v14, 0.0  ;;  %s8286_s17 = sshll.u32 %s485_s2, 8  ;;  %s16452_s22 = scalar_lea.sflag [#allocation3], %s485_s2 }
  0x24   : > { %10928 = vmatprep.subr.bf16.mxu0 %v16512_v3  ;;  %10933 = vmatpush3.bf16.msra.mxu1 %v12253_v9  ;;  %v527_v19 = vsel %vm525_vm1, %v12282_v15, 0.0  ;;  %v529_v20 = vsel %vm525_vm1, %v12285_v16, 0.0  ;;  %v12299_v21 = vld [vmem:[%s12275_s20 + $0x20] sm:$0xff]  ;;  %v531_v23 = vsel %vm525_vm1, %v12288_v17, 0.0  ;;  %v12305_v24 = vld [vmem:[%s12275_s20 + $0x28] sm:$0xff]  ;;  %v12310_v27 = vld [vmem:[%s12275_s20 + $0x30] sm:$0xff] }
  0x25   : > { %10934 = vmatprep.subr.bf16.mxu1 %v16512_v3  ;;  %v528_v22 = vadd.f32 %v527_v19, %v526_v18  ;;  %v533_v26 = vsel %vm525_vm1, %v12299_v21, 0.0  ;;  %v535_v29 = vsel %vm525_vm1, %v12305_v24, 0.0  ;;  %v12315_v30 = vld [vmem:[%s12275_s20 + $0x38] sm:$0xff]  ;;  %v537_v32 = vsel %vm525_vm1, %v12310_v27, 0.0  ;;  %v12320_v33 = vld [vmem:[%s12275_s20 + $0x40] sm:$0xff]  ;;  %v12325_v36 = vld [vmem:[%s12275_s20 + $0x48] sm:$0xff] }
  0x26   : > { %v539_v35 = vsel %vm525_vm1, %v12315_v30, 0.0  ;;  %v541_v38 = vsel %vm525_vm1, %v12320_v33, 0.0  ;;  %v12330_v39 = vld [vmem:[%s12275_s20 + $0x50] sm:$0xff]  ;;  %v543_v41 = vsel %vm525_vm1, %v12325_v36, 0.0  ;;  %v12335_v42 = vld [vmem:[%s12275_s20 + $0x58] sm:$0xff]  ;;  %v12340_v45 = vld [vmem:[%s12275_s20 + $0x60] sm:$0xff] }
  0x27   : > { %10930 = vmatpush3.bf16.msra.mxu0 %v12264_v12  ;;  %v530_v25 = vadd.f32 %v529_v20, %v528_v22  ;;  %v545_v44 = vsel %vm525_vm1, %v12330_v39, 0.0  ;;  %v547_v47 = vsel %vm525_vm1, %v12335_v42, 0.0  ;;  %v12345_v48 = vld [vmem:[%s12275_s20 + $0x68] sm:$0xff]  ;;  %v549_v50 = vsel %vm525_vm1, %v12340_v45, 0.0  ;;  %v12350_v51 = vld [vmem:[%s12275_s20 + $0x70] sm:$0xff]  ;;  %v12355_v54 = vld [vmem:[%s12275_s20 + $0x78] sm:$0xff] }
  0x28   : > { %10936 = vmatpush3.bf16.msra.mxu1 %v12269_v13  ;;  %10937 = vmatprep.subr.bf16.mxu0 %v16512_v3  ;;  %v551_v53 = vsel %vm525_vm1, %v12345_v48, 0.0  ;;  %v553_v56 = vsel %vm525_vm1, %v12350_v51, 0.0  ;;  %v12360_v57 = vld [vmem:[%s12275_s20 + $0x80] sm:$0xff]  ;;  %v555_v59 = vsel %vm525_vm1, %v12355_v54, 0.0  ;;  %v12365_v60 = vld [vmem:[%s12275_s20 + $0x88] sm:$0xff]  ;;  %v12370_v63 = vld [vmem:[%s12275_s20 + $0x90] sm:$0xff] }
  0x29   : > { %10943 = vmatprep.subr.bf16.mxu1 %v16512_v3  ;;  %v532_v28 = vadd.f32 %v531_v23, %v530_v25  ;;  %v557_v62 = vsel %vm525_vm1, %v12360_v57, 0.0  ;;  %v559_v1 = vsel %vm525_vm1, %v12365_v60, 0.0  ;;  %v12375_v2 = vld [vmem:[%s12275_s20 + $0x98] sm:$0xff]  ;;  %v561_v7 = vsel %vm525_vm1, %v12370_v63, 0.0  ;;  %v12380_v8 = vld [vmem:[%s12275_s20 + $0xa0] sm:$0xff]  ;;  %v12385_v18 = vld [vmem:[%s12275_s20 + $0xa8] sm:$0xff] }
  0x2a   : > { %v563_v11 = vsel %vm525_vm1, %v12375_v2, 0.0  ;;  %v565_v20 = vsel %vm525_vm1, %v12380_v8, 0.0  ;;  %v12390_v22 = vld [vmem:[%s12275_s20 + $0xb0] sm:$0xff]  ;;  %v567_v25 = vsel %vm525_vm1, %v12385_v18, 0.0  ;;  %s16295_s25 = scalar_lea.vmem [#allocation2], %s8286_s17  ;;  %s12097_s17 = smov [#allocation2]  }
  0x2b   : > { %v534_v31 = vadd.f32 %v533_v26, %v532_v28  ;;  %v12395_v26 = vld [vmem:[%s12275_s20 + $0xb8] sm:$0xff]  ;;  %s8220_s30 = sshll.u32 %s16295_s25, 4  ;;  %s12034_s23 = sshll.u32 %s12097_s17, 4  ;;  %s16444_s30 = int_to_ptr.vmem [resolvable:$true] %s8220_s30  ;;  %s12035_s23 = int_to_ptr.vmem [resolvable:$false] %s12034_s23 }
  0x2c   : > { %s12030_s1 = scalar_lea.vmem %s16444_s30, 4096  ;;  %s12036_s27 = scalar_lea.vmem %s12035_s23, 8192 }
  0x2d   : > { %v536_v34 = vadd.f32 %v535_v29, %v534_v31  ;;  %v569_v29 = vsel %vm525_vm1, %v12390_v22, 0.0  ;;  %v12400_v31 = vld [vmem:[%s12275_s20 + $0xc0] sm:$0xff]  ;;  %p12031_p11 = scmp.ne.s32.totalorder %s16444_s30, %s12030_s1  ;;  %p12037_p0 = scmp.lt.s32.totalorder %s16444_s30, %s12035_s23 }
  0x2e   : > { %p12038_p1 = scmp.lt.s32.totalorder %s12036_s27, %s12030_s1 }
  0x2f   : > { %v538_v37 = vadd.f32 %v537_v32, %v536_v34  ;;  %v571_v34 = vsel %vm525_vm1, %v12395_v26, 0.0  ;;  %p12032_p12 = pnand %p12031_p11, %p12218_p5 }
  0x30   : > { %p12039_p2 = por %p12038_p1, %p12037_p0 }
  0x31   : > { %v540_v40 = vadd.f32 %v539_v35, %v538_v37  ;;  %v12405_v35 = vld [vmem:[%s12275_s20 + $0xc8] sm:$0xff]  ;;  %p12033_p13 = pneg %p12032_p12 }
  0x33   : > { %v542_v43 = vadd.f32 %v541_v38, %v540_v40  ;;  %v573_v38 = vsel %vm525_vm1, %v12400_v31, 0.0  ;;  %v12410_v40 = vld [vmem:[%s12275_s20 + $0xd0] sm:$0xff]  ;;  %p12040_p3 = pnand %p12039_p2, %p12033_p13 }
  0x35   : > { %v544_v46 = vadd.f32 %v543_v41, %v542_v43  ;;  %v575_v43 = vsel %vm525_vm1, %v12405_v35, 0.0 }
  0x37   : > { %v546_v49 = vadd.f32 %v545_v44, %v544_v46  ;;  %v12415_v44 = vld [vmem:[%s12275_s20 + $0xd8] sm:$0xff] }
  0x39   : > { %v548_v52 = vadd.f32 %v547_v47, %v546_v49  ;;  %v577_v47 = vsel %vm525_vm1, %v12410_v40, 0.0  ;;  %v12420_v49 = vld [vmem:[%s12275_s20 + $0xe0] sm:$0xff] }
  0x3b   : > { %v550_v55 = vadd.f32 %v549_v50, %v548_v52  ;;  %v579_v52 = vsel %vm525_vm1, %v12415_v44, 0.0 }
  0x3d   : > { %v552_v58 = vadd.f32 %v551_v53, %v550_v55  ;;  %v12425_v53 = vld [vmem:[%s12275_s20 + $0xe8] sm:$0xff] }
  0x3f   : > { %v554_v61 = vadd.f32 %v553_v56, %v552_v58  ;;  %v581_v56 = vsel %vm525_vm1, %v12420_v49, 0.0  ;;  %v12430_v58 = vld [vmem:[%s12275_s20 + $0xf0] sm:$0xff] }
  0x41   : > { %v556_v0 = vadd.f32 %v555_v59, %v554_v61  ;;  %v583_v61 = vsel %vm525_vm1, %v12425_v53, 0.0 }
  0x43   : > { %v558_v5 = vadd.f32 %v557_v62, %v556_v0  ;;  %v12435_v62 = vld [vmem:[%s12275_s20 + $0xf8] sm:$0xff] }
  0x45   : > { %v560_v10 = vadd.f32 %v559_v1, %v558_v5  ;;  %v585_v1 = vsel %vm525_vm1, %v12430_v58, 0.0 }
  0x47   : > { %v562_v19 = vadd.f32 %v561_v7, %v560_v10  ;;  %v587_v7 = vsel %vm525_vm1, %v12435_v62, 0.0 }
  0x49   : > { %v564_v23 = vadd.f32 %v563_v11, %v562_v19 }
  0x4b   : > { %v566_v28 = vadd.f32 %v565_v20, %v564_v23 }
  0x4d   : > { %v568_v32 = vadd.f32 %v567_v25, %v566_v28 }
  0x4f   : > { %v570_v37 = vadd.f32 %v569_v29, %v568_v32 }
  0x51   : > { %v572_v41 = vadd.f32 %v571_v34, %v570_v37 }
  0x53   : > { %v574_v46 = vadd.f32 %v573_v38, %v572_v41 }
  0x55   : > { %v576_v50 = vadd.f32 %v575_v43, %v574_v46 }
  0x57   : > { %v578_v55 = vadd.f32 %v577_v47, %v576_v50 }
  0x59   : > { %v580_v59 = vadd.f32 %v579_v52, %v578_v55 }
  0x5b   : > { %v582_v0 = vadd.f32 %v581_v56, %v580_v59 }
  0x5d   : > { %v584_v5 = vadd.f32 %v583_v61, %v582_v0 }
  0x5f   : > { %v586_v10 = vadd.f32 %v585_v1, %v584_v5 }
  0x61   : > { %v588_v11 = vadd.f32 %v587_v7, %v586_v10 }
  0x63   : > { %v589_v19 = vrot.slane %v588_v11, 4 }
  0x65   : > { %v590_v20 = vadd.f32 %v589_v19, %v588_v11 }
  0x67   : > { %v591_v23 = vrot.slane %v590_v20, 2 }
  0x69   : > { %v592_v25 = vadd.f32 %v591_v23, %v590_v20 }
  0x6b   : > { %v593_v28 = vrot.slane %v592_v25, 1 }
  0x6d   : > { %v594_v29 = vadd.f32 %v593_v28, %v592_v25 }
  0x6f   : > { %9694 = vmatmul.mubr.msk.f32.vlgmr.msra.gmra.mrb[0].mxu0 %vm525_vm1, %v594_v29 }
  0x70   : > { %10939 = vmatpush3.bf16.msra.mxu0 %v12238_v4  ;;  %9715 = vmatprep.mubr.msk.f32.mxu0 %vm12095_vm0, %v16510_v6  ;;  %v750_v4 = vlaneseq }
  0x71   : > { %10940 = vmatprep.subr.bf16.mxu0 %v16512_v3 }
  0x72   : > { %v751_v38 = vshrl.u32 %v750_v4, 7 }
  0x74   : > { %10942 = vmatpush3.bf16.msra.mxu0 %v12264_v12  ;;  %v12454_v43 = vsub.s32 0, %v751_v38 }
  0x76   : > { %16718 = vst [vmem:[#allocation7_spill] sm:$0xff] %v12454_v43 }
 0x142   : > { %v668_v32 = vpop.f32.mrb[0].mxu0 }
 0x143   : > { %v9695_v34 = vpop.f32.mrb[1].mxu0  ;;  %9705 = vmatmul.mubr.msk.f32.vlgmr.msra.gmra.mrb[0].mxu1 %vm525_vm1, %v668_v32 }
 0x144   : > { %10945 = vmatpush3.bf16.msra.mxu1 %v12253_v9  ;;  %9726 = vmatprep.mubr.msk.f32.mxu1 %vm12095_vm0, %v16510_v6 }
 0x145   : > { %10946 = vmatprep.subr.bf16.mxu1 %v16512_v3 }
 0x148   : > { %10948 = vmatpush3.bf16.msra.mxu1 %v12269_v13 }
 0x149   : > { %11021 = vmatprep.subr.bf16.mxu1 %v16512_v3 }
 0x216   : > { %v745_v37 = vpop.f32.mrb[0].mxu1 }
 0x217   : > { %v9706_v41 = vpop.f32.mrb[1].mxu1  ;;  %v749_v12 = vmul.f32 0.00390625, %v745_v37 }
 0x219   : > { %v12457_v46 = vrot.slane %v749_v12, %v12454_v43 }
 0x21b   : > { %v12461_v9 = vsub.f32 %v12279_v14, %v12457_v46  ;;  %v12465_v47 = vsub.f32 %v12282_v15, %v12457_v46  ;;  %v12469_v13 = vsub.f32 %v12285_v16, %v12457_v46  ;;  %v12473_v50 = vsub.f32 %v12288_v17, %v12457_v46 }
 0x21c   : > { %v12481_v14 = vsub.f32 %v12299_v21, %v12457_v46  ;;  %v12487_v16 = vsub.f32 %v12305_v24, %v12457_v46  ;;  %v12495_v0 = vsub.f32 %v12310_v27, %v12457_v46  ;;  %v12502_v24 = vsub.f32 %v12315_v30, %v12457_v46 }
 0x21d   : > { %v786_v52 = vmul.f32 %v12461_v9, %v12461_v9  ;;  %v787_v55 = vmul.f32 %v12465_v47, %v12465_v47  ;;  %v788_v15 = vmul.f32 %v12469_v13, %v12469_v13  ;;  %v789_v17 = vmul.f32 %v12473_v50, %v12473_v50 }
 0x21e   : > { %v790_v21 = vmul.f32 %v12481_v14, %v12481_v14  ;;  %v791_v7 = vmul.f32 %v12487_v16, %v12487_v16  ;;  %v12509_v27 = vsub.f32 %v12320_v33, %v12457_v46  ;;  %v792_v19 = vmul.f32 %v12495_v0, %v12495_v0 }
 0x21f   : > { %v818_v56 = vsel %vm525_vm1, %v786_v52, 0.0  ;;  %v819_v59 = vsel %vm525_vm1, %v787_v55, 0.0  ;;  %v821_v1 = vsel %vm525_vm1, %v788_v15, 0.0  ;;  %v823_v10 = vsel %vm525_vm1, %v789_v17, 0.0 }
 0x220   : > { %v820_v61 = vadd.f32 %v819_v59, %v818_v56  ;;  %v825_v20 = vsel %vm525_vm1, %v790_v21, 0.0  ;;  %v12516_v30 = vsub.f32 %v12325_v36, %v12457_v46  ;;  %v793_v25 = vmul.f32 %v12502_v24, %v12502_v24 }
 0x221   : > { %v827_v28 = vsel %vm525_vm1, %v791_v7, 0.0  ;;  %v12523_v33 = vsub.f32 %v12330_v39, %v12457_v46  ;;  %v794_v32 = vmul.f32 %v12509_v27, %v12509_v27  ;;  %v829_v34 = vsel %vm525_vm1, %v792_v19, 0.0 }
 0x222   : > { %v822_v5 = vadd.f32 %v821_v1, %v820_v61  ;;  %v12530_v36 = vsub.f32 %v12335_v42, %v12457_v46  ;;  %v795_v37 = vmul.f32 %v12516_v30, %v12516_v30  ;;  %v831_v38 = vsel %vm525_vm1, %v793_v25, 0.0 }
 0x223   : > { %v12537_v39 = vsub.f32 %v12340_v45, %v12457_v46  ;;  %v796_v12 = vmul.f32 %v12523_v33, %v12523_v33  ;;  %v833_v52 = vsel %vm525_vm1, %v794_v32, 0.0  ;;  %v12544_v42 = vsub.f32 %v12345_v48, %v12457_v46 }
 0x224   : > { %v824_v11 = vadd.f32 %v823_v10, %v822_v5  ;;  %v797_v15 = vmul.f32 %v12530_v36, %v12530_v36  ;;  %v835_v17 = vsel %vm525_vm1, %v795_v37, 0.0  ;;  %v12551_v45 = vsub.f32 %v12350_v51, %v12457_v46 }
 0x225   : > { %v798_v59 = vmul.f32 %v12537_v39, %v12537_v39  ;;  %v837_v61 = vsel %vm525_vm1, %v796_v12, 0.0  ;;  %v12558_v48 = vsub.f32 %v12355_v54, %v12457_v46  ;;  %v799_v1 = vmul.f32 %v12544_v42, %v12544_v42 }
 0x226   : > { %v826_v23 = vadd.f32 %v825_v20, %v824_v11  ;;  %v839_v5 = vsel %vm525_vm1, %v797_v15, 0.0  ;;  %v12565_v51 = vsub.f32 %v12360_v57, %v12457_v46  ;;  %v800_v10 = vmul.f32 %v12551_v45, %v12551_v45 }
 0x227   : > { %v841_v11 = vsel %vm525_vm1, %v798_v59, 0.0  ;;  %v12572_v54 = vsub.f32 %v12365_v60, %v12457_v46  ;;  %v801_v20 = vmul.f32 %v12558_v48, %v12558_v48  ;;  %v12579_v57 = vsub.f32 %v12370_v63, %v12457_v46 }
 0x228   : > { %v828_v29 = vadd.f32 %v827_v28, %v826_v23  ;;  %v843_v23 = vsel %vm525_vm1, %v799_v1, 0.0  ;;  %v802_v28 = vmul.f32 %v12565_v51, %v12565_v51  ;;  %v12586_v60 = vsub.f32 %v12375_v2, %v12457_v46 }
 0x229   : > { %v12593_v63 = vsub.f32 %v12380_v8, %v12457_v46  ;;  %v12600_v2 = vsub.f32 %v12385_v18, %v12457_v46  ;;  %v12607_v8 = vsub.f32 %v12390_v22, %v12457_v46  ;;  %v12614_v18 = vsub.f32 %v12395_v26, %v12457_v46 }
 0x22a   : > { %v830_v4 = vadd.f32 %v829_v34, %v828_v29  ;;  %v845_v29 = vsel %vm525_vm1, %v800_v10, 0.0  ;;  %v803_v34 = vmul.f32 %v12572_v54, %v12572_v54  ;;  %v12621_v22 = vsub.f32 %v12400_v31, %v12457_v46 }
 0x22b   : > { %v12628_v26 = vsub.f32 %v12405_v35, %v12457_v46  ;;  %v12635_v31 = vsub.f32 %v12410_v40, %v12457_v46  ;;  %v12642_v35 = vsub.f32 %v12415_v44, %v12457_v46  ;;  %v12649_v40 = vsub.f32 %v12420_v49, %v12457_v46 }
 0x22c   : > { %v832_v41 = vadd.f32 %v831_v38, %v830_v4  ;;  %v847_v4 = vsel %vm525_vm1, %v801_v20, 0.0  ;;  %v804_v38 = vmul.f32 %v12579_v57, %v12579_v57  ;;  %v12656_v44 = vsub.f32 %v12425_v53, %v12457_v46 }
 0x22d   : > { %v12663_v49 = vsub.f32 %v12430_v58, %v12457_v46  ;;  %v12670_v53 = vsub.f32 %v12435_v62, %v12457_v46 }
 0x22e   : > { %v834_v55 = vadd.f32 %v833_v52, %v832_v41  ;;  %v849_v41 = vsel %vm525_vm1, %v802_v28, 0.0  ;;  %v805_v52 = vmul.f32 %v12586_v60, %v12586_v60 }
 0x22f   : > { %16719 = vst [vmem:[#allocation8_spill] sm:$0xff] %v12663_v49  ;;  %16720 = vst [vmem:[#allocation9_spill] sm:$0xff] %v12670_v53  ;;  %v816_v58 = vmul.f32 %v12663_v49, %v12663_v49 }
 0x230   : > { %v836_v56 = vadd.f32 %v835_v17, %v834_v55  ;;  %v851_v55 = vsel %vm525_vm1, %v803_v34, 0.0  ;;  %v806_v17 = vmul.f32 %v12593_v63, %v12593_v63 }
 0x231   : > { %v877_v62 = vsel %vm525_vm1, %v816_v58, 0.0 }
 0x232   : > { %v838_v21 = vadd.f32 %v837_v61, %v836_v56  ;;  %v853_v56 = vsel %vm525_vm1, %v804_v38, 0.0  ;;  %v807_v61 = vmul.f32 %v12600_v2, %v12600_v2 }
 0x234   : > { %v840_v7 = vadd.f32 %v839_v5, %v838_v21  ;;  %v855_v21 = vsel %vm525_vm1, %v805_v52, 0.0  ;;  %v808_v5 = vmul.f32 %v12607_v8, %v12607_v8 }
 0x236   : > { %v842_v19 = vadd.f32 %v841_v11, %v840_v7  ;;  %v857_v7 = vsel %vm525_vm1, %v806_v17, 0.0  ;;  %v809_v11 = vmul.f32 %v12614_v18, %v12614_v18 }
 0x238   : > { %v844_v25 = vadd.f32 %v843_v23, %v842_v19  ;;  %v859_v19 = vsel %vm525_vm1, %v807_v61, 0.0  ;;  %v810_v23 = vmul.f32 %v12621_v22, %v12621_v22 }
 0x23a   : > { %v846_v32 = vadd.f32 %v845_v29, %v844_v25  ;;  %v861_v25 = vsel %vm525_vm1, %v808_v5, 0.0  ;;  %v811_v29 = vmul.f32 %v12628_v26, %v12628_v26  ;;  %v817_v5 = vmul.f32 %v12670_v53, %v12670_v53 }
 0x23c   : > { %v848_v37 = vadd.f32 %v847_v4, %v846_v32  ;;  %v863_v32 = vsel %vm525_vm1, %v809_v11, 0.0  ;;  %v812_v4 = vmul.f32 %v12635_v31, %v12635_v31  ;;  %v879_v11 = vsel %vm525_vm1, %v817_v5, 0.0 }
 0x23e   : > { %v850_v12 = vadd.f32 %v849_v41, %v848_v37  ;;  %v865_v37 = vsel %vm525_vm1, %v810_v23, 0.0  ;;  %v813_v41 = vmul.f32 %v12642_v35, %v12642_v35 }
 0x240   : > { %v852_v15 = vadd.f32 %v851_v55, %v850_v12  ;;  %v867_v12 = vsel %vm525_vm1, %v811_v29, 0.0  ;;  %v814_v55 = vmul.f32 %v12649_v40, %v12649_v40 }
 0x242   : > { %v854_v59 = vadd.f32 %v853_v56, %v852_v15  ;;  %v869_v15 = vsel %vm525_vm1, %v812_v4, 0.0  ;;  %v815_v56 = vmul.f32 %v12656_v44, %v12656_v44 }
 0x244   : > { %v856_v1 = vadd.f32 %v855_v21, %v854_v59  ;;  %v871_v59 = vsel %vm525_vm1, %v813_v41, 0.0  ;;  %v873_v21 = vsel %vm525_vm1, %v814_v55, 0.0  ;;  %v1543_v41 = vld [vmem:[%s16498_s5 + $0x30] sm:$0xff]  ;;  %v1544_v55 = vld [vmem:[%s16498_s5 + $0x38] sm:$0xff] }
 0x246   : > { %v858_v10 = vadd.f32 %v857_v7, %v856_v1  ;;  %v875_v7 = vsel %vm525_vm1, %v815_v56, 0.0 }
 0x248   : > { %v860_v20 = vadd.f32 %v859_v19, %v858_v10 }
 0x24a   : > { %v862_v28 = vadd.f32 %v861_v25, %v860_v20 }
 0x24c   : > { %v864_v34 = vadd.f32 %v863_v32, %v862_v28 }
 0x24e   : > { %v866_v38 = vadd.f32 %v865_v37, %v864_v34  ;;  %v1541_v37 = vld [vmem:[%s16498_s5 + $0x20] sm:$0xff] }
 0x250   : > { %v868_v52 = vadd.f32 %v867_v12, %v866_v38  ;;  %v1542_v38 = vld [vmem:[%s16498_s5 + $0x28] sm:$0xff]  ;;  %v12697_v12 = vrot.slane %v16510_v6, 7 }
 0x252   : > { %v870_v17 = vadd.f32 %v869_v15, %v868_v52  ;;  %16721 = vst [vmem:[#allocation10_spill] sm:$0xff] %v12697_v12  ;;  %v10949_v52 = vpack.c.bf16 %v1542_v38, %v1541_v37  ;;  %v10953_v15 = vpack.c.bf16 %v1544_v55, %v1543_v41  ;;  %v1462_v56 = vrot.slane %v12697_v12, 1  ;;  %v12753_v41 = vld [vmem:[%s16497_s4] ss:$0 sm:$0xff] }
 0x254   : > { %v872_v61 = vadd.f32 %v871_v59, %v870_v17  ;;  %v12704_v17 = vsel %vm1306_vm2, 0.0, %v12697_v12  ;;  %v1424_v59 = vld [vmem:[%s16498_s5] sm:$0xff]  ;;  %10950 = vmatprep.subr.bf16.mxu0 %v10949_v52 }
 0x255   : > { %16722 = vst [vmem:[#allocation11_spill] sm:$0xff] %v12704_v17  ;;  %v1461_v58 = vrot.slane %v12704_v17, 1 }
 0x256   : > { %v874_v1 = vadd.f32 %v873_v21, %v872_v61  ;;  %v1425_v61 = vld [vmem:[%s16498_s5 + $0x8] sm:$0xff]  ;;  %v12716_v21 = vsel %vm1306_vm2, %v12697_v12, 0.0 }
 0x257   : > { %v12720_v5 = vsel %vm1460_vm3, %v1461_v58, %v1462_v56 }
 0x258   : > { %v876_v10 = vadd.f32 %v875_v7, %v874_v1  ;;  %v1464_v1 = vrot.slane %v12716_v21, 1  ;;  %16723 = vst [vmem:[#allocation12_spill] sm:$0xff] %v12720_v5  ;;  %v10957_v7 = vpack.c.bf16 %v1425_v61, %v1424_v59 }
 0x25a   : > { %v878_v46 = vadd.f32 %v877_v62, %v876_v10  ;;  %v12725_v10 = vsel %vm1460_vm3, %v1462_v56, %v1464_v1  ;;  %v1426_v62 = vld [vmem:[%s16498_s5 + $0x10] sm:$0xff] }
 0x25b   : > { %16724 = vst [vmem:[#allocation13_spill] sm:$0xff] %v12725_v10 }
 0x25c   : > { %v880_v19 = vadd.f32 %v879_v11, %v878_v46  ;;  %v1427_v46 = vld [vmem:[%s16498_s5 + $0x18] sm:$0xff] }
 0x25d   : > { %v10961_v11 = vpack.c.bf16 %v1427_v46, %v1426_v62 }
 0x25e   : > { %v881_v20 = vrot.slane %v880_v19, 4 }
 0x260   : > { %v882_v23 = vadd.f32 %v881_v20, %v880_v19  ;;  %v2204_v19 = vld [vmem:[%s16498_s5 + $0x40] sm:$0xff]  ;;  %v2205_v20 = vld [vmem:[%s16498_s5 + $0x48] sm:$0xff] }
 0x262   : > { %v883_v25 = vrot.slane %v882_v23, 2 }
 0x264   : > { %v884_v28 = vadd.f32 %v883_v25, %v882_v23  ;;  %v12741_v23 = vpack.c.bf16 %v2205_v20, %v2204_v19 }
 0x266   : > { %v885_v29 = vrot.slane %v884_v28, 1 }
 0x268   : > { %v886_v32 = vadd.f32 %v885_v29, %v884_v28 }
 0x26a   : > { %9716 = vmatmul.mubr.msk.f32.vlgmr.msra.gmra.mrb[2].mxu0 %vm525_vm1, %v886_v32 }
 0x26b   : > { %10952 = vmatpush3.bf16.msra.mxu0 %v10949_v52  ;;  %9737 = vmatprep.mubr.msk.f32.mxu0 %vm525_vm1, %v12720_v5 }
 0x26c   : > { %10954 = vmatprep.subr.bf16.mxu0 %v10953_v15 }
 0x26f   : > { %10956 = vmatpush3.bf16.msra.mxu0 %v10953_v15 }
 0x270   : > { %10958 = vmatprep.subr.bf16.mxu0 %v10957_v7 }
 0x272   : > { %9738 = vmatmul.mubr.msk.f32.vlgmr.msra.gmra.mrb[4].mxu0 %vm525_vm1, %v12725_v10 }
 0x273   : > { %10960 = vmatpush3.bf16.msra.mxu0 %v10957_v7 }
 0x274   : > { %10962 = vmatprep.subr.bf16.mxu0 %v10961_v11 }
 0x277   : > { %10964 = vmatpush3.bf16.msra.mxu0 %v10961_v11 }
 0x278   : > { %10966 = vmatprep.subr.bf16.mxu0 %v12741_v23 }
 0x33d   : > { %v956_v34 = vpop.f32.mrb[2].mxu0 }
 0x33e   : > { %v9717_v4 = vpop.f32.mrb[3].mxu0  ;;  %9727 = vmatmul.mubr.msk.f32.vlgmr.msra.gmra.mrb[2].mxu1 %vm525_vm1, %v956_v34  ;;  %v1036_v34 = vld [vmem:[%s16496_s3] sm:$0x1] }
 0x33f   : > { %10249 = vmatprep.mubr.msk.f32.mxu1 %vm12095_vm0, %v16510_v6 }
 0x411   : > { %v1029_v25 = vpop.f32.mrb[2].mxu1 }
 0x412   : > { %v1033_v28 = vmul.f32 0.00390625, %v1029_v25  ;;  %v9728_v29 = vpop.f32.mrb[3].mxu1 }
 0x414   : > { %v1034_v32 = vadd.f32 1e-06, %v1033_v28 }
 0x416   : > { %11865 = vrsqrt.f32 %v1034_v32 }
 0x420   : > { %v11866_v4 = vpop.eup %11865 }
 0x421   : > { %v1037_v37 = vmul.f32 %v11866_v4, %v1036_v34 }
 0x423   : > { %v12748_v38 = vrot.slane %v1037_v37, %v12454_v43 }
 0x425   : > { %v1042_v52 = vmul.f32 %v12748_v38, %v12461_v9  ;;  %v1043_v55 = vmul.f32 %v12748_v38, %v12465_v47  ;;  %v1044_v15 = vmul.f32 %v12748_v38, %v12469_v13  ;;  %v1045_v56 = vmul.f32 %v12748_v38, %v12473_v50 }
 0x426   : > { %v1046_v59 = vmul.f32 %v12748_v38, %v12481_v14  ;;  %v1047_v61 = vmul.f32 %v12748_v38, %v12487_v16  ;;  %v1048_v58 = vmul.f32 %v12748_v38, %v12495_v0  ;;  %v1049_v9 = vmul.f32 %v12748_v38, %v12502_v24 }
 0x427   : > { %v12772_v47 = vadd.f32 %v12753_v41, %v1042_v52  ;;  %v12775_v13 = vadd.f32 %v12753_v41, %v1043_v55  ;;  %v12778_v50 = vadd.f32 %v12753_v41, %v1044_v15  ;;  %v12781_v14 = vadd.f32 %v12753_v41, %v1045_v56 }
 0x428   : > { %v12784_v16 = vadd.f32 %v12753_v41, %v1046_v59  ;;  %v12787_v0 = vadd.f32 %v12753_v41, %v1047_v61  ;;  %v12790_v24 = vadd.f32 %v12753_v41, %v1048_v58  ;;  %v12793_v1 = vadd.f32 %v12753_v41, %v1049_v9 }
 0x429   : > { %v1113_v7 = vmul.f32 0.5, %v12772_v47  ;;  %v1114_v62 = vmul.f32 0.5, %v12775_v13  ;;  %v1115_v46 = vmul.f32 0.5, %v12778_v50  ;;  %v1116_v11 = vmul.f32 0.5, %v12781_v14 }
 0x42a   : > { %v1117_v19 = vmul.f32 0.5, %v12784_v16  ;;  %v1118_v20 = vmul.f32 0.5, %v12787_v0  ;;  %v1119_v25 = vmul.f32 0.5, %v12790_v24  ;;  %v1120_v28 = vmul.f32 0.5, %v12793_v1 }
 0x42b   : > { %11867 = vtanh.f32 %v1113_v7  ;;  %v1050_v29 = vmul.f32 %v12748_v38, %v12509_v27  ;;  %v1051_v32 = vmul.f32 %v12748_v38, %v12516_v30  ;;  %v1052_v34 = vmul.f32 %v12748_v38, %v12523_v33 }
 0x42c   : > { %11869 = vtanh.f32 %v1114_v62  ;;  %v1053_v4 = vmul.f32 %v12748_v38, %v12530_v36  ;;  %v1054_v37 = vmul.f32 %v12748_v38, %v12537_v39  ;;  %v1055_v52 = vmul.f32 %v12748_v38, %v12544_v42 }
 0x42d   : > { %11871 = vtanh.f32 %v1115_v46  ;;  %v12816_v55 = vadd.f32 %v12753_v41, %v1050_v29  ;;  %v12819_v27 = vadd.f32 %v12753_v41, %v1051_v32  ;;  %v12822_v30 = vadd.f32 %v12753_v41, %v1052_v34 }
 0x42e   : > { %11873 = vtanh.f32 %v1116_v11  ;;  %v12825_v33 = vadd.f32 %v12753_v41, %v1053_v4  ;;  %v12828_v36 = vadd.f32 %v12753_v41, %v1054_v37  ;;  %v12831_v39 = vadd.f32 %v12753_v41, %v1055_v52 }
 0x42f   : > { %11875 = vtanh.f32 %v1117_v19  ;;  %v1121_v42 = vmul.f32 0.5, %v12816_v55  ;;  %v1122_v15 = vmul.f32 0.5, %v12819_v27  ;;  %v1123_v56 = vmul.f32 0.5, %v12822_v30 }
 0x430   : > { %11877 = vtanh.f32 %v1118_v20  ;;  %v1124_v59 = vmul.f32 0.5, %v12825_v33  ;;  %v1125_v61 = vmul.f32 0.5, %v12828_v36  ;;  %v1126_v58 = vmul.f32 0.5, %v12831_v39 }
 0x431   : > { %11879 = vtanh.f32 %v1119_v25  ;;  %v1056_v9 = vmul.f32 %v12748_v38, %v12551_v45  ;;  %v1057_v7 = vmul.f32 %v12748_v38, %v12558_v48  ;;  %v1058_v62 = vmul.f32 %v12748_v38, %v12565_v51 }
 0x432   : > { %11881 = vtanh.f32 %v1120_v28  ;;  %v1059_v46 = vmul.f32 %v12748_v38, %v12572_v54  ;;  %v1060_v11 = vmul.f32 %v12748_v38, %v12579_v57  ;;  %v1061_v19 = vmul.f32 %v12748_v38, %v12586_v60 }
 0x433   : > { %11883 = vtanh.f32 %v1121_v42  ;;  %v12852_v20 = vadd.f32 %v12753_v41, %v1056_v9  ;;  %v12855_v45 = vadd.f32 %v12753_v41, %v1057_v7  ;;  %v12858_v48 = vadd.f32 %v12753_v41, %v1058_v62 }
 0x434   : > { %11885 = vtanh.f32 %v1122_v15  ;;  %v12861_v51 = vadd.f32 %v12753_v41, %v1059_v46  ;;  %v12864_v54 = vadd.f32 %v12753_v41, %v1060_v11  ;;  %v12867_v57 = vadd.f32 %v12753_v41, %v1061_v19 }
 0x435   : > { %v11868_v60 = vpop.eup %11867  ;;  %11887 = vtanh.f32 %v1123_v56  ;;  %v1127_v25 = vmul.f32 0.5, %v12852_v20  ;;  %v1128_v28 = vmul.f32 0.5, %v12855_v45  ;;  %v1129_v29 = vmul.f32 0.5, %v12858_v48 }
 0x436   : > { %v11870_v32 = vpop.eup %11869  ;;  %v1177_v34 = vmul.f32 0.5, %v11868_v60  ;;  %11889 = vtanh.f32 %v1124_v59  ;;  %v12873_v4 = vmul.f32 0.5, %v12861_v51  ;;  %v12876_v37 = vmul.f32 0.5, %v12864_v54 }
 0x437   : > { %v11872_v52 = vpop.eup %11871  ;;  %v1178_v42 = vmul.f32 0.5, %v11870_v32  ;;  %11891 = vtanh.f32 %v1125_v61  ;;  %v12879_v15 = vmul.f32 0.5, %v12867_v57  ;;  %v1062_v56 = vmul.f32 %v12748_v38, %v12593_v63 }
 0x438   : > { %v11874_v9 = vpop.eup %11873  ;;  %v1209_v7 = vadd.f32 0.5, %v1177_v34  ;;  %v1179_v62 = vmul.f32 0.5, %v11872_v52  ;;  %11893 = vtanh.f32 %v1126_v58  ;;  %v12885_v59 = vmul.f32 %v12748_v38, %v12600_v2 }
 0x439   : > { %v11876_v46 = vpop.eup %11875  ;;  %v1210_v11 = vadd.f32 0.5, %v1178_v42  ;;  %v1180_v19 = vmul.f32 0.5, %v11874_v9  ;;  %11895 = vtanh.f32 %v1127_v25  ;;  %v12888_v61 = vadd.f32 %v12753_v41, %v1062_v56 }
 0x43a   : > { %v11878_v60 = vpop.eup %11877  ;;  %v1241_v32 = vmul.f32 %v1209_v7, %v12772_v47  ;;  %v1211_v6 = vadd.f32 0.5, %v1179_v62  ;;  %v1181_v63 = vmul.f32 0.5, %v11876_v46  ;;  %11897 = vtanh.f32 %v1128_v28 }
 0x43b   : > { %v11880_v34 = vpop.eup %11879  ;;  %v1242_v58 = vmul.f32 %v1210_v11, %v12775_v13  ;;  %v1212_v52 = vadd.f32 0.5, %v1180_v19  ;;  %v1182_v3 = vmul.f32 0.5, %v11878_v60  ;;  %11899 = vtanh.f32 %v1129_v29 }
 0x43c   : > { %v11882_v2 = vpop.eup %11881  ;;  %v1309_v43 = vrot.slane %v1241_v32, 7  ;;  %v1243_v42 = vmul.f32 %v1211_v6, %v12778_v50  ;;  %v1213_v25 = vadd.f32 0.5, %v1181_v63  ;;  %v1183_v9 = vmul.f32 0.5, %v11880_v34 }
 0x43d   : > { %v11884_v56 = vpop.eup %11883  ;;  %v1310_v10 = vrot.slane %v1242_v58, 7  ;;  %v1244_v5 = vmul.f32 %v1212_v52, %v12781_v14  ;;  %v1214_v47 = vadd.f32 0.5, %v1182_v3  ;;  %v1184_v7 = vmul.f32 0.5, %v11882_v2 }
 0x43e   : > { %v11886_v62 = vpop.eup %11885  ;;  %v12895_v28 = vsel %vm1306_vm2, 0.0, %v1309_v43  ;;  %v1312_v13 = vrot.slane %v1243_v42, 7  ;;  %v1245_v46 = vmul.f32 %v1213_v25, %v12784_v16  ;;  %v1215_v29 = vadd.f32 0.5, %v1183_v9 }
 0x43f   : > { %v11888_v11 = vpop.eup %11887  ;;  %v12899_v19 = vsel %vm1306_vm2, %v1309_v43, %v1310_v10  ;;  %v1466_v6 = vrot.slane %v12895_v28, 1  ;;  %v12903_v50 = vsel %vm1306_vm2, %v1310_v10, 0.0  ;;  %v1313_v14 = vrot.slane %v1244_v5, 7 }
 0x440   : > { %16725 = vst [vmem:[#allocation14_spill] sm:$0xff] %v12903_v50  ;;  %v11890_v3 = vpop.eup %11889  ;;  %v1467_v60 = vrot.slane %v12899_v19, 1  ;;  %v1469_v32 = vrot.slane %v12903_v50, 1  ;;  %v12908_v63 = vsel %vm1306_vm2, 0.0, %v1312_v13  ;;  %v1246_v16 = vmul.f32 %v1214_v47, %v12787_v0 }
 0x441   : > { %v11892_v34 = vpop.eup %11891  ;;  %v12912_v43 = vsel %vm1306_vm2, %v1312_v13, %v1313_v14  ;;  %v1471_v58 = vrot.slane %v12908_v63, 1  ;;  %v12916_v10 = vsel %vm1306_vm2, %v1313_v14, 0.0  ;;  %v1315_v5 = vrot.slane %v1245_v46, 7 }
 0x442   : > { %16726 = vst [vmem:[#allocation15_spill] sm:$0xff] %v12916_v10  ;;  %v11894_v52 = vpop.eup %11893  ;;  %v12919_v2 = vsel %vm1460_vm3, %v1466_v6, %v1467_v60  ;;  %v12922_v42 = vsel %vm1460_vm3, %v1467_v60, %v1469_v32  ;;  %v1472_v25 = vrot.slane %v12912_v43, 1  ;;  %v1474_v0 = vrot.slane %v12916_v10, 1 }
 0x443   : > { %16727 = vst [vmem:[#allocation16_spill] sm:$0xff] %v12919_v2  ;;  %16728 = vst [vmem:[#allocation17_spill] sm:$0xff] %v12922_v42  ;;  %v12926_v9 = vpop.eup %11895  ;;  %9740 = vmatprep.mubr.msk.f32.mxu0 %vm525_vm1, %v12919_v2  ;;  %v1316_v47 = vrot.slane %v1246_v16, 7  ;;  %v12931_v13 = vsel %vm1306_vm2, 0.0, %v1315_v5  ;;  %v1216_v46 = vadd.f32 0.5, %v1184_v7  ;;  %v1247_v6 = vmul.f32 %v1215_v29, %v12790_v24 }
 0x444   : > { %v12934_v14 = vpop.eup %11897  ;;  %9741 = vmatmul.mubr.msk.f32.gmra.mrb[6].mxu0 %vm525_vm1, %v12922_v42  ;;  %v12939_v60 = vsel %vm1460_vm3, %v1471_v58, %v1472_v25  ;;  %v12942_v32 = vsel %vm1460_vm3, %v1472_v25, %v1474_v0  ;;  %v1476_v2 = vrot.slane %v12931_v13, 1  ;;  %v1185_v16 = vmul.f32 0.5, %v11884_v56 }
 0x445   : > { %16729 = vst [vmem:[#allocation18_spill] sm:$0xff] %v12939_v60  ;;  %16730 = vst [vmem:[#allocation19_spill] sm:$0xff] %v12942_v32  ;;  %v12945_v53 = vpop.eup %11899  ;;  %9743 = vmatprep.mubr.msk.f32.mxu0 %vm525_vm1, %v12939_v60  ;;  %v12950_v24 = vsel %vm1306_vm2, %v1315_v5, %v1316_v47  ;;  %v12953_v7 = vsel %vm1306_vm2, %v1316_v47, 0.0  ;;  %v1248_v29 = vmul.f32 %v1216_v46, %v12793_v1  ;;  %v1318_v58 = vrot.slane %v1247_v6, 7 }
 0x446   : > { %v1477_v25 = vrot.slane %v12950_v24, 1  ;;  %v1479_v0 = vrot.slane %v12953_v7, 1  ;;  %v1186_v42 = vmul.f32 0.5, %v11886_v62  ;;  %v1217_v56 = vadd.f32 0.5, %v1185_v16 }
 0x447   : > { %v1319_v49 = vrot.slane %v1248_v29, 7  ;;  %v12959_v10 = vsel %vm1306_vm2, 0.0, %v1318_v58  ;;  %v1187_v60 = vmul.f32 0.5, %v11888_v11  ;;  %v1188_v50 = vmul.f32 0.5, %v11890_v3 }
 0x448   : > { %9744 = vmatmul.mubr.msk.f32.gmra.mrb[8].mxu0 %vm525_vm1, %v12942_v32  ;;  %v12964_v5 = vsel %vm1460_vm3, %v1476_v2, %v1477_v25  ;;  %v12967_v1 = vsel %vm1460_vm3, %v1477_v25, %v1479_v0  ;;  %v1481_v47 = vrot.slane %v12959_v10, 1  ;;  %v1218_v46 = vadd.f32 0.5, %v1186_v42 }
 0x449   : > { %16731 = vst [vmem:[#allocation20_spill] sm:$0xff] %v12964_v5  ;;  %16732 = vst [vmem:[#allocation21_spill] sm:$0xff] %v12967_v1  ;;  %9746 = vmatprep.mubr.msk.f32.mxu0 %vm525_vm1, %v12964_v5  ;;  %v12973_v62 = vsel %vm1306_vm2, %v1318_v58, %v1319_v49  ;;  %v12976_v11 = vsel %vm1306_vm2, %v1319_v49, 0.0  ;;  %v1249_v3 = vmul.f32 %v1217_v56, %v12816_v55  ;;  %v1219_v6 = vadd.f32 0.5, %v1187_v60 }
 0x44a   : > { %v1482_v2 = vrot.slane %v12973_v62, 1  ;;  %v1484_v16 = vrot.slane %v12976_v11, 1  ;;  %v1250_v29 = vmul.f32 %v1218_v46, %v12819_v27  ;;  %v1220_v25 = vadd.f32 0.5, %v1188_v50 }
 0x44b   : > { %v1321_v42 = vrot.slane %v1249_v3, 7  ;;  %v1251_v0 = vmul.f32 %v1219_v6, %v12822_v30  ;;  %v1189_v5 = vmul.f32 0.5, %v11892_v34  ;;  %v1190_v32 = vmul.f32 0.5, %v11894_v52 }
 0x44c   : > { %9747 = vmatmul.mubr.msk.f32.gmra.mrb[10].mxu0 %vm525_vm1, %v12967_v1  ;;  %v12986_v49 = vsel %vm1460_vm3, %v1481_v47, %v1482_v2  ;;  %v12989_v55 = vsel %vm1460_vm3, %v1482_v2, %v1484_v16  ;;  %v1322_v60 = vrot.slane %v1250_v29, 7  ;;  %v1252_v58 = vmul.f32 %v1220_v25, %v12825_v33 }
 0x44d   : > { %16733 = vst [vmem:[#allocation22_spill] sm:$0xff] %v12986_v49  ;;  %16734 = vst [vmem:[#allocation23_spill] sm:$0xff] %v12989_v55  ;;  %9749 = vmatprep.mubr.msk.f32.mxu0 %vm525_vm1, %v12986_v49  ;;  %v12995_v27 = vsel %vm1306_vm2, 0.0, %v1321_v42  ;;  %v1324_v30 = vrot.slane %v1251_v0, 7  ;;  %v1221_v50 = vadd.f32 0.5, %v1189_v5  ;;  %v1222_v34 = vadd.f32 0.5, %v1190_v32 }
 0x44e   : > { %v12998_v52 = vsel %vm1306_vm2, %v1321_v42, %v1322_v60  ;;  %v1486_v56 = vrot.slane %v12995_v27, 1  ;;  %v13002_v47 = vsel %vm1306_vm2, %v1322_v60, 0.0  ;;  %v1325_v46 = vrot.slane %v1252_v58, 7 }
 0x44f   : > { %v1487_v33 = vrot.slane %v12998_v52, 1  ;;  %v1489_v3 = vrot.slane %v13002_v47, 1  ;;  %v13007_v6 = vsel %vm1306_vm2, 0.0, %v1324_v30  ;;  %v1253_v2 = vmul.f32 %v1221_v50, %v12828_v36 }
 0x450   : > { %9750 = vmatmul.mubr.msk.f32.gmra.mrb[12].mxu0 %vm525_vm1, %v12989_v55  ;;  %v13013_v32 = vsel %vm1306_vm2, %v1324_v30, %v1325_v46  ;;  %v1491_v5 = vrot.slane %v13007_v6, 1  ;;  %v13017_v16 = vsel %vm1306_vm2, %v1325_v46, 0.0  ;;  %v1254_v29 = vmul.f32 %v1222_v34, %v12831_v39 }
 0x451   : > { %v13021_v25 = vsel %vm1460_vm3, %v1486_v56, %v1487_v33  ;;  %v13024_v42 = vsel %vm1460_vm3, %v1487_v33, %v1489_v3  ;;  %v1492_v36 = vrot.slane %v13013_v32, 1  ;;  %v1494_v0 = vrot.slane %v13017_v16, 1 }
 0x452   : > { %16735 = vst [vmem:[#allocation24_spill] sm:$0xff] %v13021_v25  ;;  %16736 = vst [vmem:[#allocation25_spill] sm:$0xff] %v13024_v42  ;;  %9752 = vmatprep.mubr.msk.f32.mxu0 %vm525_vm1, %v13021_v25  ;;  %v1327_v60 = vrot.slane %v1253_v2, 7  ;;  %v1328_v58 = vrot.slane %v1254_v29, 7  ;;  %v1191_v30 = vmul.f32 0.5, %v12926_v9  ;;  %v1192_v50 = vmul.f32 0.5, %v12934_v14 }
 0x453   : > { %v13033_v39 = vsel %vm1460_vm3, %v1491_v5, %v1492_v36  ;;  %v13036_v34 = vsel %vm1460_vm3, %v1492_v36, %v1494_v0  ;;  %11901 = vtanh.f32 %v12873_v4  ;;  %v1193_v56 = vmul.f32 0.5, %v12945_v53 }
 0x454   : > { %16737 = vst [vmem:[#allocation26_spill] sm:$0xff] %v13033_v39  ;;  %16738 = vst [vmem:[#allocation27_spill] sm:$0xff] %v13036_v34  ;;  %9753 = vmatmul.mubr.msk.f32.gmra.mrb[14].mxu0 %vm525_vm1, %v13024_v42  ;;  %v13043_v46 = vsel %vm1306_vm2, %v1327_v60, %v1328_v58  ;;  %v13046_v9 = vsel %vm1306_vm2, 0.0, %v1327_v60  ;;  %v13049_v14 = vsel %vm1306_vm2, %v1328_v58, 0.0  ;;  %v1223_v33 = vadd.f32 0.5, %v1191_v30 }
 0x455   : > { %9755 = vmatprep.mubr.msk.f32.mxu0 %vm525_vm1, %v13033_v39  ;;  %v1496_v4 = vrot.slane %v13046_v9, 1  ;;  %v1497_v53 = vrot.slane %v13043_v46, 1  ;;  %v1499_v3 = vrot.slane %v13049_v14, 1  ;;  %v1224_v2 = vadd.f32 0.5, %v1192_v50 }
 0x456   : > { %v1255_v5 = vmul.f32 %v1223_v33, %v12852_v20  ;;  %v1225_v29 = vadd.f32 0.5, %v1193_v56  ;;  %11903 = vtanh.f32 %v12876_v37  ;;  %v13060_v36 = vadd.f32 %v12753_v41, %v12885_v59 }
 0x457   : > { %v13063_v0 = vsel %vm1460_vm3, %v1496_v4, %v1497_v53  ;;  %v13066_v60 = vsel %vm1460_vm3, %v1497_v53, %v1499_v3  ;;  %v1256_v58 = vmul.f32 %v1224_v2, %v12855_v45  ;;  %11905 = vtanh.f32 %v12879_v15 }
 0x458   : > { %16739 = vst [vmem:[#allocation28_spill] sm:$0xff] %v13063_v0  ;;  %16740 = vst [vmem:[#allocation29_spill] sm:$0xff] %v13066_v60  ;;  %9756 = vmatmul.mubr.msk.f32.gmra.mrb[16].mxu0 %vm525_vm1, %v13036_v34  ;;  %v1330_v20 = vrot.slane %v1255_v5, 7  ;;  %v13073_v37 = vmul.f32 %v1225_v29, %v12858_v48  ;;  %v1133_v59 = vmul.f32 0.5, %v12888_v61  ;;  %v1134_v30 = vmul.f32 0.5, %v13060_v36 }
 0x459   : > { %9758 = vmatprep.mubr.msk.f32.mxu0 %vm525_vm1, %v13063_v0  ;;  %v1331_v50 = vrot.slane %v1256_v58, 7  ;;  %v1064_v45 = vmul.f32 %v12748_v38, %v12607_v8  ;;  %v1065_v15 = vmul.f32 %v12748_v38, %v12614_v18  ;;  %v1066_v56 = vmul.f32 %v12748_v38, %v12621_v22 }
 0x45a   : > { %v13086_v48 = vsel %vm1306_vm2, 0.0, %v1330_v20  ;;  %v1333_v33 = vrot.slane %v13073_v37, 7  ;;  %11907 = vtanh.f32 %v1133_v59  ;;  %v1067_v4 = vmul.f32 %v12748_v38, %v12628_v26 }
 0x45b   : > { %v13092_v53 = vsel %vm1306_vm2, %v1330_v20, %v1331_v50  ;;  %v1501_v8 = vrot.slane %v13086_v48, 1  ;;  %v13096_v3 = vsel %vm1306_vm2, %v1331_v50, 0.0  ;;  %11909 = vtanh.f32 %v1134_v30 }
 0x45c   : > { %9759 = vmatmul.mubr.msk.f32.gmra.mrb[18].mxu0 %vm525_vm1, %v13066_v60  ;;  %v1502_v18 = vrot.slane %v13092_v53, 1  ;;  %v1504_v22 = vrot.slane %v13096_v3, 1  ;;  %v13103_v2 = vadd.f32 %v12753_v41, %v1064_v45  ;;  %v13106_v5 = vsel %vm1306_vm2, 0.0, %v1333_v33 }
 0x45d   : > { %v11902_v26 = vpop.eup %11901  ;;  %v13109_v29 = vadd.f32 %v12753_v41, %v1065_v15  ;;  %v13112_v58 = vadd.f32 %v12753_v41, %v1066_v56  ;;  %v13115_v20 = vadd.f32 %v12753_v41, %v1067_v4  ;;  %v1068_v4 = vmul.f32 %v12748_v38, %v12635_v31 }
 0x45e   : > { %v13118_v37 = vsel %vm1460_vm3, %v1501_v8, %v1502_v18  ;;  %v13121_v59 = vsel %vm1460_vm3, %v1502_v18, %v1504_v22  ;;  %v1194_v30 = vmul.f32 0.5, %v11902_v26  ;;  %v1135_v50 = vmul.f32 0.5, %v13103_v2 }
 0x45f   : > { %16741 = vst [vmem:[#allocation30_spill] sm:$0xff] %v13118_v37  ;;  %16742 = vst [vmem:[#allocation31_spill] sm:$0xff] %v13121_v59  ;;  %9761 = vmatprep.mubr.msk.f32.mxu0 %vm525_vm1, %v13118_v37  ;;  %v1136_v45 = vmul.f32 0.5, %v13109_v29  ;;  %v1137_v15 = vmul.f32 0.5, %v13112_v58  ;;  %v1138_v56 = vmul.f32 0.5, %v13115_v20  ;;  %v1069_v22 = vmul.f32 %v12748_v38, %v12642_v35 }
 0x460   : > { %v11904_v8 = vpop.eup %11903  ;;  %9762 = vmatmul.mubr.msk.f32.gmra.mrb[20].mxu0 %vm525_vm1, %v13121_v59  ;;  %v1226_v18 = vadd.f32 0.5, %v1194_v30  ;;  %11911 = vtanh.f32 %v1135_v50  ;;  %v1070_v26 = vmul.f32 %v12748_v38, %v12649_v40  ;;  %v13138_v0 = vadd.f32 %v12753_v41, %v1068_v4 }
 0x461   : > { %v11906_v37 = vpop.eup %11905  ;;  %v1195_v60 = vmul.f32 0.5, %v11904_v8  ;;  %11913 = vtanh.f32 %v1136_v45  ;;  %v1071_v31 = vmul.f32 %v12748_v38, %v12656_v44  ;;  %v13144_v30 = vadd.f32 %v12753_v41, %v1069_v22 }
 0x462   : > { %v1258_v34 = vmul.f32 %v1226_v18, %v12861_v51  ;;  %v1196_v59 = vmul.f32 0.5, %v11906_v37  ;;  %11915 = vtanh.f32 %v1137_v15  ;;  %v1506_v35 = vrot.slane %v13106_v5, 1 }
 0x463   : > { %v1227_v50 = vadd.f32 0.5, %v1195_v60  ;;  %11917 = vtanh.f32 %v1138_v56  ;;  %v1139_v40 = vmul.f32 0.5, %v13138_v0  ;;  %v1140_v39 = vmul.f32 0.5, %v13144_v30 }
 0x464   : > { %v11908_v45 = vpop.eup %11907  ;;  %v1334_v8 = vrot.slane %v1258_v34, 7  ;;  %v1228_v4 = vadd.f32 0.5, %v1196_v59  ;;  %v13150_v44 = vadd.f32 %v12753_v41, %v1070_v26  ;;  %v13154_v18 = vadd.f32 %v12753_v41, %v1071_v31 }
 0x465   : > { %v11910_v51 = vpop.eup %11909  ;;  %v1259_v37 = vmul.f32 %v1227_v50, %v12864_v54  ;;  %v1197_v15 = vmul.f32 0.5, %v11908_v45  ;;  %11919 = vtanh.f32 %v1139_v40 }
 0x466   : > { %v13157_v60 = vsel %vm1306_vm2, %v1333_v33, %v1334_v8  ;;  %v13160_v56 = vsel %vm1306_vm2, %v1334_v8, 0.0  ;;  %v1260_v34 = vmul.f32 %v1228_v4, %v12867_v57  ;;  %v1198_v59 = vmul.f32 0.5, %v11910_v51 }
 0x467   : > { %v1507_v22 = vrot.slane %v13157_v60, 1  ;;  %v1509_v26 = vrot.slane %v13160_v56, 1  ;;  %v1336_v42 = vrot.slane %v1259_v37, 7  ;;  %v1229_v54 = vadd.f32 0.5, %v1197_v15 }
 0x468   : > { %v1337_v50 = vrot.slane %v1260_v34, 7  ;;  %v1230_v40 = vadd.f32 0.5, %v1198_v59  ;;  %11921 = vtanh.f32 %v1140_v39  ;;  %v1141_v41 = vmul.f32 0.5, %v13150_v44 }
 0x469   : > { %v13167_v33 = vsel %vm1460_vm3, %v1506_v35, %v1507_v22  ;;  %v13170_v31 = vsel %vm1460_vm3, %v1507_v22, %v1509_v26  ;;  %v13173_v57 = vsel %vm1306_vm2, 0.0, %v1336_v42  ;;  %v1261_v45 = vmul.f32 %v1229_v54, %v12888_v61 }
 0x46a   : > { %16743 = vst [vmem:[#allocation32_spill] sm:$0xff] %v13167_v33  ;;  %16744 = vst [vmem:[#allocation33_spill] sm:$0xff] %v13170_v31  ;;  %v11912_v8 = vpop.eup %11911  ;;  %9764 = vmatprep.mubr.msk.f32.mxu0 %vm525_vm1, %v13167_v33  ;;  %v13179_v4 = vsel %vm1306_vm2, %v1336_v42, %v1337_v50  ;;  %v1511_v39 = vrot.slane %v13173_v57, 1  ;;  %v13183_v35 = vsel %vm1306_vm2, %v1337_v50, 0.0  ;;  %v1262_v51 = vmul.f32 %v1230_v40, %v13060_v36 }
 0x46b   : > { %v11914_v37 = vpop.eup %11913  ;;  %9765 = vmatmul.mubr.msk.f32.gmra.mrb[22].mxu0 %vm525_vm1, %v13170_v31  ;;  %v1512_v61 = vrot.slane %v13179_v4, 1  ;;  %v1514_v15 = vrot.slane %v13183_v35, 1  ;;  %v1339_v34 = vrot.slane %v1261_v45, 7  ;;  %v1199_v59 = vmul.f32 0.5, %v11912_v8 }
 0x46c   : > { %v11916_v22 = vpop.eup %11915  ;;  %v1340_v42 = vrot.slane %v1262_v51, 7  ;;  %v1200_v26 = vmul.f32 0.5, %v11914_v37  ;;  %v1142_v54 = vmul.f32 0.5, %v13154_v18  ;;  %11923 = vtanh.f32 %v1141_v41 }
 0x46d   : > { %v11918_v50 = vpop.eup %11917  ;;  %v13192_v33 = vsel %vm1460_vm3, %v1511_v39, %v1512_v61  ;;  %v13195_v36 = vsel %vm1460_vm3, %v1512_v61, %v1514_v15  ;;  %v13198_v40 = vsel %vm1306_vm2, 0.0, %v1339_v34  ;;  %v1231_v31 = vadd.f32 0.5, %v1199_v59 }
 0x46e   : > { %16745 = vst [vmem:[#allocation34_spill] sm:$0xff] %v13192_v33  ;;  %16746 = vst [vmem:[#allocation35_spill] sm:$0xff] %v13195_v36  ;;  %9767 = vmatprep.mubr.msk.f32.mxu0 %vm525_vm1, %v13192_v33  ;;  %v13203_v45 = vsel %vm1306_vm2, %v1339_v34, %v1340_v42  ;;  %v1516_v8 = vrot.slane %v13198_v40, 1  ;;  %v13207_v41 = vsel %vm1306_vm2, %v1340_v42, 0.0  ;;  %v1232_v39 = vadd.f32 0.5, %v1200_v26 }
 0x46f   : > { %v11920_v51 = vpop.eup %11919  ;;  %9768 = vmatmul.mubr.msk.f32.gmra.mrb[24].mxu0 %vm525_vm1, %v13195_v36  ;;  %v1517_v37 = vrot.slane %v13203_v45, 1  ;;  %v1519_v61 = vrot.slane %v13207_v41, 1  ;;  %v1263_v15 = vmul.f32 %v1231_v31, %v13103_v2  ;;  %v1201_v59 = vmul.f32 0.5, %v11916_v22 }
 0x470   : > { %v1264_v34 = vmul.f32 %v1232_v39, %v13109_v29  ;;  %v1202_v33 = vmul.f32 0.5, %v11918_v50  ;;  %v1203_v25 = vmul.f32 0.5, %v11920_v51  ;;  %11925 = vtanh.f32 %v1142_v54 }
 0x471   : > { %v13216_v42 = vsel %vm1460_vm3, %v1516_v8, %v1517_v37  ;;  %v1342_v26 = vrot.slane %v1263_v15, 7  ;;  %v1233_v55 = vadd.f32 0.5, %v1201_v59  ;;  %v13221_v36 = vsel %vm1460_vm3, %v1517_v37, %v1519_v61 }
 0x472   : > { %16747 = vst [vmem:[#allocation36_spill] sm:$0xff] %v13216_v42  ;;  %v11922_v49 = vpop.eup %11921  ;;  %9770 = vmatprep.mubr.msk.f32.mxu0 %vm525_vm1, %v13216_v42  ;;  %16748 = vst [vmem:[#allocation37_spill] sm:$0xff] %v13221_v36  ;;  %v1343_v1 = vrot.slane %v1264_v34, 7  ;;  %v1234_v2 = vadd.f32 0.5, %v1202_v33  ;;  %v1235_v31 = vadd.f32 0.5, %v1203_v25 }
 0x473   : > { %9771 = vmatmul.mubr.msk.f32.gmra.mrb[26].mxu0 %vm525_vm1, %v13221_v36  ;;  %v13226_v29 = vsel %vm1306_vm2, 0.0, %v1342_v26  ;;  %v1265_v22 = vmul.f32 %v1233_v55, %v13112_v58  ;;  %v1204_v54 = vmul.f32 0.5, %v11922_v49 }
 0x474   : > { %v13230_v50 = vsel %vm1306_vm2, %v1342_v26, %v1343_v1  ;;  %v1521_v8 = vrot.slane %v13226_v29, 1  ;;  %v13234_v39 = vsel %vm1306_vm2, %v1343_v1, 0.0  ;;  %v1266_v33 = vmul.f32 %v1234_v2, %v13115_v20 }
 0x475   : > { %v1522_v25 = vrot.slane %v13230_v50, 1  ;;  %v1524_v51 = vrot.slane %v13234_v39, 1  ;;  %v1345_v37 = vrot.slane %v1265_v22, 7  ;;  %v1236_v61 = vadd.f32 0.5, %v1204_v54 }
 0x476   : > { %v11924_v15 = vpop.eup %11923  ;;  %v1346_v59 = vrot.slane %v1266_v33, 7  ;;  %v1267_v49 = vmul.f32 %v1235_v31, %v13138_v0 }
 0x477   : > { %v13241_v55 = vsel %vm1460_vm3, %v1521_v8, %v1522_v25  ;;  %v13244_v58 = vsel %vm1460_vm3, %v1522_v25, %v1524_v51  ;;  %v13247_v1 = vsel %vm1306_vm2, 0.0, %v1345_v37  ;;  %v1268_v20 = vmul.f32 %v1236_v61, %v13144_v30 }
 0x478   : > { %16749 = vst [vmem:[#allocation38_spill] sm:$0xff] %v13241_v55  ;;  %16750 = vst [vmem:[#allocation39_spill] sm:$0xff] %v13244_v58  ;;  %9773 = vmatprep.mubr.msk.f32.mxu0 %vm525_vm1, %v13241_v55  ;;  %v13253_v34 = vsel %vm1306_vm2, %v1345_v37, %v1346_v59  ;;  %v1526_v26 = vrot.slane %v13247_v1, 1  ;;  %v13257_v0 = vsel %vm1306_vm2, %v1346_v59, 0.0  ;;  %v1348_v2 = vrot.slane %v1267_v49, 7 }
 0x479   : > { %9774 = vmatmul.mubr.msk.f32.gmra.mrb[28].mxu0 %vm525_vm1, %v13244_v58  ;;  %v1527_v31 = vrot.slane %v13253_v34, 1  ;;  %v1529_v22 = vrot.slane %v13257_v0, 1  ;;  %v1349_v30 = vrot.slane %v1268_v20, 7  ;;  %v1205_v54 = vmul.f32 0.5, %v11924_v15 }
 0x47a   : > { %v11926_v8 = vpop.eup %11925  ;;  %v13264_v33 = vsel %vm1306_vm2, 0.0, %v1348_v2 }
 0x47b   : > { %v13267_v25 = vsel %vm1460_vm3, %v1526_v26, %v1527_v31  ;;  %v13270_v51 = vsel %vm1460_vm3, %v1527_v31, %v1529_v22  ;;  %v13273_v37 = vsel %vm1306_vm2, %v1348_v2, %v1349_v30  ;;  %v1531_v61 = vrot.slane %v13264_v33, 1 }
 0x47c   : > { %16751 = vst [vmem:[#allocation40_spill] sm:$0xff] %v13267_v25  ;;  %16752 = vst [vmem:[#allocation41_spill] sm:$0xff] %v13270_v51  ;;  %9776 = vmatprep.mubr.msk.f32.mxu0 %vm525_vm1, %v13267_v25  ;;  %v1532_v15 = vrot.slane %v13273_v37, 1  ;;  %v13280_v59 = vsel %vm1306_vm2, %v1349_v30, 0.0  ;;  %v1206_v49 = vmul.f32 0.5, %v11926_v8  ;;  %v1237_v20 = vadd.f32 0.5, %v1205_v54 }
 0x47d   : > { %16753 = vst [vmem:[#allocation42_spill] sm:$0xff] %v13273_v37  ;;  %9777 = vmatmul.mubr.msk.f32.gmra.mrb[30].mxu0 %vm525_vm1, %v13270_v51  ;;  %v1534_v26 = vrot.slane %v13280_v59, 1 }
 0x47e   : > { %v13286_v2 = vsel %vm1460_vm3, %v1531_v61, %v1532_v15  ;;  %v1238_v31 = vadd.f32 0.5, %v1206_v49  ;;  %v1269_v22 = vmul.f32 %v1237_v20, %v13150_v44 }
 0x47f   : > { %16754 = vst [vmem:[#allocation43_spill] sm:$0xff] %v13286_v2  ;;  %9779 = vmatprep.mubr.msk.f32.mxu0 %vm525_vm1, %v13286_v2  ;;  %v13292_v25 = vsel %vm1460_vm3, %v1532_v15, %v1534_v26 }
 0x480   : > { %16755 = vst [vmem:[#allocation44_spill] sm:$0xff] %v13292_v25  ;;  %v1270_v30 = vmul.f32 %v1238_v31, %v13154_v18  ;;  %v1351_v54 = vrot.slane %v1269_v22, 7  ;;  %v2206_v31 = vld [vmem:[%s16498_s5 + $0x50] sm:$0xff]  ;;  %v2207_v22 = vld [vmem:[%s16498_s5 + $0x58] sm:$0xff] }
 0x481   : > { %9780 = vmatmul.mubr.msk.f32.gmra.mrb[32].mxu0 %vm525_vm1, %v13292_v25 }
 0x482   : > { %v1352_v8 = vrot.slane %v1270_v30, 7  ;;  %v13298_v51 = vsel %vm1306_vm2, 0.0, %v1351_v54  ;;  %v10969_v30 = vpack.c.bf16 %v2207_v22, %v2206_v31  ;;  %v2531_v22 = vld [vmem:[%s16498_s5 + $0x70] sm:$0xff] }
 0x483   : > { %16756 = vst [vmem:[#allocation45_spill] sm:$0xff] %v13298_v51  ;;  %v1536_v61 = vrot.slane %v13298_v51, 1 }
 0x484   : > { %v13302_v44 = vsel %vm1306_vm2, %v1351_v54, %v1352_v8  ;;  %v13305_v49 = vsel %vm1306_vm2, %v1352_v8, 0.0  ;;  %v2529_v54 = vld [vmem:[%s16498_s5 + $0x60] sm:$0xff]  ;;  %v2530_v8 = vld [vmem:[%s16498_s5 + $0x68] sm:$0xff] }
 0x485   : > { %16757 = vst [vmem:[#allocation46_spill] sm:$0xff] %v13302_v44  ;;  %v1537_v15 = vrot.slane %v13302_v44, 1  ;;  %v1539_v18 = vrot.slane %v13305_v49, 1 }
 0x487   : > { %v13310_v20 = vsel %vm1460_vm3, %v1536_v61, %v1537_v15  ;;  %v13315_v26 = vsel %vm1460_vm3, %v1537_v15, %v1539_v18  ;;  %v10973_v61 = vpack.c.bf16 %v2530_v8, %v2529_v54  ;;  %v2125_v15 = vrot.slane %v12697_v12, 2 }
 0x488   : > { %16758 = vst [vmem:[#allocation47_spill] sm:$0xff] %v13310_v20  ;;  %9782 = vmatprep.mubr.msk.f32.mxu0 %vm525_vm1, %v13310_v20  ;;  %16759 = vst [vmem:[#allocation48_spill] sm:$0xff] %v13315_v26  ;;  %v2127_v18 = vrot.slane %v12716_v21, 2  ;;  %v2129_v21 = vrot.slane %v12895_v28, 2  ;;  %v2130_v54 = vrot.slane %v12899_v19, 2  ;;  %v2802_v20 = vld [vmem:[%s16498_s5 + $0x88] sm:$0xff] }
 0x489   : > { %9783 = vmatmul.mubr.msk.f32.gmra.mrb[34].mxu0 %vm525_vm1, %v13315_v26  ;;  %v2801_v26 = vld [vmem:[%s16498_s5 + $0x80] sm:$0xff] }
 0x48a   : > { %9793 = vmatprep.mubr.msk.f32.mxu0 %vm525_vm1, %v12704_v17  ;;  %v13413_v8 = vsel %vm2123_vm4, %v2125_v15, %v2127_v18  ;;  %v13425_v25 = vsel %vm2123_vm4, %v2129_v21, %v2130_v54  ;;  %v2135_v18 = vrot.slane %v12912_v43, 2 }
 0x48b   : > { %16761 = vst [vmem:[#allocation50_spill] sm:$0xff] %v13413_v8 }
 0x48d   : > { %9794 = vmatmul.mubr.msk.f32.vlgmr.msra.gmra.mrb[4].mxu0 %vm525_vm1, %v12697_v12  ;;  %v16762_v12 = vld [vmem:[#allocation14_spill] sm:$0xff] }
 0x48e   : > { %10968 = vmatpush3.bf16.msra.mxu0 %v12741_v23  ;;  %9796 = vmatprep.mubr.msk.f32.mxu0 %vm525_vm1, %v12895_v28  ;;  %v2124_v23 = vrot.slane %v12704_v17, 2  ;;  %v2132_v17 = vrot.slane %v16762_v12, 2  ;;  %v13431_v12 = vpack.c.bf16 %v2802_v20, %v2801_v26  ;;  %v2142_v20 = vrot.slane %v12953_v7, 2 }
 0x48f   : > { %10970 = vmatprep.subr.bf16.mxu0 %v10969_v30 }
 0x490   : > { %v13398_v31 = vsel %vm2123_vm4, %v2124_v23, %v2125_v15  ;;  %v2134_v15 = vrot.slane %v12908_v63, 2 }
 0x491   : > { %9797 = vmatmul.mubr.msk.f32.gmra.mrb[6].mxu0 %vm525_vm1, %v12899_v19  ;;  %16760 = vst [vmem:[#allocation49_spill] sm:$0xff] %v13398_v31 }
 0x492   : > { %9799 = vmatprep.mubr.msk.f32.mxu0 %vm525_vm1, %v12908_v63  ;;  %10972 = vmatpush3.bf16.msra.mxu0 %v10969_v30  ;;  %v2532_v30 = vld [vmem:[%s16498_s5 + $0x78] sm:$0xff]  ;;  %v13440_v21 = vsel %vm2123_vm4, %v2134_v15, %v2135_v18  ;;  %v2145_v15 = vrot.slane %v12973_v62, 2 }
 0x493   : > { %10974 = vmatprep.subr.bf16.mxu0 %v10973_v61  ;;  %v10977_v23 = vpack.c.bf16 %v2532_v30, %v2531_v22  ;;  %v13434_v22 = vsel %vm2123_vm4, %v2130_v54, %v2132_v17  ;;  %v16763_v30 = vld [vmem:[#allocation15_spill] sm:$0xff]  ;;  %v2144_v54 = vrot.slane %v12959_v10, 2 }
 0x495   : > { %9800 = vmatmul.mubr.msk.f32.gmra.mrb[8].mxu0 %vm525_vm1, %v12912_v43  ;;  %v13467_v7 = vsel %vm2123_vm4, %v2144_v54, %v2145_v15  ;;  %v2155_v54 = vrot.slane %v13013_v32, 2 }
 0x496   : > { %9802 = vmatprep.mubr.msk.f32.mxu0 %vm525_vm1, %v12931_v13  ;;  %16764 = vst [vmem:[#allocation14_spill] sm:$0xff] %v13467_v7 }
 0x499   : > { %9803 = vmatmul.mubr.msk.f32.gmra.mrb[10].mxu0 %vm525_vm1, %v12950_v24 }
 0x49a   : > { %9805 = vmatprep.mubr.msk.f32.mxu0 %vm525_vm1, %v12959_v10 }
 0x49d   : > { %9806 = vmatmul.mubr.msk.f32.gmra.mrb[12].mxu0 %vm525_vm1, %v12973_v62 }
 0x49e   : > { %9808 = vmatprep.mubr.msk.f32.mxu0 %vm525_vm1, %v12995_v27 }
 0x4a1   : > { %9809 = vmatmul.mubr.msk.f32.gmra.mrb[14].mxu0 %vm525_vm1, %v12998_v52 }
 0x4a2   : > { %9811 = vmatprep.mubr.msk.f32.mxu0 %vm525_vm1, %v13007_v6 }
 0x4a5   : > { %9812 = vmatmul.mubr.msk.f32.gmra.mrb[16].mxu0 %vm525_vm1, %v13013_v32 }
 0x4a6   : > { %9814 = vmatprep.mubr.msk.f32.mxu0 %vm525_vm1, %v13046_v9 }
 0x4a9   : > { %9815 = vmatmul.mubr.msk.f32.gmra.mrb[18].mxu0 %vm525_vm1, %v13043_v46 }
 0x4aa   : > { %9817 = vmatprep.mubr.msk.f32.mxu0 %vm525_vm1, %v13086_v48 }
 0x4ad   : > { %9818 = vmatmul.mubr.msk.f32.gmra.mrb[20].mxu0 %vm525_vm1, %v13092_v53 }
 0x4ae   : > { %9820 = vmatprep.mubr.msk.f32.mxu0 %vm525_vm1, %v13106_v5 }
 0x4b1   : > { %9821 = vmatmul.mubr.msk.f32.gmra.mrb[22].mxu0 %vm525_vm1, %v13157_v60 }
 0x4b2   : > { %9823 = vmatprep.mubr.msk.f32.mxu0 %vm525_vm1, %v13173_v57 }
 0x4b5   : > { %9824 = vmatmul.mubr.msk.f32.gmra.mrb[24].mxu0 %vm525_vm1, %v13179_v4 }
 0x4b6   : > { %9826 = vmatprep.mubr.msk.f32.mxu0 %vm525_vm1, %v13198_v40 }
 0x4b9   : > { %9827 = vmatmul.mubr.msk.f32.gmra.mrb[26].mxu0 %vm525_vm1, %v13203_v45 }
 0x4ba   : > { %9829 = vmatprep.mubr.msk.f32.mxu0 %vm525_vm1, %v13226_v29 }
 0x4bd   : > { %9830 = vmatmul.mubr.msk.f32.gmra.mrb[28].mxu0 %vm525_vm1, %v13230_v50 }
 0x4be   : > { %9832 = vmatprep.mubr.msk.f32.mxu0 %vm525_vm1, %v13247_v1 }
 0x4c1   : > { %9833 = vmatmul.mubr.msk.f32.gmra.mrb[30].mxu0 %vm525_vm1, %v13253_v34 }
 0x4c2   : > { %9835 = vmatprep.mubr.msk.f32.mxu0 %vm525_vm1, %v13264_v33 }
 0x4c5   : > { %9836 = vmatmul.mubr.msk.f32.gmra.mrb[32].mxu0 %vm525_vm1, %v13273_v37 }
 0x4c6   : > { %9838 = vmatprep.mubr.msk.f32.mxu0 %vm525_vm1, %v13298_v51 }
 0x4c9   : > { %9839 = vmatmul.mubr.msk.f32.gmra.mrb[34].mxu0 %vm525_vm1, %v13302_v44 }
 0x4ca   : > { %9849 = vmatprep.mubr.msk.f32.mxu0 %vm525_vm1, %v13398_v31  ;;  %v2137_v31 = vrot.slane %v16763_v30, 2 }
 0x4cc   : > { %v13448_v17 = vsel %vm2123_vm4, %v2135_v18, %v2137_v31  ;;  %v2147_v31 = vrot.slane %v12976_v11, 2  ;;  %v2150_v18 = vrot.slane %v12998_v52, 2 }
 0x4cd   : > { %9850 = vmatmul.mubr.msk.f32.vlgmr.msra.gmra.mrb[4].mxu0 %vm525_vm1, %v13413_v8  ;;  %v2139_v8 = vrot.slane %v12931_v13, 2 }
 0x4ce   : > { %10976 = vmatpush3.bf16.msra.mxu0 %v10973_v61  ;;  %9852 = vmatprep.mubr.msk.f32.mxu0 %vm525_vm1, %v13425_v25  ;;  %v2140_v61 = vrot.slane %v12950_v24, 2  ;;  %v13474_v30 = vsel %vm2123_vm4, %v2145_v15, %v2147_v31  ;;  %v2157_v15 = vrot.slane %v13017_v16, 2  ;;  %v2159_v31 = vrot.slane %v13046_v9, 2 }
 0x4cf   : > { %10978 = vmatprep.subr.bf16.mxu0 %v10977_v23 }
 0x4d0   : > { %v13454_v26 = vsel %vm2123_vm4, %v2139_v8, %v2140_v61  ;;  %v2149_v8 = vrot.slane %v12995_v27, 2 }
 0x4d1   : > { %9853 = vmatmul.mubr.msk.f32.gmra.mrb[6].mxu0 %vm525_vm1, %v13434_v22 }
 0x4d2   : > { %9855 = vmatprep.mubr.msk.f32.mxu0 %vm525_vm1, %v13440_v21  ;;  %10980 = vmatpush3.bf16.msra.mxu0 %v10977_v23  ;;  %v13461_v23 = vsel %vm2123_vm4, %v2140_v61, %v2142_v20  ;;  %v2152_v61 = vrot.slane %v13002_v47, 2  ;;  %v13480_v11 = vsel %vm2123_vm4, %v2149_v8, %v2150_v18  ;;  %v2154_v20 = vrot.slane %v13007_v6, 2 }
 0x4d3   : > { %10982 = vmatprep.subr.bf16.mxu0 %v13431_v12  ;;  %16765 = vst [vmem:[#allocation15_spill] sm:$0xff] %v13480_v11  ;;  %v2160_v8 = vrot.slane %v13043_v46, 2 }
 0x4d4   : > { %v13493_v47 = vsel %vm2123_vm4, %v2154_v20, %v2155_v54  ;;  %v2165_v20 = vrot.slane %v13092_v53, 2 }
 0x4d5   : > { %9856 = vmatmul.mubr.msk.f32.gmra.mrb[8].mxu0 %vm525_vm1, %v13448_v17  ;;  %16766 = vst [vmem:[#allocation51_spill] sm:$0xff] %v13493_v47  ;;  %v13506_v16 = vsel %vm2123_vm4, %v2159_v31, %v2160_v8  ;;  %v2170_v31 = vrot.slane %v13157_v60, 2 }
 0x4d6   : > { %9858 = vmatprep.mubr.msk.f32.mxu0 %vm525_vm1, %v13454_v26  ;;  %16767 = vst [vmem:[#allocation52_spill] sm:$0xff] %v13506_v16 }
 0x4d9   : > { %9859 = vmatmul.mubr.msk.f32.gmra.mrb[10].mxu0 %vm525_vm1, %v13461_v23 }
 0x4da   : > { %9861 = vmatprep.mubr.msk.f32.mxu0 %vm525_vm1, %v13467_v7  ;;  %v13487_v7 = vsel %vm2123_vm4, %v2150_v18, %v2152_v61  ;;  %v2162_v18 = vrot.slane %v13049_v14, 2  ;;  %v2164_v61 = vrot.slane %v13086_v48, 2 }
 0x4dc   : > { %v13519_v14 = vsel %vm2123_vm4, %v2164_v61, %v2165_v20  ;;  %v2175_v61 = vrot.slane %v13179_v4, 2 }
 0x4dd   : > { %9862 = vmatmul.mubr.msk.f32.gmra.mrb[12].mxu0 %vm525_vm1, %v13474_v30  ;;  %16768 = vst [vmem:[#allocation53_spill] sm:$0xff] %v13519_v14 }
 0x4de   : > { %9864 = vmatprep.mubr.msk.f32.mxu0 %vm525_vm1, %v13480_v11  ;;  %v13500_v11 = vsel %vm2123_vm4, %v2155_v54, %v2157_v15  ;;  %v2167_v54 = vrot.slane %v13096_v3, 2  ;;  %v2169_v15 = vrot.slane %v13106_v5, 2 }
 0x4e0   : > { %v13532_v3 = vsel %vm2123_vm4, %v2169_v15, %v2170_v31  ;;  %v2180_v15 = vrot.slane %v13203_v45, 2 }
 0x4e1   : > { %9865 = vmatmul.mubr.msk.f32.gmra.mrb[14].mxu0 %vm525_vm1, %v13487_v7  ;;  %16769 = vst [vmem:[#allocation54_spill] sm:$0xff] %v13532_v3 }
 0x4e2   : > { %9867 = vmatprep.mubr.msk.f32.mxu0 %vm525_vm1, %v13493_v47  ;;  %v13513_v47 = vsel %vm2123_vm4, %v2160_v8, %v2162_v18  ;;  %v2172_v8 = vrot.slane %v13160_v56, 2  ;;  %v2174_v18 = vrot.slane %v13173_v57, 2 }
 0x4e4   : > { %v13545_v56 = vsel %vm2123_vm4, %v2174_v18, %v2175_v61  ;;  %v2185_v18 = vrot.slane %v13230_v50, 2 }
 0x4e5   : > { %9868 = vmatmul.mubr.msk.f32.gmra.mrb[16].mxu0 %vm525_vm1, %v13500_v11  ;;  %16770 = vst [vmem:[#allocation55_spill] sm:$0xff] %v13545_v56 }
 0x4e6   : > { %9870 = vmatprep.mubr.msk.f32.mxu0 %vm525_vm1, %v13506_v16  ;;  %v13526_v16 = vsel %vm2123_vm4, %v2165_v20, %v2167_v54  ;;  %v2177_v20 = vrot.slane %v13183_v35, 2  ;;  %v2179_v54 = vrot.slane %v13198_v40, 2 }
 0x4e8   : > { %v13558_v35 = vsel %vm2123_vm4, %v2179_v54, %v2180_v15  ;;  %v2190_v54 = vrot.slane %v13253_v34, 2 }
 0x4e9   : > { %9871 = vmatmul.mubr.msk.f32.gmra.mrb[18].mxu0 %vm525_vm1, %v13513_v47  ;;  %16772 = vst [vmem:[#allocation57_spill] sm:$0xff] %v13558_v35 }
 0x4ea   : > { %9873 = vmatprep.mubr.msk.f32.mxu0 %vm525_vm1, %v13519_v14  ;;  %v13539_v14 = vsel %vm2123_vm4, %v2170_v31, %v2172_v8  ;;  %v2182_v31 = vrot.slane %v13207_v41, 2  ;;  %v2184_v8 = vrot.slane %v13226_v29, 2 }
 0x4ec   : > { %v13571_v41 = vsel %vm2123_vm4, %v2184_v8, %v2185_v18  ;;  %v2195_v8 = vrot.slane %v13273_v37, 2 }
 0x4ed   : > { %9874 = vmatmul.mubr.msk.f32.gmra.mrb[20].mxu0 %vm525_vm1, %v13526_v16  ;;  %16773 = vst [vmem:[#allocation58_spill] sm:$0xff] %v13571_v41 }
 0x4ee   : > { %9876 = vmatprep.mubr.msk.f32.mxu0 %vm525_vm1, %v13532_v3  ;;  %v13552_v3 = vsel %vm2123_vm4, %v2175_v61, %v2177_v20  ;;  %v2187_v61 = vrot.slane %v13234_v39, 2  ;;  %v2189_v20 = vrot.slane %v13247_v1, 2 }
 0x4ef   : > { %16771 = vst [vmem:[#allocation56_spill] sm:$0xff] %v13552_v3 }
 0x4f0   : > { %v13584_v39 = vsel %vm2123_vm4, %v2189_v20, %v2190_v54  ;;  %v2200_v20 = vrot.slane %v13302_v44, 2 }
 0x4f1   : > { %9877 = vmatmul.mubr.msk.f32.gmra.mrb[22].mxu0 %vm525_vm1, %v13539_v14  ;;  %16775 = vst [vmem:[#allocation60_spill] sm:$0xff] %v13584_v39 }
 0x4f2   : > { %9879 = vmatprep.mubr.msk.f32.mxu0 %vm525_vm1, %v13545_v56  ;;  %v13565_v56 = vsel %vm2123_vm4, %v2180_v15, %v2182_v31  ;;  %v2192_v15 = vrot.slane %v13257_v0, 2  ;;  %v2194_v31 = vrot.slane %v13264_v33, 2 }
 0x4f4   : > { %v13597_v0 = vsel %vm2123_vm4, %v2194_v31, %v2195_v8  ;;  %v2803_v31 = vld [vmem:[%s16498_s5 + $0x90] sm:$0xff] }
 0x4f5   : > { %9880 = vmatmul.mubr.msk.f32.gmra.mrb[24].mxu0 %vm525_vm1, %v13552_v3  ;;  %16776 = vst [vmem:[#allocation61_spill] sm:$0xff] %v13597_v0 }
 0x4f6   : > { %9882 = vmatprep.mubr.msk.f32.mxu0 %vm525_vm1, %v13558_v35  ;;  %v13578_v35 = vsel %vm2123_vm4, %v2185_v18, %v2187_v61  ;;  %v2197_v18 = vrot.slane %v13280_v59, 2  ;;  %v2199_v61 = vrot.slane %v13298_v51, 2 }
 0x4f7   : > { %16774 = vst [vmem:[#allocation59_spill] sm:$0xff] %v13578_v35 }
 0x4f8   : > { %v13610_v59 = vsel %vm2123_vm4, %v2199_v61, %v2200_v20  ;;  %v3072_v61 = vld [vmem:[%s16498_s5 + $0xa8] sm:$0xff] }
 0x4f9   : > { %9883 = vmatmul.mubr.msk.f32.gmra.mrb[26].mxu0 %vm525_vm1, %v13565_v56 }
 0x4fa   : > { %9885 = vmatprep.mubr.msk.f32.mxu0 %vm525_vm1, %v13571_v41  ;;  %v13591_v41 = vsel %vm2123_vm4, %v2190_v54, %v2192_v15  ;;  %v2202_v54 = vrot.slane %v13305_v49, 2  ;;  %v2804_v49 = vld [vmem:[%s16498_s5 + $0x98] sm:$0xff] }
 0x4fc   : > { %v13615_v15 = vsel %vm2123_vm4, %v2200_v20, %v2202_v54 }
 0x4fd   : > { %9886 = vmatmul.mubr.msk.f32.gmra.mrb[28].mxu0 %vm525_vm1, %v13578_v35 }
 0x4fe   : > { %9888 = vmatprep.mubr.msk.f32.mxu0 %vm525_vm1, %v13584_v39  ;;  %v13604_v39 = vsel %vm2123_vm4, %v2195_v8, %v2197_v18  ;;  %v10985_v8 = vpack.c.bf16 %v2804_v49, %v2803_v31  ;;  %v3071_v18 = vld [vmem:[%s16498_s5 + $0xa0] sm:$0xff] }
 0x4ff   : > { %16777 = vst [vmem:[#allocation62_spill] sm:$0xff] %v13604_v39  ;;  %v10989_v20 = vpack.c.bf16 %v3072_v61, %v3071_v18  ;;  %v11997_v31 = vld [vmem:[%s16497_s4] ss:$0 sm:$0xff] }
 0x501   : > { %9889 = vmatmul.mubr.msk.f32.gmra.mrb[30].mxu0 %vm525_vm1, %v13591_v41 }
 0x502   : > { %9891 = vmatprep.mubr.msk.f32.mxu0 %vm525_vm1, %v13597_v0 }
 0x505   : > { %9892 = vmatmul.mubr.msk.f32.gmra.mrb[32].mxu0 %vm525_vm1, %v13604_v39 }
 0x506   : > { %9894 = vmatprep.mubr.msk.f32.mxu0 %vm525_vm1, %v13610_v59 }
 0x509   : > { %9895 = vmatmul.mubr.msk.f32.gmra.mrb[34].mxu0 %vm525_vm1, %v13615_v15 }
 0x50a   : > { %9905 = vmatprep.mubr.msk.f32.mxu0 %vm525_vm1, %v12895_v28  ;;  %v16778_v28 = vld [vmem:[#allocation8_spill] sm:$0xff] }
 0x50d   : > { %9906 = vmatmul.mubr.msk.f32.vlgmr.msra.gmra.mrb[4].mxu0 %vm525_vm1, %v12899_v19  ;;  %v1072_v19 = vmul.f32 %v12748_v38, %v16778_v28 }
 0x50e   : > { %10984 = vmatpush3.bf16.msra.mxu0 %v13431_v12  ;;  %9908 = vmatprep.mubr.msk.f32.mxu0 %vm525_vm1, %v12908_v63  ;;  %v16779_v12 = vld [vmem:[#allocation9_spill] sm:$0xff] }
 0x50f   : > { %10986 = vmatprep.subr.bf16.mxu0 %v10985_v8  ;;  %v1073_v54 = vmul.f32 %v12748_v38, %v16779_v12  ;;  %v1111_v49 = vadd.f32 %v11997_v31, %v1072_v19 }
 0x511   : > { %9909 = vmatmul.mubr.msk.f32.gmra.mrb[6].mxu0 %vm525_vm1, %v12912_v43  ;;  %v1143_v18 = vmul.f32 0.5, %v1111_v49 }
 0x512   : > { %9911 = vmatprep.mubr.msk.f32.mxu0 %vm525_vm1, %v12931_v13  ;;  %10988 = vmatpush3.bf16.msra.mxu0 %v10985_v8  ;;  %v1112_v8 = vadd.f32 %v11997_v31, %v1073_v54 }
 0x513   : > { %10990 = vmatprep.subr.bf16.mxu0 %v10989_v20  ;;  %11927 = vtanh.f32 %v1143_v18 }
 0x514   : > { %v1144_v38 = vmul.f32 0.5, %v1112_v8 }
 0x515   : > { %9912 = vmatmul.mubr.msk.f32.gmra.mrb[8].mxu0 %vm525_vm1, %v12950_v24 }
 0x516   : > { %9914 = vmatprep.mubr.msk.f32.mxu0 %vm525_vm1, %v12959_v10  ;;  %11929 = vtanh.f32 %v1144_v38 }
 0x519   : > { %9915 = vmatmul.mubr.msk.f32.gmra.mrb[10].mxu0 %vm525_vm1, %v12973_v62 }
 0x51a   : > { %9917 = vmatprep.mubr.msk.f32.mxu0 %vm525_vm1, %v12995_v27 }
 0x51d   : > { %9918 = vmatmul.mubr.msk.f32.gmra.mrb[12].mxu0 %vm525_vm1, %v12998_v52  ;;  %v11928_v61 = vpop.eup %11927 }
 0x51e   : > { %9920 = vmatprep.mubr.msk.f32.mxu0 %vm525_vm1, %v13007_v6  ;;  %v1207_v19 = vmul.f32 0.5, %v11928_v61 }
 0x520   : > { %v11930_v28 = vpop.eup %11929  ;;  %v1239_v54 = vadd.f32 0.5, %v1207_v19 }
 0x521   : > { %9921 = vmatmul.mubr.msk.f32.gmra.mrb[14].mxu0 %vm525_vm1, %v13013_v32  ;;  %v1208_v12 = vmul.f32 0.5, %v11930_v28 }
 0x522   : > { %9923 = vmatprep.mubr.msk.f32.mxu0 %vm525_vm1, %v13046_v9  ;;  %v1271_v18 = vmul.f32 %v1239_v54, %v1111_v49  ;;  %v16780_v54 = vld [vmem:[#allocation16_spill] sm:$0xff] }
 0x523   : > { %v1240_v31 = vadd.f32 0.5, %v1208_v12  ;;  %v3074_v12 = vld [vmem:[%s16498_s5 + $0xb8] sm:$0xff] }
 0x524   : > { %v1354_v61 = vrot.slane %v1271_v18, 7  ;;  %v3336_v18 = vld [vmem:[%s16498_s5 + $0xc0] sm:$0xff] }
 0x525   : > { %9924 = vmatmul.mubr.msk.f32.gmra.mrb[16].mxu0 %vm525_vm1, %v13043_v46  ;;  %v1272_v38 = vmul.f32 %v1240_v31, %v1112_v8  ;;  %v3073_v8 = vld [vmem:[%s16498_s5 + $0xb0] sm:$0xff] }
 0x526   : > { %9926 = vmatprep.mubr.msk.f32.mxu0 %vm525_vm1, %v13086_v48  ;;  %v13700_v19 = vsel %vm1306_vm2, 0.0, %v1354_v61  ;;  %v10993_v31 = vpack.c.bf16 %v3074_v12, %v3073_v8  ;;  %v16784_v8 = vld [vmem:[#allocation20_spill] sm:$0xff]  ;;  %v16785_v12 = vld [vmem:[#allocation21_spill] sm:$0xff] }
 0x527   : > { %v1355_v28 = vrot.slane %v1272_v38, 7  ;;  %v3337_v38 = vld [vmem:[%s16498_s5 + $0xc8] sm:$0xff] }
 0x529   : > { %9927 = vmatmul.mubr.msk.f32.gmra.mrb[18].mxu0 %vm525_vm1, %v13092_v53  ;;  %v13705_v49 = vsel %vm1306_vm2, %v1354_v61, %v1355_v28  ;;  %v16781_v61 = vld [vmem:[#allocation17_spill] sm:$0xff] }
 0x52a   : > { %9929 = vmatprep.mubr.msk.f32.mxu0 %vm525_vm1, %v13106_v5 }
 0x52d   : > { %9930 = vmatmul.mubr.msk.f32.gmra.mrb[20].mxu0 %vm525_vm1, %v13157_v60 }
 0x52e   : > { %9932 = vmatprep.mubr.msk.f32.mxu0 %vm525_vm1, %v13173_v57 }
 0x531   : > { %9933 = vmatmul.mubr.msk.f32.gmra.mrb[22].mxu0 %vm525_vm1, %v13179_v4 }
 0x532   : > { %9935 = vmatprep.mubr.msk.f32.mxu0 %vm525_vm1, %v13198_v40 }
 0x535   : > { %9936 = vmatmul.mubr.msk.f32.gmra.mrb[24].mxu0 %vm525_vm1, %v13203_v45 }
 0x536   : > { %9938 = vmatprep.mubr.msk.f32.mxu0 %vm525_vm1, %v13226_v29 }
 0x539   : > { %9939 = vmatmul.mubr.msk.f32.gmra.mrb[26].mxu0 %vm525_vm1, %v13230_v50 }
 0x53a   : > { %9941 = vmatprep.mubr.msk.f32.mxu0 %vm525_vm1, %v13247_v1 }
 0x53d   : > { %9942 = vmatmul.mubr.msk.f32.gmra.mrb[28].mxu0 %vm525_vm1, %v13253_v34 }
 0x53e   : > { %9944 = vmatprep.mubr.msk.f32.mxu0 %vm525_vm1, %v13264_v33 }
 0x541   : > { %9945 = vmatmul.mubr.msk.f32.gmra.mrb[30].mxu0 %vm525_vm1, %v13273_v37  ;;  %v16783_v37 = vld [vmem:[#allocation19_spill] sm:$0xff] }
 0x542   : > { %9947 = vmatprep.mubr.msk.f32.mxu0 %vm525_vm1, %v13298_v51  ;;  %v10997_v51 = vpack.c.bf16 %v3337_v38, %v3336_v18  ;;  %v16789_v18 = vld [vmem:[#allocation25_spill] sm:$0xff]  ;;  %v16790_v38 = vld [vmem:[#allocation26_spill] sm:$0xff] }
 0x545   : > { %9948 = vmatmul.mubr.msk.f32.gmra.mrb[32].mxu0 %vm525_vm1, %v13302_v44  ;;  %v16782_v44 = vld [vmem:[#allocation18_spill] sm:$0xff] }
 0x546   : > { %9950 = vmatprep.mubr.msk.f32.mxu0 %vm525_vm1, %v13700_v19 }
 0x549   : > { %9951 = vmatmul.mubr.msk.f32.gmra.mrb[34].mxu0 %vm525_vm1, %v13705_v49 }
 0x54a   : > { %9961 = vmatprep.mubr.msk.f32.mxu0 %vm525_vm1, %v16780_v54  ;;  %v16786_v54 = vld [vmem:[#allocation22_spill] sm:$0xff] }
 0x54d   : > { %9962 = vmatmul.mubr.msk.f32.vlgmr.msra.gmra.mrb[4].mxu0 %vm525_vm1, %v16781_v61  ;;  %v16788_v61 = vld [vmem:[#allocation24_spill] sm:$0xff] }
 0x54e   : > { %10992 = vmatpush3.bf16.msra.mxu0 %v10989_v20  ;;  %9964 = vmatprep.mubr.msk.f32.mxu0 %vm525_vm1, %v16782_v44  ;;  %v16787_v20 = vld [vmem:[#allocation23_spill] sm:$0xff] }
 0x54f   : > { %10994 = vmatprep.subr.bf16.mxu0 %v10993_v31 }
 0x551   : > { %9965 = vmatmul.mubr.msk.f32.gmra.mrb[6].mxu0 %vm525_vm1, %v16783_v37 }
 0x552   : > { %9967 = vmatprep.mubr.msk.f32.mxu0 %vm525_vm1, %v16784_v8  ;;  %10996 = vmatpush3.bf16.msra.mxu0 %v10993_v31  ;;  %v16791_v31 = vld [vmem:[#allocation27_spill] sm:$0xff]  ;;  %v16792_v8 = vld [vmem:[#allocation28_spill] sm:$0xff] }
 0x553   : > { %10998 = vmatprep.subr.bf16.mxu0 %v10997_v51 }
 0x555   : > { %9968 = vmatmul.mubr.msk.f32.gmra.mrb[8].mxu0 %vm525_vm1, %v16785_v12  ;;  %v16793_v12 = vld [vmem:[#allocation29_spill] sm:$0xff] }
 0x556   : > { %9970 = vmatprep.mubr.msk.f32.mxu0 %vm525_vm1, %v16786_v54  ;;  %v16794_v54 = vld [vmem:[#allocation30_spill] sm:$0xff] }
 0x559   : > { %9971 = vmatmul.mubr.msk.f32.gmra.mrb[10].mxu0 %vm525_vm1, %v16787_v20  ;;  %v16795_v20 = vld [vmem:[#allocation31_spill] sm:$0xff] }
 0x55a   : > { %9973 = vmatprep.mubr.msk.f32.mxu0 %vm525_vm1, %v16788_v61  ;;  %v16796_v61 = vld [vmem:[#allocation32_spill] sm:$0xff] }
 0x55d   : > { %9974 = vmatmul.mubr.msk.f32.gmra.mrb[12].mxu0 %vm525_vm1, %v16789_v18  ;;  %v16797_v18 = vld [vmem:[#allocation33_spill] sm:$0xff] }
 0x55e   : > { %9976 = vmatprep.mubr.msk.f32.mxu0 %vm525_vm1, %v16790_v38  ;;  %v16798_v38 = vld [vmem:[#allocation34_spill] sm:$0xff] }
 0x561   : > { %9977 = vmatmul.mubr.msk.f32.gmra.mrb[14].mxu0 %vm525_vm1, %v16791_v31  ;;  %v16799_v31 = vld [vmem:[#allocation35_spill] sm:$0xff] }
 0x562   : > { %9979 = vmatprep.mubr.msk.f32.mxu0 %vm525_vm1, %v16792_v8 }
 0x565   : > { %9980 = vmatmul.mubr.msk.f32.gmra.mrb[16].mxu0 %vm525_vm1, %v16793_v12 }
 0x566   : > { %9982 = vmatprep.mubr.msk.f32.mxu0 %vm525_vm1, %v16794_v54 }
 0x569   : > { %9983 = vmatmul.mubr.msk.f32.gmra.mrb[18].mxu0 %vm525_vm1, %v16795_v20 }
 0x56a   : > { %9985 = vmatprep.mubr.msk.f32.mxu0 %vm525_vm1, %v16796_v61  ;;  %v16800_v61 = vld [vmem:[#allocation40_spill] sm:$0xff] }
 0x56d   : > { %9986 = vmatmul.mubr.msk.f32.gmra.mrb[20].mxu0 %vm525_vm1, %v16797_v18  ;;  %v16801_v18 = vld [vmem:[#allocation41_spill] sm:$0xff] }
 0x56e   : > { %9988 = vmatprep.mubr.msk.f32.mxu0 %vm525_vm1, %v16798_v38  ;;  %v16803_v38 = vld [vmem:[#allocation47_spill] sm:$0xff] }
 0x571   : > { %9989 = vmatmul.mubr.msk.f32.gmra.mrb[22].mxu0 %vm525_vm1, %v16799_v31  ;;  %v2797_v31 = vrot.slane %v13705_v49, 1 }
 0x572   : > { %9991 = vmatprep.mubr.msk.f32.mxu0 %vm525_vm1, %v13216_v42  ;;  %v2796_v42 = vrot.slane %v13700_v19, 1 }
 0x575   : > { %9992 = vmatmul.mubr.msk.f32.gmra.mrb[24].mxu0 %vm525_vm1, %v13221_v36  ;;  %v16802_v36 = vld [vmem:[#allocation44_spill] sm:$0xff] }
 0x576   : > { %9994 = vmatprep.mubr.msk.f32.mxu0 %vm525_vm1, %v13241_v55  ;;  %v1423_v55 = vsel %vm1306_vm2, %v1355_v28, 0.0  ;;  %v3338_v28 = vld [vmem:[%s16498_s5 + $0xd0] sm:$0xff] }
 0x579   : > { %9995 = vmatmul.mubr.msk.f32.gmra.mrb[26].mxu0 %vm525_vm1, %v13244_v58  ;;  %v2799_v58 = vrot.slane %v1423_v55, 1 }
 0x57a   : > { %9997 = vmatprep.mubr.msk.f32.mxu0 %vm525_vm1, %v16800_v61  ;;  %v16804_v61 = vld [vmem:[#allocation48_spill] sm:$0xff] }
 0x57d   : > { %9998 = vmatmul.mubr.msk.f32.gmra.mrb[28].mxu0 %vm525_vm1, %v16801_v18  ;;  %v13785_v18 = vsel %vm1460_vm3, %v2796_v42, %v2797_v31 }
 0x57e   : > { %10000 = vmatprep.mubr.msk.f32.mxu0 %vm525_vm1, %v13286_v2  ;;  %v13790_v2 = vsel %vm1460_vm3, %v2797_v31, %v2799_v58  ;;  %v3597_v58 = vld [vmem:[%s16498_s5 + $0xe0] sm:$0xff]  ;;  %v3598_v31 = vld [vmem:[%s16498_s5 + $0xe8] sm:$0xff] }
 0x57f   : > { %16805 = vst [vmem:[#allocation8_spill] sm:$0xff] %v13790_v2 }
 0x581   : > { %10001 = vmatmul.mubr.msk.f32.gmra.mrb[30].mxu0 %vm525_vm1, %v16802_v36 }
 0x582   : > { %10003 = vmatprep.mubr.msk.f32.mxu0 %vm525_vm1, %v16803_v38  ;;  %v3339_v38 = vld [vmem:[%s16498_s5 + $0xd8] sm:$0xff] }
 0x583   : > { %v11001_v42 = vpack.c.bf16 %v3339_v38, %v3338_v28  ;;  %v16809_v38 = vld [vmem:[#allocation52_spill] sm:$0xff]  ;;  %v16810_v28 = vld [vmem:[#allocation53_spill] sm:$0xff] }
 0x585   : > { %10004 = vmatmul.mubr.msk.f32.gmra.mrb[32].mxu0 %vm525_vm1, %v16804_v61 }
 0x586   : > { %10006 = vmatprep.mubr.msk.f32.mxu0 %vm525_vm1, %v13785_v18 }
 0x589   : > { %10007 = vmatmul.mubr.msk.f32.gmra.mrb[34].mxu0 %vm525_vm1, %v13790_v2  ;;  %v11005_v2 = vpack.c.bf16 %v3598_v31, %v3597_v58  ;;  %v16812_v58 = vld [vmem:[#allocation55_spill] sm:$0xff]  ;;  %v16813_v31 = vld [vmem:[#allocation57_spill] sm:$0xff] }
 0x58a   : > { %10017 = vmatprep.mubr.msk.f32.mxu0 %vm525_vm1, %v13425_v25  ;;  %v16806_v25 = vld [vmem:[#allocation14_spill] sm:$0xff] }
 0x58d   : > { %10018 = vmatmul.mubr.msk.f32.vlgmr.msra.gmra.mrb[4].mxu0 %vm525_vm1, %v13434_v22  ;;  %v16808_v22 = vld [vmem:[#allocation51_spill] sm:$0xff] }
 0x58e   : > { %11000 = vmatpush3.bf16.msra.mxu0 %v10997_v51  ;;  %10020 = vmatprep.mubr.msk.f32.mxu0 %vm525_vm1, %v13440_v21  ;;  %v16807_v51 = vld [vmem:[#allocation15_spill] sm:$0xff] }
 0x58f   : > { %11002 = vmatprep.subr.bf16.mxu0 %v11001_v42 }
 0x591   : > { %10021 = vmatmul.mubr.msk.f32.gmra.mrb[6].mxu0 %vm525_vm1, %v13448_v17 }
 0x592   : > { %10023 = vmatprep.mubr.msk.f32.mxu0 %vm525_vm1, %v13454_v26  ;;  %11004 = vmatpush3.bf16.msra.mxu0 %v11001_v42  ;;  %v16811_v42 = vld [vmem:[#allocation54_spill] sm:$0xff] }
 0x593   : > { %11006 = vmatprep.subr.bf16.mxu0 %v11005_v2 }
 0x595   : > { %10024 = vmatmul.mubr.msk.f32.gmra.mrb[8].mxu0 %vm525_vm1, %v13461_v23 }
 0x596   : > { %10026 = vmatprep.mubr.msk.f32.mxu0 %vm525_vm1, %v16806_v25 }
 0x599   : > { %10027 = vmatmul.mubr.msk.f32.gmra.mrb[10].mxu0 %vm525_vm1, %v13474_v30 }
 0x59a   : > { %10029 = vmatprep.mubr.msk.f32.mxu0 %vm525_vm1, %v16807_v51 }
 0x59d   : > { %10030 = vmatmul.mubr.msk.f32.gmra.mrb[12].mxu0 %vm525_vm1, %v13487_v7 }
 0x59e   : > { %10032 = vmatprep.mubr.msk.f32.mxu0 %vm525_vm1, %v16808_v22 }
 0x5a1   : > { %10033 = vmatmul.mubr.msk.f32.gmra.mrb[14].mxu0 %vm525_vm1, %v13500_v11 }
 0x5a2   : > { %10035 = vmatprep.mubr.msk.f32.mxu0 %vm525_vm1, %v16809_v38 }
 0x5a5   : > { %10036 = vmatmul.mubr.msk.f32.gmra.mrb[16].mxu0 %vm525_vm1, %v13513_v47 }
 0x5a6   : > { %10038 = vmatprep.mubr.msk.f32.mxu0 %vm525_vm1, %v16810_v28  ;;  %v16814_v28 = vld [vmem:[#allocation58_spill] sm:$0xff] }
 0x5a9   : > { %10039 = vmatmul.mubr.msk.f32.gmra.mrb[18].mxu0 %vm525_vm1, %v13526_v16 }
 0x5aa   : > { %10041 = vmatprep.mubr.msk.f32.mxu0 %vm525_vm1, %v16811_v42  ;;  %v16815_v42 = vld [vmem:[#allocation60_spill] sm:$0xff] }
 0x5ad   : > { %10042 = vmatmul.mubr.msk.f32.gmra.mrb[20].mxu0 %vm525_vm1, %v13539_v14 }
 0x5ae   : > { %10044 = vmatprep.mubr.msk.f32.mxu0 %vm525_vm1, %v16812_v58 }
 0x5b1   : > { %10045 = vmatmul.mubr.msk.f32.gmra.mrb[22].mxu0 %vm525_vm1, %v13552_v3  ;;  %v3067_v3 = vrot.slane %v13705_v49, 2 }
 0x5b2   : > { %10047 = vmatprep.mubr.msk.f32.mxu0 %vm525_vm1, %v16813_v31  ;;  %v3066_v31 = vrot.slane %v13700_v19, 2 }
 0x5b5   : > { %10048 = vmatmul.mubr.msk.f32.gmra.mrb[24].mxu0 %vm525_vm1, %v13565_v56 }
 0x5b6   : > { %10050 = vmatprep.mubr.msk.f32.mxu0 %vm525_vm1, %v16814_v28 }
 0x5b9   : > { %10051 = vmatmul.mubr.msk.f32.gmra.mrb[26].mxu0 %vm525_vm1, %v13578_v35  ;;  %v3069_v35 = vrot.slane %v1423_v55, 2  ;;  %v3600_v55 = vld [vmem:[%s16498_s5 + $0xf8] sm:$0xff] }
 0x5ba   : > { %10053 = vmatprep.mubr.msk.f32.mxu0 %vm525_vm1, %v16815_v42  ;;  %v13869_v42 = vsel %vm2123_vm4, %v3066_v31, %v3067_v3 }
 0x5bd   : > { %10054 = vmatmul.mubr.msk.f32.gmra.mrb[28].mxu0 %vm525_vm1, %v13591_v41 }
 0x5be   : > { %10056 = vmatprep.mubr.msk.f32.mxu0 %vm525_vm1, %v13597_v0  ;;  %v13874_v0 = vsel %vm2123_vm4, %v3067_v3, %v3069_v35  ;;  %v3858_v3 = vld [vmem:[%s16498_s5 + $0x100] sm:$0xff]  ;;  %v3859_v35 = vld [vmem:[%s16498_s5 + $0x108] sm:$0xff] }
 0x5bf   : > { %16816 = vst [vmem:[#allocation9_spill] sm:$0xff] %v13874_v0 }
 0x5c1   : > { %10057 = vmatmul.mubr.msk.f32.gmra.mrb[30].mxu0 %vm525_vm1, %v13604_v39  ;;  %v3599_v39 = vld [vmem:[%s16498_s5 + $0xf0] sm:$0xff] }
 0x5c2   : > { %10059 = vmatprep.mubr.msk.f32.mxu0 %vm525_vm1, %v13610_v59  ;;  %v11009_v31 = vpack.c.bf16 %v3600_v55, %v3599_v39  ;;  %v16842_v39 = vld [vmem:[#allocation8_spill] sm:$0xff] }
 0x5c5   : > { %10060 = vmatmul.mubr.msk.f32.gmra.mrb[32].mxu0 %vm525_vm1, %v13615_v15 }
 0x5c6   : > { %10062 = vmatprep.mubr.msk.f32.mxu0 %vm525_vm1, %v13869_v42 }
 0x5c9   : > { %10063 = vmatmul.mubr.msk.f32.gmra.mrb[34].mxu0 %vm525_vm1, %v13874_v0  ;;  %v11013_v0 = vpack.c.bf16 %v3859_v35, %v3858_v3 }
 0x5ca   : > { %10073 = vmatprep.mubr.msk.f32.mxu0 %vm525_vm1, %v12908_v63  ;;  %v16817_v63 = vld [vmem:[#allocation42_spill] sm:$0xff] }
 0x5cd   : > { %10074 = vmatmul.mubr.msk.f32.vlgmr.msra.gmra.mrb[4].mxu0 %vm525_vm1, %v12912_v43  ;;  %v16818_v43 = vld [vmem:[#allocation45_spill] sm:$0xff] }
 0x5ce   : > { %11008 = vmatpush3.bf16.msra.mxu0 %v11005_v2  ;;  %10076 = vmatprep.mubr.msk.f32.mxu0 %vm525_vm1, %v12931_v13  ;;  %v16820_v13 = vld [vmem:[#allocation11_spill] sm:$0xff] }
 0x5cf   : > { %11010 = vmatprep.subr.bf16.mxu0 %v11009_v31  ;;  %v16840_v2 = vld [vmem:[#allocation43_spill] sm:$0xff] }
 0x5d1   : > { %10077 = vmatmul.mubr.msk.f32.gmra.mrb[6].mxu0 %vm525_vm1, %v12950_v24  ;;  %v3860_v24 = vld [vmem:[%s16498_s5 + $0x110] sm:$0xff] }
 0x5d2   : > { %10079 = vmatprep.mubr.msk.f32.mxu0 %vm525_vm1, %v12959_v10  ;;  %11012 = vmatpush3.bf16.msra.mxu0 %v11009_v31  ;;  %v16819_v10 = vld [vmem:[#allocation46_spill] sm:$0xff] }
 0x5d3   : > { %11014 = vmatprep.subr.bf16.mxu0 %v11013_v0 }
 0x5d5   : > { %10080 = vmatmul.mubr.msk.f32.gmra.mrb[8].mxu0 %vm525_vm1, %v12973_v62  ;;  %v3861_v62 = vld [vmem:[%s16498_s5 + $0x118] sm:$0xff] }
 0x5d6   : > { %10082 = vmatprep.mubr.msk.f32.mxu0 %vm525_vm1, %v12995_v27  ;;  %v16821_v27 = vld [vmem:[#allocation10_spill] sm:$0xff] }
 0x5d9   : > { %10083 = vmatmul.mubr.msk.f32.gmra.mrb[10].mxu0 %vm525_vm1, %v12998_v52  ;;  %v11017_v52 = vpack.c.bf16 %v3861_v62, %v3860_v24 }
 0x5da   : > { %10085 = vmatprep.mubr.msk.f32.mxu0 %vm525_vm1, %v13007_v6  ;;  %v16822_v6 = vld [vmem:[#allocation20_spill] sm:$0xff] }
 0x5dd   : > { %10086 = vmatmul.mubr.msk.f32.gmra.mrb[12].mxu0 %vm525_vm1, %v13013_v32  ;;  %v16823_v32 = vld [vmem:[#allocation21_spill] sm:$0xff] }
 0x5de   : > { %10088 = vmatprep.mubr.msk.f32.mxu0 %vm525_vm1, %v13046_v9  ;;  %v16825_v9 = vld [vmem:[#allocation23_spill] sm:$0xff] }
 0x5e1   : > { %10089 = vmatmul.mubr.msk.f32.gmra.mrb[14].mxu0 %vm525_vm1, %v13043_v46  ;;  %v16824_v46 = vld [vmem:[#allocation22_spill] sm:$0xff] }
 0x5e2   : > { %10091 = vmatprep.mubr.msk.f32.mxu0 %vm525_vm1, %v13086_v48  ;;  %v16826_v48 = vld [vmem:[#allocation24_spill] sm:$0xff] }
 0x5e5   : > { %10092 = vmatmul.mubr.msk.f32.gmra.mrb[16].mxu0 %vm525_vm1, %v13092_v53  ;;  %v16827_v53 = vld [vmem:[#allocation25_spill] sm:$0xff] }
 0x5e6   : > { %10094 = vmatprep.mubr.msk.f32.mxu0 %vm525_vm1, %v13106_v5  ;;  %v16828_v5 = vld [vmem:[#allocation26_spill] sm:$0xff] }
 0x5e9   : > { %10095 = vmatmul.mubr.msk.f32.gmra.mrb[18].mxu0 %vm525_vm1, %v13157_v60  ;;  %v16829_v60 = vld [vmem:[#allocation27_spill] sm:$0xff] }
 0x5ea   : > { %10097 = vmatprep.mubr.msk.f32.mxu0 %vm525_vm1, %v13173_v57  ;;  %v16830_v57 = vld [vmem:[#allocation32_spill] sm:$0xff] }
 0x5ed   : > { %10098 = vmatmul.mubr.msk.f32.gmra.mrb[20].mxu0 %vm525_vm1, %v13179_v4  ;;  %v16831_v4 = vld [vmem:[#allocation33_spill] sm:$0xff] }
 0x5ee   : > { %10100 = vmatprep.mubr.msk.f32.mxu0 %vm525_vm1, %v13198_v40  ;;  %v16832_v40 = vld [vmem:[#allocation34_spill] sm:$0xff] }
 0x5f1   : > { %10101 = vmatmul.mubr.msk.f32.gmra.mrb[22].mxu0 %vm525_vm1, %v13203_v45  ;;  %v16833_v45 = vld [vmem:[#allocation35_spill] sm:$0xff] }
 0x5f2   : > { %10103 = vmatprep.mubr.msk.f32.mxu0 %vm525_vm1, %v13226_v29  ;;  %v16834_v29 = vld [vmem:[#allocation36_spill] sm:$0xff] }
 0x5f5   : > { %10104 = vmatmul.mubr.msk.f32.gmra.mrb[24].mxu0 %vm525_vm1, %v13230_v50  ;;  %v16835_v50 = vld [vmem:[#allocation37_spill] sm:$0xff] }
 0x5f6   : > { %10106 = vmatprep.mubr.msk.f32.mxu0 %vm525_vm1, %v13247_v1  ;;  %v16836_v1 = vld [vmem:[#allocation38_spill] sm:$0xff] }
 0x5f9   : > { %10107 = vmatmul.mubr.msk.f32.gmra.mrb[26].mxu0 %vm525_vm1, %v13253_v34  ;;  %v16837_v34 = vld [vmem:[#allocation39_spill] sm:$0xff] }
 0x5fa   : > { %10109 = vmatprep.mubr.msk.f32.mxu0 %vm525_vm1, %v13264_v33  ;;  %v16838_v33 = vld [vmem:[#allocation40_spill] sm:$0xff] }
 0x5fd   : > { %10110 = vmatmul.mubr.msk.f32.gmra.mrb[28].mxu0 %vm525_vm1, %v16817_v63 }
 0x5fe   : > { %10112 = vmatprep.mubr.msk.f32.mxu0 %vm525_vm1, %v16818_v43 }
 0x601   : > { %10113 = vmatmul.mubr.msk.f32.gmra.mrb[30].mxu0 %vm525_vm1, %v16819_v10 }
 0x602   : > { %10115 = vmatprep.mubr.msk.f32.mxu0 %vm525_vm1, %v13700_v19  ;;  %v16844_v19 = vld [vmem:[#allocation13_spill] sm:$0xff] }
 0x605   : > { %10116 = vmatmul.mubr.msk.f32.gmra.mrb[32].mxu0 %vm525_vm1, %v13705_v49 }
 0x606   : > { %10118 = vmatprep.mubr.msk.f32.mxu0 %vm525_vm1, %v16820_v13 }
 0x609   : > { %10119 = vmatmul.mubr.msk.f32.gmra.mrb[34].mxu0 %vm525_vm1, %v16821_v27 }
 0x60a   : > { %10129 = vmatprep.mubr.msk.f32.mxu0 %vm525_vm1, %v16782_v44  ;;  %v16841_v44 = vld [vmem:[#allocation47_spill] sm:$0xff] }
 0x60d   : > { %10130 = vmatmul.mubr.msk.f32.vlgmr.msra.gmra.mrb[4].mxu0 %vm525_vm1, %v16783_v37  ;;  %v16839_v37 = vld [vmem:[#allocation41_spill] sm:$0xff] }
 0x60e   : > { %11016 = vmatpush3.bf16.msra.mxu0 %v11013_v0  ;;  %10132 = vmatprep.mubr.msk.f32.mxu0 %vm525_vm1, %v16822_v6  ;;  %v16843_v0 = vld [vmem:[#allocation12_spill] sm:$0xff] }
 0x60f   : > { %11018 = vmatprep.subr.bf16.mxu0 %v11017_v52 }
 0x611   : > { %10133 = vmatmul.mubr.msk.f32.gmra.mrb[6].mxu0 %vm525_vm1, %v16823_v32 }
 0x612   : > { %10135 = vmatprep.mubr.msk.f32.mxu0 %vm525_vm1, %v16824_v46  ;;  %11020 = vmatpush3.bf16.msra.mxu0 %v11017_v52 }
 0x615   : > { %10136 = vmatmul.mubr.msk.f32.gmra.mrb[8].mxu0 %vm525_vm1, %v16825_v9 }
 0x616   : > { %10138 = vmatprep.mubr.msk.f32.mxu0 %vm525_vm1, %v16826_v48 }
 0x619   : > { %10139 = vmatmul.mubr.msk.f32.gmra.mrb[10].mxu0 %vm525_vm1, %v16827_v53 }
 0x61a   : > { %10141 = vmatprep.mubr.msk.f32.mxu0 %vm525_vm1, %v16828_v5 }
 0x61d   : > { %10142 = vmatmul.mubr.msk.f32.gmra.mrb[12].mxu0 %vm525_vm1, %v16829_v60 }
 0x61e   : > { %10144 = vmatprep.mubr.msk.f32.mxu0 %vm525_vm1, %v16792_v8  ;;  %v4231_v8 = vld [vmem:[%s16500_s7 + $0x18] sm:$0xff] }
 0x621   : > { %10145 = vmatmul.mubr.msk.f32.gmra.mrb[14].mxu0 %vm525_vm1, %v16793_v12 }
 0x622   : > { %10147 = vmatprep.mubr.msk.f32.mxu0 %vm525_vm1, %v16794_v54  ;;  %v16856_v54 = vmov 0.0|0.0  }
 0x625   : > { %10148 = vmatmul.mubr.msk.f32.gmra.mrb[16].mxu0 %vm525_vm1, %v16795_v20  ;;  %v4232_v20 = vld [vmem:[%s16500_s7 + $0x20] sm:$0xff] }
 0x626   : > { %10150 = vmatprep.mubr.msk.f32.mxu0 %vm525_vm1, %v16830_v57 }
 0x629   : > { %10151 = vmatmul.mubr.msk.f32.gmra.mrb[18].mxu0 %vm525_vm1, %v16831_v4 }
 0x62a   : > { %10153 = vmatprep.mubr.msk.f32.mxu0 %vm525_vm1, %v16832_v40 }
 0x62d   : > { %10154 = vmatmul.mubr.msk.f32.gmra.mrb[20].mxu0 %vm525_vm1, %v16833_v45 }
 0x62e   : > { %10156 = vmatprep.mubr.msk.f32.mxu0 %vm525_vm1, %v16834_v29 }
 0x631   : > { %10157 = vmatmul.mubr.msk.f32.gmra.mrb[22].mxu0 %vm525_vm1, %v16835_v50 }
 0x632   : > { %10159 = vmatprep.mubr.msk.f32.mxu0 %vm525_vm1, %v16836_v1 }
 0x635   : > { %10160 = vmatmul.mubr.msk.f32.gmra.mrb[24].mxu0 %vm525_vm1, %v16837_v34 }
 0x636   : > { %10162 = vmatprep.mubr.msk.f32.mxu0 %vm525_vm1, %v16838_v33 }
 0x639   : > { %10163 = vmatmul.mubr.msk.f32.gmra.mrb[26].mxu0 %vm525_vm1, %v16839_v37 }
 0x63a   : > { %10165 = vmatprep.mubr.msk.f32.mxu0 %vm525_vm1, %v16840_v2 }
 0x63d   : > { %10166 = vmatmul.mubr.msk.f32.gmra.mrb[28].mxu0 %vm525_vm1, %v16802_v36  ;;  %v16845_v36 = vld [vmem:[#allocation53_spill] sm:$0xff] }
 0x63e   : > { %10168 = vmatprep.mubr.msk.f32.mxu0 %vm525_vm1, %v16841_v44 }
 0x641   : > { %10169 = vmatmul.mubr.msk.f32.gmra.mrb[30].mxu0 %vm525_vm1, %v16804_v61  ;;  %v4233_v61 = vld [vmem:[%s16500_s7 + $0x28] sm:$0xff] }
 0x642   : > { %10171 = vmatprep.mubr.msk.f32.mxu0 %vm525_vm1, %v13785_v18  ;;  %v14115_v18 = vpack.c.bf16 %v4233_v61, %v4232_v20 }
 0x645   : > { %10172 = vmatmul.mubr.msk.f32.gmra.mrb[32].mxu0 %vm525_vm1, %v16842_v39 }
 0x646   : > { %10174 = vmatprep.mubr.msk.f32.mxu0 %vm525_vm1, %v16843_v0 }
 0x649   : > { %10175 = vmatmul.mubr.msk.f32.gmra.mrb[34].mxu0 %vm525_vm1, %v16844_v19 }
 0x64a   : > { %10185 = vmatprep.mubr.msk.f32.mxu0 %vm525_vm1, %v13440_v21  ;;  %v16846_v21 = vld [vmem:[#allocation54_spill] sm:$0xff] }
 0x64d   : > { %10186 = vmatmul.mubr.msk.f32.vlgmr.msra.gmra.mrb[4].mxu0 %vm525_vm1, %v13448_v17  ;;  %v16847_v17 = vld [vmem:[#allocation56_spill] sm:$0xff] }
 0x64e   : > { %10188 = vmatprep.mubr.msk.f32.mxu0 %vm525_vm1, %v13454_v26  ;;  %v16848_v26 = vld [vmem:[#allocation57_spill] sm:$0xff] }
 0x651   : > { %10189 = vmatmul.mubr.msk.f32.gmra.mrb[6].mxu0 %vm525_vm1, %v13461_v23  ;;  %v16849_v23 = vld [vmem:[#allocation59_spill] sm:$0xff] }
 0x652   : > { %10191 = vmatprep.mubr.msk.f32.mxu0 %vm525_vm1, %v16806_v25  ;;  %v4234_v25 = vld [vmem:[%s16500_s7 + $0x30] sm:$0xff] }
 0x655   : > { %10192 = vmatmul.mubr.msk.f32.gmra.mrb[8].mxu0 %vm525_vm1, %v13474_v30  ;;  %v16851_v30 = vld [vmem:[#allocation61_spill] sm:$0xff] }
 0x656   : > { %10194 = vmatprep.mubr.msk.f32.mxu0 %vm525_vm1, %v16807_v51  ;;  %v4235_v51 = vld [vmem:[%s16500_s7 + $0x38] sm:$0xff] }
 0x659   : > { %10195 = vmatmul.mubr.msk.f32.gmra.mrb[10].mxu0 %vm525_vm1, %v13487_v7  ;;  %v16850_v7 = vld [vmem:[#allocation60_spill] sm:$0xff] }
 0x65a   : > { %10197 = vmatprep.mubr.msk.f32.mxu0 %vm525_vm1, %v16808_v22  ;;  %v14125_v22 = vpack.c.bf16 %v4235_v51, %v4234_v25 }
 0x65d   : > { %10198 = vmatmul.mubr.msk.f32.gmra.mrb[12].mxu0 %vm525_vm1, %v13500_v11  ;;  %v16852_v11 = vld [vmem:[#allocation62_spill] sm:$0xff] }
 0x65e   : > { %10200 = vmatprep.mubr.msk.f32.mxu0 %vm525_vm1, %v16809_v38  ;;  %v14133_v38 = vld [vmem:[%s16499_s6] ss:$0 sm:$0xff] }
 0x661   : > { %10201 = vmatmul.mubr.msk.f32.gmra.mrb[14].mxu0 %vm525_vm1, %v13513_v47  ;;  %v16853_v47 = vld [vmem:[#allocation9_spill] sm:$0xff] }
 0x662   : > { %10203 = vmatprep.mubr.msk.f32.mxu0 %vm525_vm1, %v16845_v36 }
 0x665   : > { %10204 = vmatmul.mubr.msk.f32.gmra.mrb[16].mxu0 %vm525_vm1, %v13526_v16  ;;  %v16854_v16 = vld [vmem:[#allocation49_spill] sm:$0xff] }
 0x666   : > { %10206 = vmatprep.mubr.msk.f32.mxu0 %vm525_vm1, %v16846_v21 }
 0x669   : > { %10207 = vmatmul.mubr.msk.f32.gmra.mrb[18].mxu0 %vm525_vm1, %v13539_v14  ;;  %v16855_v14 = vld [vmem:[#allocation50_spill] sm:$0xff] }
 0x66a   : > { %10209 = vmatprep.mubr.msk.f32.mxu0 %vm525_vm1, %v16812_v58 }
 0x66d   : > { %10210 = vmatmul.mubr.msk.f32.gmra.mrb[20].mxu0 %vm525_vm1, %v16847_v17 }
 0x66e   : > { %10212 = vmatprep.mubr.msk.f32.mxu0 %vm525_vm1, %v16848_v26 }
 0x671   : > { %10213 = vmatmul.mubr.msk.f32.gmra.mrb[22].mxu0 %vm525_vm1, %v13565_v56  ;;  %v11998_v56 = vld [vmem:[%s12275_s20] sm:$0xff] }
 0x672   : > { %10215 = vmatprep.mubr.msk.f32.mxu0 %vm525_vm1, %v16814_v28 }
 0x675   : > { %10216 = vmatmul.mubr.msk.f32.gmra.mrb[24].mxu0 %vm525_vm1, %v16849_v23 }
 0x676   : > { %10218 = vmatprep.mubr.msk.f32.mxu0 %vm525_vm1, %v16850_v7 }
 0x679   : > { %10219 = vmatmul.mubr.msk.f32.gmra.mrb[26].mxu0 %vm525_vm1, %v13591_v41  ;;  %v4228_v41 = vld [vmem:[%s16500_s7] sm:$0xff] }
 0x67a   : > { %10221 = vmatprep.mubr.msk.f32.mxu0 %vm525_vm1, %v16851_v30 }
 0x67d   : > { %10222 = vmatmul.mubr.msk.f32.gmra.mrb[28].mxu0 %vm525_vm1, %v16852_v11 }
 0x67e   : > { %10224 = vmatprep.mubr.msk.f32.mxu0 %vm525_vm1, %v13610_v59  ;;  %v4229_v59 = vld [vmem:[%s16500_s7 + $0x8] sm:$0xff] }
 0x67f   : > { %v14099_v49 = vpack.c.bf16 %v4229_v59, %v4228_v41 }
 0x681   : > { %10225 = vmatmul.mubr.msk.f32.gmra.mrb[30].mxu0 %vm525_vm1, %v13615_v15  ;;  %v4230_v15 = vld [vmem:[%s16500_s7 + $0x10] sm:$0xff]  ;;  %11023 = vmatpush3.bf16.msra.mxu1 %v14099_v49 }
 0x682   : > { %10227 = vmatprep.mubr.msk.f32.mxu0 %vm525_vm1, %v13869_v42  ;;  %v14105_v12 = vpack.c.bf16 %v4231_v8, %v4230_v15  ;;  %11024 = vmatprep.subr.bf16.mxu1 %v16856_v54 }
 0x685   : > { %10228 = vmatmul.mubr.msk.f32.gmra.mrb[32].mxu0 %vm525_vm1, %v16853_v47  ;;  %11026 = vmatpush3.bf16.msra.mxu1 %v14105_v12 }
 0x686   : > { %10230 = vmatprep.mubr.msk.f32.mxu0 %vm525_vm1, %v16854_v16  ;;  %11027 = vmatprep.subr.bf16.mxu1 %v16856_v54 }
 0x689   : > { %10231 = vmatmul.mubr.msk.f32.gmra.mrb[34].mxu0 %vm525_vm1, %v16855_v14  ;;  %11029 = vmatpush3.bf16.msra.mxu1 %v14115_v18 }
 0x68a   : > { %10877 = vmatprep.mubr.msk.f32.mxu0 %vm525_vm1, %v11998_v56  ;;  %11030 = vmatprep.subr.bf16.mxu1 %v16856_v54 }
 0x68d   : > { %11032 = vmatpush3.bf16.msra.mxu1 %v14125_v22 }
 0x68e   : > { %11033 = vmatprep.subr.bf16.mxu1 %v16856_v54 }
 0x720   : > { %v10187_v28 = vpop.f32.mrb[4].mxu0 }
 0x721   : > { %v14136_v42 = vadd.f32 %v10187_v28, %v14133_v38  ;;  %v3928_v58 = vpop.f32.mrb[5].mxu0 }
 0x722   : > { %v14139_v55 = vadd.f32 %v14133_v38, %v3928_v58 }
 0x723   : > { %v4160_v31 = vsel %vm4158_vm5, %v14136_v42, 0.0 }
 0x724   : > { %v4159_v3 = vsel %vm4158_vm5, %v14139_v55, 0.0  ;;  %v10190_v35 = vpop.f32.mrb[6].mxu0 }
 0x725   : > { %v3938_v63 = vpop.f32.mrb[7].mxu0  ;;  %v14146_v43 = vadd.f32 %v10190_v35, %v14133_v38  ;;  %v4161_v24 = vadd.f32 %v4160_v31, %v4159_v3 }
 0x726   : > { %v14149_v10 = vadd.f32 %v14133_v38, %v3938_v63 }
 0x727   : > { %v4164_v46 = vsel %vm4158_vm5, %v14146_v43, 0.0 }
 0x728   : > { %v4162_v62 = vsel %vm4158_vm5, %v14149_v10, 0.0  ;;  %v10193_v52 = vpop.f32.mrb[8].mxu0 }
 0x729   : > { %v4163_v6 = vadd.f32 %v4162_v62, %v4161_v24  ;;  %v3948_v32 = vpop.f32.mrb[9].mxu0  ;;  %v14156_v9 = vadd.f32 %v10193_v52, %v14133_v38 }
 0x72a   : > { %v14159_v48 = vadd.f32 %v14133_v38, %v3948_v32 }
 0x72b   : > { %v4165_v53 = vadd.f32 %v4164_v46, %v4163_v6  ;;  %v4168_v40 = vsel %vm4158_vm5, %v14156_v9, 0.0 }
 0x72c   : > { %v4166_v5 = vsel %vm4158_vm5, %v14159_v48, 0.0  ;;  %v10196_v60 = vpop.f32.mrb[10].mxu0 }
 0x72d   : > { %v4167_v57 = vadd.f32 %v4166_v5, %v4165_v53  ;;  %v3958_v4 = vpop.f32.mrb[11].mxu0  ;;  %v14166_v45 = vadd.f32 %v10196_v60, %v14133_v38 }
 0x72e   : > { %v14169_v29 = vadd.f32 %v14133_v38, %v3958_v4 }
 0x72f   : > { %v4169_v50 = vadd.f32 %v4168_v40, %v4167_v57  ;;  %v4172_v2 = vsel %vm4158_vm5, %v14166_v45, 0.0 }
 0x730   : > { %v4170_v1 = vsel %vm4158_vm5, %v14169_v29, 0.0  ;;  %v10199_v34 = vpop.f32.mrb[12].mxu0 }
 0x731   : > { %v4171_v33 = vadd.f32 %v4170_v1, %v4169_v50  ;;  %v3968_v37 = vpop.f32.mrb[13].mxu0  ;;  %v14176_v44 = vadd.f32 %v10199_v34, %v14133_v38 }
 0x732   : > { %v14179_v39 = vadd.f32 %v14133_v38, %v3968_v37 }
 0x733   : > { %v4173_v36 = vadd.f32 %v4172_v2, %v4171_v33  ;;  %v4176_v7 = vsel %vm4158_vm5, %v14176_v44, 0.0 }
 0x734   : > { %v4174_v21 = vsel %vm4158_vm5, %v14179_v39, 0.0  ;;  %v10202_v17 = vpop.f32.mrb[14].mxu0 }
 0x735   : > { %v4175_v26 = vadd.f32 %v4174_v21, %v4173_v36  ;;  %v3978_v23 = vpop.f32.mrb[15].mxu0  ;;  %v14186_v30 = vadd.f32 %v10202_v17, %v14133_v38 }
 0x736   : > { %v14189_v11 = vadd.f32 %v14133_v38, %v3978_v23 }
 0x737   : > { %v4177_v47 = vadd.f32 %v4176_v7, %v4175_v26  ;;  %v4180_v8 = vsel %vm4158_vm5, %v14186_v30, 0.0 }
 0x738   : > { %v4178_v56 = vsel %vm4158_vm5, %v14189_v11, 0.0  ;;  %v10205_v41 = vpop.f32.mrb[16].mxu0 }
 0x739   : > { %v4179_v59 = vadd.f32 %v4178_v56, %v4177_v47  ;;  %v3988_v15 = vpop.f32.mrb[17].mxu0  ;;  %v14196_v20 = vadd.f32 %v10205_v41, %v14133_v38 }
 0x73a   : > { %v14199_v61 = vadd.f32 %v14133_v38, %v3988_v15 }
 0x73b   : > { %v4181_v25 = vadd.f32 %v4180_v8, %v4179_v59  ;;  %v4184_v3 = vsel %vm4158_vm5, %v14196_v20, 0.0 }
 0x73c   : > { %v4182_v51 = vsel %vm4158_vm5, %v14199_v61, 0.0  ;;  %v10208_v28 = vpop.f32.mrb[18].mxu0 }
 0x73d   : > { %v4183_v58 = vadd.f32 %v4182_v51, %v4181_v25  ;;  %v3998_v31 = vpop.f32.mrb[19].mxu0  ;;  %v14206_v35 = vadd.f32 %v10208_v28, %v14133_v38 }
 0x73e   : > { %v14209_v63 = vadd.f32 %v14133_v38, %v3998_v31 }
 0x73f   : > { %v4185_v24 = vadd.f32 %v4184_v3, %v4183_v58  ;;  %v4188_v46 = vsel %vm4158_vm5, %v14206_v35, 0.0 }
 0x740   : > { %v4186_v62 = vsel %vm4158_vm5, %v14209_v63, 0.0  ;;  %v10211_v52 = vpop.f32.mrb[20].mxu0 }
 0x741   : > { %v4187_v6 = vadd.f32 %v4186_v62, %v4185_v24  ;;  %v4008_v32 = vpop.f32.mrb[21].mxu0  ;;  %v14216_v53 = vadd.f32 %v10211_v52, %v14133_v38 }
 0x742   : > { %v14219_v5 = vadd.f32 %v14133_v38, %v4008_v32 }
 0x743   : > { %v4189_v60 = vadd.f32 %v4188_v46, %v4187_v6  ;;  %v4192_v1 = vsel %vm4158_vm5, %v14216_v53, 0.0 }
 0x744   : > { %v4190_v57 = vsel %vm4158_vm5, %v14219_v5, 0.0  ;;  %v10214_v4 = vpop.f32.mrb[22].mxu0 }
 0x745   : > { %v4191_v40 = vadd.f32 %v4190_v57, %v4189_v60  ;;  %v4018_v50 = vpop.f32.mrb[23].mxu0  ;;  %v14226_v34 = vadd.f32 %v10214_v4, %v14133_v38 }
 0x746   : > { %v14229_v33 = vadd.f32 %v14133_v38, %v4018_v50 }
 0x747   : > { %v4193_v37 = vadd.f32 %v4192_v1, %v4191_v40  ;;  %v4196_v26 = vsel %vm4158_vm5, %v14226_v34, 0.0 }
 0x748   : > { %v4194_v2 = vsel %vm4158_vm5, %v14229_v33, 0.0  ;;  %v10217_v36 = vpop.f32.mrb[24].mxu0 }
 0x749   : > { %v4195_v21 = vadd.f32 %v4194_v2, %v4193_v37  ;;  %v4028_v17 = vpop.f32.mrb[25].mxu0  ;;  %v14236_v23 = vadd.f32 %v10217_v36, %v14133_v38 }
 0x74a   : > { %v14239_v7 = vadd.f32 %v14133_v38, %v4028_v17 }
 0x74b   : > { %v4197_v47 = vadd.f32 %v4196_v26, %v4195_v21  ;;  %v4200_v8 = vsel %vm4158_vm5, %v14236_v23, 0.0 }
 0x74c   : > { %v4198_v56 = vsel %vm4158_vm5, %v14239_v7, 0.0  ;;  %v10220_v41 = vpop.f32.mrb[26].mxu0 }
 0x74d   : > { %v4199_v59 = vadd.f32 %v4198_v56, %v4197_v47  ;;  %v4038_v15 = vpop.f32.mrb[27].mxu0  ;;  %v14246_v25 = vadd.f32 %v10220_v41, %v14133_v38 }
 0x74e   : > { %v14249_v51 = vadd.f32 %v14133_v38, %v4038_v15 }
 0x74f   : > { %v4201_v28 = vadd.f32 %v4200_v8, %v4199_v59  ;;  %v4204_v62 = vsel %vm4158_vm5, %v14246_v25, 0.0 }
 0x750   : > { %v4202_v58 = vsel %vm4158_vm5, %v14249_v51, 0.0  ;;  %v10223_v31 = vpop.f32.mrb[28].mxu0 }
 0x751   : > { %v4203_v3 = vadd.f32 %v4202_v58, %v4201_v28  ;;  %v4048_v24 = vpop.f32.mrb[29].mxu0  ;;  %v14256_v52 = vadd.f32 %v10223_v31, %v14133_v38 }
 0x752   : > { %v14259_v6 = vadd.f32 %v14133_v38, %v4048_v24 }
 0x753   : > { %v4205_v32 = vadd.f32 %v4204_v62, %v4203_v3  ;;  %v4208_v40 = vsel %vm4158_vm5, %v14256_v52, 0.0 }
 0x754   : > { %v4206_v46 = vsel %vm4158_vm5, %v14259_v6, 0.0  ;;  %v10226_v60 = vpop.f32.mrb[30].mxu0 }
 0x755   : > { %v4207_v57 = vadd.f32 %v4206_v46, %v4205_v32  ;;  %v4058_v4 = vpop.f32.mrb[31].mxu0  ;;  %v14266_v50 = vadd.f32 %v10226_v60, %v14133_v38 }
 0x756   : > { %v14269_v1 = vadd.f32 %v14133_v38, %v4058_v4 }
 0x757   : > { %v4209_v37 = vadd.f32 %v4208_v40, %v4207_v57  ;;  %v4212_v26 = vsel %vm4158_vm5, %v14266_v50, 0.0 }
 0x758   : > { %v4210_v2 = vsel %vm4158_vm5, %v14269_v1, 0.0  ;;  %v10229_v36 = vpop.f32.mrb[32].mxu0 }
 0x759   : > { %v4211_v21 = vadd.f32 %v4210_v2, %v4209_v37  ;;  %v4068_v17 = vpop.f32.mrb[33].mxu0  ;;  %v14276_v47 = vadd.f32 %v10229_v36, %v14133_v38  ;;  %v4309_v2 = vld [vmem:[%s16501_s8] sm:$0xff] }
 0x75a   : > { %v14279_v56 = vadd.f32 %v14133_v38, %v4068_v17 }
 0x75b   : > { %v4213_v41 = vadd.f32 %v4212_v26, %v4211_v21  ;;  %v4216_v58 = vsel %vm4158_vm5, %v14276_v47, 0.0  ;;  %v4311_v26 = vld [vmem:[%s16501_s8 + $0x10] sm:$0xff] }
 0x75c   : > { %v4214_v59 = vsel %vm4158_vm5, %v14279_v56, 0.0  ;;  %v10232_v15 = vpop.f32.mrb[34].mxu0 }
 0x75d   : > { %v4215_v8 = vadd.f32 %v4214_v59, %v4213_v41  ;;  %v4078_v28 = vpop.f32.mrb[35].mxu0  ;;  %v14286_v31 = vadd.f32 %v10232_v15, %v14133_v38  ;;  %v4312_v41 = vld [vmem:[%s16501_s8 + $0x18] sm:$0xff]  ;;  %v16857_v15 = vmov 0.0  }
 0x75e   : > { %v14289_v3 = vadd.f32 %v14133_v38, %v4078_v28  ;;  %v4310_v38 = vld [vmem:[%s16501_s8 + $0x8] sm:$0xff]  ;;  %v14311_v59 = vpack.c.bf16 %v4312_v41, %v4311_v26 }
 0x75f   : > { %v4217_v24 = vadd.f32 %v4216_v58, %v4215_v8  ;;  %v4220_v46 = vsel %vm4158_vm5, %v14286_v31, 0.0  ;;  %v14301_v21 = vpack.c.bf16 %v4310_v38, %v4309_v2 }
 0x760   : > { %v4218_v62 = vsel %vm4158_vm5, %v14289_v3, 0.0 }
 0x761   : > { %v4219_v32 = vadd.f32 %v4218_v62, %v4217_v24  ;;  %v16858_v62 = vld [vmem:[#allocation7_spill] sm:$0xff] }
 0x763   : > { %v4221_v60 = vadd.f32 %v4220_v46, %v4219_v32 }
 0x765   : > { %v4222_v57 = vrot.slane %v4221_v60, 4 }
 0x767   : > { %v4223_v4 = vadd.f32 %v4222_v57, %v4221_v60 }
 0x769   : > { %v4224_v40 = vrot.slane %v4223_v4, 2 }
 0x76b   : > { %v4225_v37 = vadd.f32 %v4224_v40, %v4223_v4 }
 0x76d   : > { %v4226_v36 = vrot.slane %v4225_v37, 1 }
 0x76f   : > { %v4227_v17 = vadd.f32 %v4226_v36, %v4225_v37 }
 0x771   : > { %10250 = vmatmul.mubr.msk.f32.vlgmr.msra.gmra.mrb[4].mxu1 %vm4158_vm5, %v4227_v17 }
 0x772   : > { %11035 = vmatpush3.bf16.msra.mxu1 %v14301_v21  ;;  %10260 = vmatprep.mubr.msk.f32.mxu1 %vm12095_vm0, %v16857_v15 }
 0x773   : > { %11036 = vmatprep.subr.bf16.mxu1 %v16856_v54 }
 0x776   : > { %11038 = vmatpush3.bf16.msra.mxu1 %v14311_v59 }
 0x777   : > { %11039 = vmatprep.subr.bf16.mxu1 %v16856_v54 }
 0x844   : > { %v4305_v8 = vpop.f32.mrb[4].mxu1 }
 0x845   : > { %v10251_v28 = vpop.f32.mrb[5].mxu1  ;;  %10261 = vmatmul.mubr.msk.f32.vlgmr.msra.gmra.mrb[6].mxu1 %vm525_vm1, %v4305_v8 }
 0x846   : > { %11041 = vmatpush3.bf16.msra.mxu1 %v14099_v49  ;;  %10279 = vmatprep.mubr.msk.f32.mxu1 %vm12095_vm0, %v16857_v15 }
 0x847   : > { %11042 = vmatprep.subr.bf16.mxu1 %v16856_v54 }
 0x84a   : > { %11044 = vmatpush3.bf16.msra.mxu1 %v14105_v12 }
 0x84b   : > { %11045 = vmatprep.subr.bf16.mxu1 %v16856_v54 }
 0x84e   : > { %11047 = vmatpush3.bf16.msra.mxu1 %v14115_v18 }
 0x84f   : > { %11048 = vmatprep.subr.bf16.mxu1 %v16856_v54 }
 0x852   : > { %11050 = vmatpush3.bf16.msra.mxu1 %v14125_v22 }
 0x853   : > { %11051 = vmatprep.subr.bf16.mxu1 %v16856_v54 }
 0x918   : > { %v4382_v58 = vpop.f32.mrb[6].mxu1 }
 0x919   : > { %v10262_v24 = vpop.f32.mrb[7].mxu1  ;;  %v4386_v49 = vmul.f32 0.001953125, %v4382_v58 }
 0x91b   : > { %v14330_v32 = vrot.slane %v4386_v49, %v16858_v62 }
 0x91d   : > { %v14334_v46 = vsub.f32 %v14139_v55, %v14330_v32  ;;  %v14338_v12 = vsub.f32 %v14136_v42, %v14330_v32  ;;  %v14342_v18 = vsub.f32 %v14149_v10, %v14330_v32  ;;  %v14346_v22 = vsub.f32 %v14146_v43, %v14330_v32 }
 0x91e   : > { %v14354_v55 = vsub.f32 %v14159_v48, %v14330_v32  ;;  %v14360_v10 = vsub.f32 %v14156_v9, %v14330_v32  ;;  %v14368_v2 = vsub.f32 %v14169_v29, %v14330_v32  ;;  %v14375_v9 = vsub.f32 %v14166_v45, %v14330_v32 }
 0x91f   : > { %v4423_v60 = vmul.f32 %v14334_v46, %v14334_v46  ;;  %v4424_v57 = vmul.f32 %v14338_v12, %v14338_v12  ;;  %v4425_v42 = vmul.f32 %v14342_v18, %v14342_v18  ;;  %v4426_v43 = vmul.f32 %v14346_v22, %v14346_v22 }
 0x920   : > { %v4427_v48 = vmul.f32 %v14354_v55, %v14354_v55  ;;  %v4428_v17 = vmul.f32 %v14360_v10, %v14360_v10  ;;  %v14382_v29 = vsub.f32 %v14179_v39, %v14330_v32  ;;  %v4429_v8 = vmul.f32 %v14368_v2, %v14368_v2 }
 0x921   : > { %v4455_v4 = vsel %vm4158_vm5, %v4423_v60, 0.0  ;;  %v4456_v40 = vsel %vm4158_vm5, %v4424_v57, 0.0  ;;  %v4458_v38 = vsel %vm4158_vm5, %v4425_v42, 0.0  ;;  %v4460_v26 = vsel %vm4158_vm5, %v4426_v43, 0.0 }
 0x922   : > { %v4457_v37 = vadd.f32 %v4456_v40, %v4455_v4  ;;  %v4462_v28 = vsel %vm4158_vm5, %v4427_v48, 0.0  ;;  %v14389_v45 = vsub.f32 %v14176_v44, %v14330_v32  ;;  %v4430_v24 = vmul.f32 %v14375_v9, %v14375_v9 }
 0x923   : > { %v4464_v49 = vsel %vm4158_vm5, %v4428_v17, 0.0  ;;  %v14396_v39 = vsub.f32 %v14189_v11, %v14330_v32  ;;  %v4431_v57 = vmul.f32 %v14382_v29, %v14382_v29  ;;  %v4466_v42 = vsel %vm4158_vm5, %v4429_v8, 0.0 }
 0x924   : > { %v4459_v36 = vadd.f32 %v4458_v38, %v4457_v37  ;;  %v14403_v44 = vsub.f32 %v14186_v30, %v14330_v32  ;;  %v4432_v4 = vmul.f32 %v14389_v45, %v14389_v45  ;;  %v4468_v40 = vsel %vm4158_vm5, %v4430_v24, 0.0 }
 0x925   : > { %v14410_v11 = vsub.f32 %v14199_v61, %v14330_v32  ;;  %v4433_v48 = vmul.f32 %v14396_v39, %v14396_v39  ;;  %v4470_v38 = vsel %vm4158_vm5, %v4431_v57, 0.0  ;;  %v14417_v30 = vsub.f32 %v14196_v20, %v14330_v32 }
 0x926   : > { %v4461_v41 = vadd.f32 %v4460_v26, %v4459_v36  ;;  %v4434_v17 = vmul.f32 %v14403_v44, %v14403_v44  ;;  %v4472_v26 = vsel %vm4158_vm5, %v4432_v4, 0.0  ;;  %v14424_v61 = vsub.f32 %v14209_v63, %v14330_v32 }
 0x927   : > { %v4435_v8 = vmul.f32 %v14410_v11, %v14410_v11  ;;  %v14431_v20 = vsub.f32 %v14206_v35, %v14330_v32  ;;  %v4436_v24 = vmul.f32 %v14417_v30, %v14417_v30  ;;  %v14438_v63 = vsub.f32 %v14219_v5, %v14330_v32 }
 0x928   : > { %v4463_v58 = vadd.f32 %v4462_v28, %v4461_v41  ;;  %v4474_v28 = vsel %vm4158_vm5, %v4433_v48, 0.0  ;;  %v4437_v57 = vmul.f32 %v14424_v61, %v14424_v61  ;;  %v14445_v35 = vsub.f32 %v14216_v53, %v14330_v32 }
 0x929   : > { %v4438_v4 = vmul.f32 %v14431_v20, %v14431_v20  ;;  %v14452_v5 = vsub.f32 %v14229_v33, %v14330_v32  ;;  %v4439_v48 = vmul.f32 %v14438_v63, %v14438_v63  ;;  %v14459_v53 = vsub.f32 %v14226_v34, %v14330_v32 }
 0x92a   : > { %v4465_v60 = vadd.f32 %v4464_v49, %v4463_v58  ;;  %v4476_v49 = vsel %vm4158_vm5, %v4434_v17, 0.0  ;;  %v4440_v17 = vmul.f32 %v14445_v35, %v14445_v35  ;;  %v14466_v33 = vsub.f32 %v14239_v7, %v14330_v32 }
 0x92b   : > { %v14473_v34 = vsub.f32 %v14236_v23, %v14330_v32  ;;  %v14480_v7 = vsub.f32 %v14249_v51, %v14330_v32  ;;  %v14487_v23 = vsub.f32 %v14246_v25, %v14330_v32  ;;  %v14494_v51 = vsub.f32 %v14259_v6, %v14330_v32 }
 0x92c   : > { %v4467_v43 = vadd.f32 %v4466_v42, %v4465_v60  ;;  %v4478_v42 = vsel %vm4158_vm5, %v4435_v8, 0.0  ;;  %v4441_v8 = vmul.f32 %v14452_v5, %v14452_v5  ;;  %v14501_v25 = vsub.f32 %v14256_v52, %v14330_v32 }
 0x92d   : > { %v14508_v6 = vsub.f32 %v14269_v1, %v14330_v32  ;;  %v14515_v52 = vsub.f32 %v14266_v50, %v14330_v32  ;;  %v14522_v1 = vsub.f32 %v14279_v56, %v14330_v32  ;;  %v14529_v50 = vsub.f32 %v14276_v47, %v14330_v32 }
 0x92e   : > { %v4469_v37 = vadd.f32 %v4468_v40, %v4467_v43  ;;  %v4480_v40 = vsel %vm4158_vm5, %v4436_v24, 0.0  ;;  %v4442_v24 = vmul.f32 %v14459_v53, %v14459_v53  ;;  %v14536_v56 = vsub.f32 %v14289_v3, %v14330_v32 }
 0x92f   : > { %v14543_v47 = vsub.f32 %v14286_v31, %v14330_v32 }
 0x930   : > { %v4471_v36 = vadd.f32 %v4470_v38, %v4469_v37  ;;  %v4482_v38 = vsel %vm4158_vm5, %v4437_v57, 0.0  ;;  %v4443_v57 = vmul.f32 %v14466_v33, %v14466_v33  ;;  %v4453_v3 = vmul.f32 %v14536_v56, %v14536_v56 }
 0x932   : > { %v4473_v41 = vadd.f32 %v4472_v26, %v4471_v36  ;;  %v4484_v26 = vsel %vm4158_vm5, %v4438_v4, 0.0  ;;  %v4444_v4 = vmul.f32 %v14473_v34, %v14473_v34  ;;  %v4514_v31 = vsel %vm4158_vm5, %v4453_v3, 0.0  ;;  %v5172_v3 = vld [vmem:[%s16504_s11 + $0x68] sm:$0xff] }
 0x934   : > { %v4475_v58 = vadd.f32 %v4474_v28, %v4473_v41  ;;  %v4486_v28 = vsel %vm4158_vm5, %v4439_v48, 0.0  ;;  %v4445_v48 = vmul.f32 %v14480_v7, %v14480_v7 }
 0x936   : > { %v4477_v60 = vadd.f32 %v4476_v49, %v4475_v58  ;;  %v4488_v49 = vsel %vm4158_vm5, %v4440_v17, 0.0  ;;  %v4446_v17 = vmul.f32 %v14487_v23, %v14487_v23 }
 0x938   : > { %v4479_v43 = vadd.f32 %v4478_v42, %v4477_v60  ;;  %v4490_v42 = vsel %vm4158_vm5, %v4441_v8, 0.0  ;;  %v4447_v8 = vmul.f32 %v14494_v51, %v14494_v51 }
 0x93a   : > { %v4481_v37 = vadd.f32 %v4480_v40, %v4479_v43  ;;  %v4492_v40 = vsel %vm4158_vm5, %v4442_v24, 0.0  ;;  %v4448_v24 = vmul.f32 %v14501_v25, %v14501_v25 }
 0x93c   : > { %v4483_v36 = vadd.f32 %v4482_v38, %v4481_v37  ;;  %v4494_v38 = vsel %vm4158_vm5, %v4443_v57, 0.0  ;;  %v4449_v57 = vmul.f32 %v14508_v6, %v14508_v6 }
 0x93e   : > { %v4485_v41 = vadd.f32 %v4484_v26, %v4483_v36  ;;  %v4496_v26 = vsel %vm4158_vm5, %v4444_v4, 0.0  ;;  %v4450_v4 = vmul.f32 %v14515_v52, %v14515_v52 }
 0x940   : > { %v4487_v58 = vadd.f32 %v4486_v28, %v4485_v41  ;;  %v4498_v28 = vsel %vm4158_vm5, %v4445_v48, 0.0  ;;  %v4451_v48 = vmul.f32 %v14522_v1, %v14522_v1 }
 0x942   : > { %v4489_v60 = vadd.f32 %v4488_v49, %v4487_v58  ;;  %v4500_v49 = vsel %vm4158_vm5, %v4446_v17, 0.0  ;;  %v4452_v17 = vmul.f32 %v14529_v50, %v14529_v50 }
 0x944   : > { %v4491_v43 = vadd.f32 %v4490_v42, %v4489_v60  ;;  %v4502_v42 = vsel %vm4158_vm5, %v4447_v8, 0.0  ;;  %v4510_v8 = vsel %vm4158_vm5, %v4451_v48, 0.0 }
 0x946   : > { %v4493_v37 = vadd.f32 %v4492_v40, %v4491_v43  ;;  %v4504_v40 = vsel %vm4158_vm5, %v4448_v24, 0.0  ;;  %v4512_v24 = vsel %vm4158_vm5, %v4452_v17, 0.0  ;;  %v5167_v17 = vld [vmem:[%s16504_s11 + $0x40] sm:$0xff] }
 0x948   : > { %v4495_v36 = vadd.f32 %v4494_v38, %v4493_v37  ;;  %v4506_v38 = vsel %vm4158_vm5, %v4449_v57, 0.0 }
 0x94a   : > { %v4497_v41 = vadd.f32 %v4496_v26, %v4495_v36  ;;  %v4508_v26 = vsel %vm4158_vm5, %v4450_v4, 0.0 }
 0x94c   : > { %v4499_v58 = vadd.f32 %v4498_v28, %v4497_v41 }
 0x94e   : > { %v4501_v60 = vadd.f32 %v4500_v49, %v4499_v58  ;;  %v4454_v58 = vmul.f32 %v14543_v47, %v14543_v47 }
 0x950   : > { %v4503_v43 = vadd.f32 %v4502_v42, %v4501_v60  ;;  %v4516_v60 = vsel %vm4158_vm5, %v4454_v58, 0.0  ;;  %v5174_v58 = vld [vmem:[%s16504_s11 + $0x78] sm:$0xff] }
 0x952   : > { %v4505_v37 = vadd.f32 %v4504_v40, %v4503_v43 }
 0x954   : > { %v4507_v36 = vadd.f32 %v4506_v38, %v4505_v37 }
 0x956   : > { %v4509_v41 = vadd.f32 %v4508_v26, %v4507_v36 }
 0x958   : > { %v4511_v28 = vadd.f32 %v4510_v8, %v4509_v41  ;;  %v5171_v41 = vld [vmem:[%s16504_s11 + $0x60] sm:$0xff] }
 0x959   : > { %v11065_v8 = vpack.c.bf16 %v5172_v3, %v5171_v41 }
 0x95a   : > { %v4513_v49 = vadd.f32 %v4512_v24, %v4511_v28  ;;  %v5173_v28 = vld [vmem:[%s16504_s11 + $0x70] sm:$0xff] }
 0x95b   : > { %v11069_v24 = vpack.c.bf16 %v5174_v58, %v5173_v28  ;;  %v14628_v28 = vld [vmem:[%s16503_s10] ss:$0 sm:$0xff] }
 0x95c   : > { %v4515_v32 = vadd.f32 %v4514_v31, %v4513_v49  ;;  %v5054_v49 = vld [vmem:[%s16504_s11] sm:$0xff]  ;;  %v5055_v31 = vld [vmem:[%s16504_s11 + $0x8] sm:$0xff] }
 0x95e   : > { %v4517_v57 = vadd.f32 %v4516_v60, %v4515_v32  ;;  %v11073_v32 = vpack.c.bf16 %v5055_v31, %v5054_v49  ;;  %v5056_v60 = vld [vmem:[%s16504_s11 + $0x10] sm:$0xff] }
 0x960   : > { %v4518_v42 = vrot.slane %v4517_v57, 4 }
 0x962   : > { %v4519_v43 = vadd.f32 %v4518_v42, %v4517_v57  ;;  %v5057_v57 = vld [vmem:[%s16504_s11 + $0x18] sm:$0xff] }
 0x963   : > { %v11077_v42 = vpack.c.bf16 %v5057_v57, %v5056_v60 }
 0x964   : > { %v4520_v4 = vrot.slane %v4519_v43, 2 }
 0x966   : > { %v4521_v40 = vadd.f32 %v4520_v4, %v4519_v43 }
 0x968   : > { %v4522_v37 = vrot.slane %v4521_v40, 1 }
 0x96a   : > { %v4523_v38 = vadd.f32 %v4522_v37, %v4521_v40  ;;  %v5058_v40 = vld [vmem:[%s16504_s11 + $0x20] sm:$0xff]  ;;  %v5059_v37 = vld [vmem:[%s16504_s11 + $0x28] sm:$0xff] }
 0x96c   : > { %10280 = vmatmul.mubr.msk.f32.vlgmr.msra.gmra.mrb[8].mxu1 %vm4158_vm5, %v4523_v38 }
 0x96d   : > { %11053 = vmatpush3.bf16.msra.mxu1 %v14301_v21  ;;  %10290 = vmatprep.mubr.msk.f32.mxu1 %vm12095_vm0, %v16857_v15  ;;  %v5168_v21 = vld [vmem:[%s16504_s11 + $0x48] sm:$0xff]  ;;  %v5170_v15 = vld [vmem:[%s16504_s11 + $0x58] sm:$0xff] }
 0x96e   : > { %11054 = vmatprep.subr.bf16.mxu1 %v16856_v54  ;;  %v5169_v54 = vld [vmem:[%s16504_s11 + $0x50] sm:$0xff] }
 0x96f   : > { %v11061_v26 = vpack.c.bf16 %v5170_v15, %v5169_v54  ;;  %v4673_v15 = vld [vmem:[%s16502_s9] sm:$0x1] }
 0x971   : > { %11056 = vmatpush3.bf16.msra.mxu1 %v14311_v59  ;;  %v11057_v59 = vpack.c.bf16 %v5168_v21, %v5167_v17  ;;  %v5060_v17 = vld [vmem:[%s16504_s11 + $0x30] sm:$0xff]  ;;  %v5061_v21 = vld [vmem:[%s16504_s11 + $0x38] sm:$0xff] }
 0x972   : > { %v11085_v54 = vpack.c.bf16 %v5061_v21, %v5060_v17 }
 0x973   : > { %11058 = vmatprep.subr.bf16.mxu1 %v11057_v59 }
 0xa3f   : > { %v4593_v48 = vpop.f32.mrb[8].mxu1 }
 0xa40   : > { %v10281_v36 = vpop.f32.mrb[9].mxu1  ;;  %10291 = vmatmul.mubr.msk.f32.vlgmr.msra.gmra.mrb[10].mxu1 %vm525_vm1, %v4593_v48  ;;  %v11081_v48 = vpack.c.bf16 %v5059_v37, %v5058_v40 }
 0xa41   : > { %10309 = vmatprep.mubr.msk.f32.mxu1 %vm4158_vm5, %v16843_v0  ;;  %11060 = vmatpush3.bf16.msra.mxu1 %v11057_v59 }
 0xa42   : > { %11062 = vmatprep.subr.bf16.mxu1 %v11061_v26 }
 0xa45   : > { %11064 = vmatpush3.bf16.msra.mxu1 %v11061_v26 }
 0xa46   : > { %11066 = vmatprep.subr.bf16.mxu1 %v11065_v8 }
 0xa49   : > { %11068 = vmatpush3.bf16.msra.mxu1 %v11065_v8 }
 0xa4a   : > { %11070 = vmatprep.subr.bf16.mxu1 %v11069_v24 }
 0xa4d   : > { %11072 = vmatpush3.bf16.msra.mxu1 %v11069_v24 }
 0xa4e   : > { %11074 = vmatprep.subr.bf16.mxu1 %v11073_v32 }
 0xa50   : > { %10310 = vmatmul.mubr.msk.f32.vlgmr.msra.gmra.mrb[12].mxu1 %vm4158_vm5, %v16844_v19 }
 0xa51   : > { %11076 = vmatpush3.bf16.msra.mxu1 %v11073_v32 }
 0xa52   : > { %11078 = vmatprep.subr.bf16.mxu1 %v11077_v42 }
 0xa55   : > { %11080 = vmatpush3.bf16.msra.mxu1 %v11077_v42 }
 0xa56   : > { %11082 = vmatprep.subr.bf16.mxu1 %v11081_v48 }
 0xa59   : > { %11084 = vmatpush3.bf16.msra.mxu1 %v11081_v48 }
 0xa5a   : > { %11086 = vmatprep.subr.bf16.mxu1 %v11085_v54 }
 0xa5d   : > { %11088 = vmatpush3.bf16.msra.mxu1 %v11085_v54 }
 0xb13   : > { %v4666_v43 = vpop.f32.mrb[10].mxu1 }
 0xb14   : > { %v10292_v4 = vpop.f32.mrb[11].mxu1  ;;  %v4670_v38 = vmul.f32 0.001953125, %v4666_v43 }
 0xb16   : > { %v4671_v36 = vadd.f32 1e-06, %v4670_v38 }
 0xb18   : > { %11931 = vrsqrt.f32 %v4671_v36 }
 0xb22   : > { %v11932_v59 = vpop.eup %11931 }
 0xb23   : > { %v4674_v26 = vmul.f32 %v11932_v59, %v4673_v15 }
 0xb25   : > { %v14619_v41 = vrot.slane %v4674_v26, %v16858_v62  ;;  %v5828_v62 = vld [vmem:[%s16504_s11 + $0x80] sm:$0xff] }
 0xb27   : > { %v4709_v3 = vmul.f32 %v14619_v41, %v14536_v56  ;;  %v4710_v8 = vmul.f32 %v14619_v41, %v14543_v47  ;;  %v5829_v56 = vld [vmem:[%s16504_s11 + $0x88] sm:$0xff]  ;;  %v4679_v49 = vmul.f32 %v14619_v41, %v14334_v46  ;;  %v4680_v31 = vmul.f32 %v14619_v41, %v14338_v12 }
 0xb28   : > { %v14642_v47 = vpack.c.bf16 %v5829_v56, %v5828_v62  ;;  %v4681_v32 = vmul.f32 %v14619_v41, %v14342_v18  ;;  %v4682_v60 = vmul.f32 %v14619_v41, %v14346_v22  ;;  %v4683_v57 = vmul.f32 %v14619_v41, %v14354_v55 }
 0xb29   : > { %v14631_v58 = vadd.f32 %v14628_v28, %v4709_v3  ;;  %v14634_v24 = vadd.f32 %v14628_v28, %v4710_v8  ;;  %v14656_v42 = vadd.f32 %v14628_v28, %v4679_v49  ;;  %v4684_v43 = vmul.f32 %v14619_v41, %v14360_v10 }
 0xb2a   : > { %16860 = vst [vmem:[#allocation17_spill] sm:$0xff] %v14642_v47  ;;  %11090 = vmatprep.subr.bf16.mxu1 %v14642_v47  ;;  %v4685_v46 = vmul.f32 %v14619_v41, %v14368_v2  ;;  %v4686_v12 = vmul.f32 %v14619_v41, %v14375_v9  ;;  %v14665_v18 = vadd.f32 %v14628_v28, %v4680_v31 }
 0xb2b   : > { %16859 = vst [vmem:[#allocation16_spill] sm:$0xff] %v14634_v24  ;;  %v4687_v22 = vmul.f32 %v14619_v41, %v14382_v29  ;;  %v4688_v55 = vmul.f32 %v14619_v41, %v14389_v45  ;;  %v4689_v4 = vmul.f32 %v14619_v41, %v14396_v39  ;;  %v14674_v10 = vadd.f32 %v14628_v28, %v4681_v32 }
 0xb2c   : > { %v4690_v2 = vmul.f32 %v14619_v41, %v14403_v44  ;;  %v4691_v9 = vmul.f32 %v14619_v41, %v14410_v11  ;;  %v4692_v40 = vmul.f32 %v14619_v41, %v14417_v30  ;;  %v14683_v29 = vadd.f32 %v14628_v28, %v4682_v60 }
 0xb2d   : > { %v4693_v45 = vmul.f32 %v14619_v41, %v14424_v61  ;;  %v4694_v39 = vmul.f32 %v14619_v41, %v14431_v20  ;;  %v14690_v37 = vadd.f32 %v14628_v28, %v4683_v57  ;;  %v4750_v44 = vmul.f32 0.5, %v14656_v42 }
 0xb2e   : > { %v4695_v11 = vmul.f32 %v14619_v41, %v14438_v63  ;;  %v4696_v30 = vmul.f32 %v14619_v41, %v14445_v35  ;;  %v14698_v38 = vadd.f32 %v14628_v28, %v4684_v43  ;;  %v4751_v48 = vmul.f32 0.5, %v14665_v18 }
 0xb2f   : > { %v4697_v61 = vmul.f32 %v14619_v41, %v14452_v5  ;;  %v4698_v20 = vmul.f32 %v14619_v41, %v14459_v53  ;;  %v14706_v36 = vadd.f32 %v14628_v28, %v4685_v46  ;;  %v4752_v17 = vmul.f32 0.5, %v14674_v10 }
 0xb30   : > { %v4699_v63 = vmul.f32 %v14619_v41, %v14466_v33  ;;  %v4700_v35 = vmul.f32 %v14619_v41, %v14473_v34  ;;  %v14714_v21 = vadd.f32 %v14628_v28, %v4686_v12  ;;  %v4753_v54 = vmul.f32 0.5, %v14683_v29 }
 0xb31   : > { %v4701_v5 = vmul.f32 %v14619_v41, %v14480_v7  ;;  %v14720_v53 = vadd.f32 %v14628_v28, %v4687_v22  ;;  %v4754_v59 = vmul.f32 0.5, %v14690_v37  ;;  %11933 = vtanh.f32 %v4750_v44 }
 0xb32   : > { %v4702_v33 = vmul.f32 %v14619_v41, %v14487_v23  ;;  %v14726_v15 = vadd.f32 %v14628_v28, %v4688_v55  ;;  %v4755_v34 = vmul.f32 0.5, %v14698_v38  ;;  %11935 = vtanh.f32 %v4751_v48 }
 0xb33   : > { %v4703_v26 = vmul.f32 %v14619_v41, %v14494_v51  ;;  %v4704_v7 = vmul.f32 %v14619_v41, %v14501_v25  ;;  %v4756_v3 = vmul.f32 0.5, %v14706_v36  ;;  %11937 = vtanh.f32 %v4752_v17 }
 0xb34   : > { %v4705_v8 = vmul.f32 %v14619_v41, %v14508_v6  ;;  %v14737_v23 = vadd.f32 %v14628_v28, %v4689_v4  ;;  %v4757_v62 = vmul.f32 0.5, %v14714_v21  ;;  %11939 = vtanh.f32 %v4753_v54 }
 0xb35   : > { %v4706_v56 = vmul.f32 %v14619_v41, %v14515_v52  ;;  %v14743_v51 = vadd.f32 %v14628_v28, %v4690_v2  ;;  %v4758_v25 = vmul.f32 0.5, %v14720_v53  ;;  %11941 = vtanh.f32 %v4754_v59 }
 0xb36   : > { %v4707_v49 = vmul.f32 %v14619_v41, %v14522_v1  ;;  %v4708_v6 = vmul.f32 %v14619_v41, %v14529_v50  ;;  %v4759_v31 = vmul.f32 0.5, %v14726_v15  ;;  %11943 = vtanh.f32 %v4755_v34 }
 0xb37   : > { %v14752_v32 = vadd.f32 %v14628_v28, %v4691_v9  ;;  %v14755_v52 = vadd.f32 %v14628_v28, %v4692_v40  ;;  %v14758_v60 = vadd.f32 %v14628_v28, %v4693_v45  ;;  %11945 = vtanh.f32 %v4756_v3 }
 0xb38   : > { %v14761_v57 = vadd.f32 %v14628_v28, %v4694_v39  ;;  %v14764_v1 = vadd.f32 %v14628_v28, %v4695_v11  ;;  %v4760_v50 = vmul.f32 0.5, %v14737_v23  ;;  %11947 = vtanh.f32 %v4757_v62 }
 0xb39   : > { %v14768_v41 = vadd.f32 %v14628_v28, %v4696_v30  ;;  %v14771_v43 = vadd.f32 %v14628_v28, %v4697_v61  ;;  %v4761_v46 = vmul.f32 0.5, %v14743_v51  ;;  %11949 = vtanh.f32 %v4758_v25 }
 0xb3a   : > { %v14775_v12 = vadd.f32 %v14628_v28, %v4698_v20  ;;  %v14778_v22 = vadd.f32 %v14628_v28, %v4699_v63  ;;  %v14781_v55 = vadd.f32 %v14628_v28, %v4700_v35  ;;  %11951 = vtanh.f32 %v4759_v31 }
 0xb3b   : > { %v11934_v4 = vpop.eup %11933  ;;  %v14784_v2 = vadd.f32 %v14628_v28, %v4701_v5  ;;  %v14787_v9 = vadd.f32 %v14628_v28, %v4702_v33  ;;  %v14790_v40 = vadd.f32 %v14628_v28, %v4703_v26  ;;  %v4762_v45 = vmul.f32 0.5, %v14752_v32 }
 0xb3c   : > { %v11936_v39 = vpop.eup %11935  ;;  %v14794_v44 = vadd.f32 %v14628_v28, %v4704_v7  ;;  %v14797_v11 = vadd.f32 %v14628_v28, %v4705_v8  ;;  %v14800_v30 = vadd.f32 %v14628_v28, %v4706_v56  ;;  %11953 = vtanh.f32 %v4760_v50 }
 0xb3d   : > { %16861 = vst [vmem:[#allocation18_spill] sm:$0xff] %v14790_v40  ;;  %v11938_v48 = vpop.eup %11937  ;;  %v14803_v61 = vadd.f32 %v14628_v28, %v4707_v49  ;;  %v14806_v20 = vadd.f32 %v14628_v28, %v4708_v6  ;;  %v4763_v17 = vmul.f32 0.5, %v14755_v52  ;;  %11955 = vtanh.f32 %v4761_v46 }
 0xb3e   : > { %16862 = vst [vmem:[#allocation19_spill] sm:$0xff] %v14794_v44  ;;  %16863 = vst [vmem:[#allocation28_spill] sm:$0xff] %v14797_v11  ;;  %v11940_v63 = vpop.eup %11939  ;;  %v4764_v35 = vmul.f32 0.5, %v14758_v60  ;;  %v4765_v54 = vmul.f32 0.5, %v14761_v57  ;;  %v4766_v5 = vmul.f32 0.5, %v14764_v1  ;;  %v4767_v59 = vmul.f32 0.5, %v14768_v41 }
 0xb3f   : > { %16864 = vst [vmem:[#allocation29_spill] sm:$0xff] %v14800_v30  ;;  %16865 = vst [vmem:[#allocation30_spill] sm:$0xff] %v14803_v61  ;;  %v11942_v33 = vpop.eup %11941  ;;  %v4768_v34 = vmul.f32 0.5, %v14771_v43  ;;  %v4769_v26 = vmul.f32 0.5, %v14775_v12  ;;  %v4770_v28 = vmul.f32 0.5, %v14778_v22  ;;  %11957 = vtanh.f32 %v4762_v45 }
 0xb40   : > { %16866 = vst [vmem:[#allocation31_spill] sm:$0xff] %v14806_v20  ;;  %v11944_v7 = vpop.eup %11943  ;;  %v4771_v3 = vmul.f32 0.5, %v14781_v55  ;;  %v4814_v8 = vmul.f32 0.5, %v11934_v4  ;;  %v4815_v62 = vmul.f32 0.5, %v11936_v39  ;;  %v4816_v56 = vmul.f32 0.5, %v11938_v48 }
 0xb41   : > { %v11946_v25 = vpop.eup %11945  ;;  %v4772_v49 = vmul.f32 0.5, %v14784_v2  ;;  %v4773_v6 = vmul.f32 0.5, %v14787_v9  ;;  %11959 = vtanh.f32 %v4763_v17  ;;  %v4817_v31 = vmul.f32 0.5, %v11940_v63 }
 0xb42   : > { %v11948_v50 = vpop.eup %11947  ;;  %v4774_v46 = vmul.f32 0.5, %v14790_v40  ;;  %v4775_v19 = vmul.f32 0.5, %v14794_v44  ;;  %v14822_v45 = vmul.f32 0.5, %v14797_v11  ;;  %v4818_v0 = vmul.f32 0.5, %v11942_v33 }
 0xb43   : > { %v11950_v14 = vpop.eup %11949  ;;  %v14825_v4 = vmul.f32 0.5, %v14800_v30  ;;  %v14828_v39 = vmul.f32 0.5, %v14803_v61  ;;  %11961 = vtanh.f32 %v4764_v35  ;;  %v4819_v48 = vmul.f32 0.5, %v11944_v7 }
 0xb44   : > { %v11952_v17 = vpop.eup %11951  ;;  %v14831_v63 = vmul.f32 0.5, %v14806_v20  ;;  %v4846_v16 = vadd.f32 0.5, %v4814_v8  ;;  %v4847_v47 = vadd.f32 0.5, %v4815_v62  ;;  %v4848_v27 = vadd.f32 0.5, %v4816_v56 }
 0xb45   : > { %v14834_v13 = vmul.f32 0.5, %v14631_v58  ;;  %11963 = vtanh.f32 %v4765_v54  ;;  %v4820_v33 = vmul.f32 0.5, %v11946_v25  ;;  %v4849_v11 = vadd.f32 0.5, %v4817_v31 }
 0xb46   : > { %v11954_v30 = vpop.eup %11953  ;;  %v14837_v44 = vmul.f32 0.5, %v14634_v24  ;;  %11965 = vtanh.f32 %v4766_v5  ;;  %v4821_v35 = vmul.f32 0.5, %v11948_v50  ;;  %v4850_v7 = vadd.f32 0.5, %v4818_v0 }
 0xb47   : > { %v11956_v61 = vpop.eup %11955  ;;  %11967 = vtanh.f32 %v4767_v59  ;;  %v4822_v20 = vmul.f32 0.5, %v11950_v14  ;;  %v4823_v40 = vmul.f32 0.5, %v11952_v17  ;;  %v4851_v8 = vadd.f32 0.5, %v4819_v48 }
 0xb48   : > { %11969 = vtanh.f32 %v4768_v34  ;;  %v4878_v62 = vmul.f32 %v4846_v16, %v14656_v42  ;;  %v4879_v56 = vmul.f32 %v4847_v47, %v14665_v18  ;;  %v4880_v54 = vmul.f32 %v4848_v27, %v14674_v10 }
 0xb49   : > { %v11958_v25 = vpop.eup %11957  ;;  %11971 = vtanh.f32 %v4769_v26  ;;  %v4824_v31 = vmul.f32 0.5, %v11954_v30  ;;  %v4852_v24 = vadd.f32 0.5, %v4820_v33  ;;  %v4881_v5 = vmul.f32 %v4849_v11, %v14683_v29 }
 0xb4a   : > { %11973 = vtanh.f32 %v4770_v28  ;;  %v4825_v0 = vmul.f32 0.5, %v11956_v61  ;;  %v4853_v50 = vadd.f32 0.5, %v4821_v35  ;;  %v4882_v14 = vmul.f32 %v4850_v7, %v14690_v37 }
 0xb4b   : > { %v11960_v59 = vpop.eup %11959  ;;  %11975 = vtanh.f32 %v4771_v3  ;;  %v4854_v34 = vadd.f32 0.5, %v4822_v20  ;;  %v4855_v48 = vadd.f32 0.5, %v4823_v40  ;;  %v14845_v16 = vmul.f32 %v4851_v8, %v14698_v38 }
 0xb4c   : > { %11977 = vtanh.f32 %v4772_v49  ;;  %v4826_v27 = vmul.f32 0.5, %v11958_v25  ;;  %v4942_v47 = vrot.slane %v4878_v62, 7  ;;  %v4945_v42 = vrot.slane %v4880_v54, 7 }
 0xb4d   : > { %v11962_v18 = vpop.eup %11961  ;;  %11979 = vtanh.f32 %v4773_v6  ;;  %v4856_v10 = vadd.f32 0.5, %v4824_v31  ;;  %v14848_v29 = vmul.f32 %v4852_v24, %v14706_v36  ;;  %v4946_v11 = vrot.slane %v4881_v5, 7 }
 0xb4e   : > { %11981 = vtanh.f32 %v4774_v46  ;;  %v4827_v37 = vmul.f32 0.5, %v11960_v59  ;;  %v4857_v30 = vadd.f32 0.5, %v4825_v0  ;;  %v14851_v61 = vmul.f32 %v4853_v50, %v14714_v21 }
 0xb4f   : > { %v11964_v40 = vpop.eup %11963  ;;  %11983 = vtanh.f32 %v4775_v19  ;;  %v14854_v38 = vmul.f32 %v4854_v34, %v14720_v53  ;;  %v14857_v20 = vmul.f32 %v4855_v48, %v14726_v15  ;;  %v4943_v26 = vrot.slane %v4879_v56, 7 }
 0xb50   : > { %v11966_v28 = vpop.eup %11965  ;;  %v4828_v3 = vmul.f32 0.5, %v11962_v18  ;;  %v4858_v24 = vadd.f32 0.5, %v4826_v27  ;;  %v14860_v36 = vsel %vm1306_vm2, 0.0, %v4942_v47  ;;  %v14863_v49 = vsel %vm1306_vm2, 0.0, %v4945_v42 }
 0xb51   : > { %v11968_v21 = vpop.eup %11967  ;;  %v14866_v6 = vmul.f32 %v4856_v10, %v14737_v23  ;;  %v14869_v19 = vsel %vm1306_vm2, %v4945_v42, %v4946_v11  ;;  %v4948_v53 = vrot.slane %v4882_v14, 7  ;;  %v4949_v15 = vrot.slane %v14845_v16, 7 }
 0xb52   : > { %v11970_v46 = vpop.eup %11969  ;;  %11985 = vtanh.f32 %v14822_v45  ;;  %v4829_v17 = vmul.f32 0.5, %v11964_v40  ;;  %v4859_v33 = vadd.f32 0.5, %v4827_v37  ;;  %v14874_v35 = vmul.f32 %v4857_v30, %v14743_v51 }
 0xb53   : > { %v11972_v7 = vpop.eup %11971  ;;  %v14877_v8 = vsel %vm1306_vm2, %v4942_v47, %v4943_v26  ;;  %v5092_v23 = vrot.slane %v14860_v36, 1  ;;  %v14881_v62 = vsel %vm1306_vm2, %v4943_v26, 0.0  ;;  %v5097_v56 = vrot.slane %v14863_v49, 1 }
 0xb54   : > { %v14884_v54 = vpop.eup %11973  ;;  %v5093_v45 = vrot.slane %v14877_v8, 1  ;;  %v5095_v25 = vrot.slane %v14881_v62, 1  ;;  %v5098_v51 = vrot.slane %v14869_v19, 1  ;;  %v14890_v31 = vsel %vm1306_vm2, %v4946_v11, 0.0 }
 0xb55   : > { %v14892_v5 = vpop.eup %11975  ;;  %v14895_v0 = vsel %vm1306_vm2, %v4948_v53, %v4949_v15  ;;  %v4951_v50 = vrot.slane %v14848_v29, 7  ;;  %v4952_v14 = vrot.slane %v14851_v61, 7  ;;  %v14900_v59 = vsel %vm1306_vm2, 0.0, %v4948_v53 }
 0xb56   : > { %v14902_v34 = vpop.eup %11977  ;;  %11987 = vtanh.f32 %v14825_v4  ;;  %v4830_v48 = vmul.f32 0.5, %v11966_v28  ;;  %v14906_v16 = vsel %vm1460_vm3, %v5092_v23, %v5093_v45  ;;  %v14909_v27 = vsel %vm1460_vm3, %v5093_v45, %v5095_v25 }
 0xb57   : > { %v14911_v47 = vpop.eup %11979  ;;  %11989 = vtanh.f32 %v14828_v39  ;;  %v4860_v42 = vadd.f32 0.5, %v4828_v3  ;;  %v14915_v18 = vmul.f32 %v4858_v24, %v14752_v32  ;;  %10312 = vmatprep.mubr.msk.f32.mxu1 %vm4158_vm5, %v14906_v16  ;;  %v5100_v4 = vrot.slane %v14890_v31, 1 }
 0xb58   : > { %v14920_v10 = vpop.eup %11981  ;;  %10313 = vmatmul.mubr.msk.f32.gmra.mrb[14].mxu1 %vm4158_vm5, %v14909_v27  ;;  %v14925_v29 = vsel %vm1460_vm3, %v5097_v56, %v5098_v51  ;;  %v5102_v11 = vrot.slane %v14900_v59, 1  ;;  %v5103_v39 = vrot.slane %v14895_v0, 1  ;;  %v14930_v32 = vsel %vm1306_vm2, %v4949_v15, 0.0 }
 0xb59   : > { %16867 = vst [vmem:[#allocation44_spill] sm:$0xff] %v14925_v29  ;;  %v14932_v37 = vpop.eup %11983  ;;  %v14935_v30 = vsel %vm1306_vm2, %v4951_v50, %v4952_v14  ;;  %v4954_v61 = vrot.slane %v14854_v38, 7  ;;  %v4955_v40 = vrot.slane %v14857_v20, 7  ;;  %v14940_v26 = vsel %vm1306_vm2, 0.0, %v4951_v50  ;;  %10315 = vmatprep.mubr.msk.f32.mxu1 %vm4158_vm5, %v14925_v29 }
 0xb5a   : > { %11991 = vtanh.f32 %v14831_v63  ;;  %v4831_v28 = vmul.f32 0.5, %v11968_v21  ;;  %v4861_v3 = vadd.f32 0.5, %v4829_v17  ;;  %v14946_v24 = vmul.f32 %v4859_v33, %v14755_v52 }
 0xb5b   : > { %v4832_v53 = vmul.f32 0.5, %v11970_v46  ;;  %v4862_v15 = vadd.f32 0.5, %v4830_v48  ;;  %v14949_v23 = vsel %vm1460_vm3, %v5098_v51, %v5100_v4  ;;  %v5105_v38 = vrot.slane %v14930_v32, 1 }
 0xb5c   : > { %16868 = vst [vmem:[#allocation48_spill] sm:$0xff] %v14949_v23  ;;  %v14952_v20 = vpop.eup %11985  ;;  %10316 = vmatmul.mubr.msk.f32.gmra.mrb[16].mxu1 %vm4158_vm5, %v14949_v23  ;;  %v14957_v56 = vsel %vm1460_vm3, %v5102_v11, %v5103_v39  ;;  %v5107_v63 = vrot.slane %v14940_v26, 1  ;;  %v5108_v52 = vrot.slane %v14935_v30, 1  ;;  %v14962_v21 = vsel %vm1306_vm2, %v4952_v14, 0.0 }
 0xb5d   : > { %16869 = vst [vmem:[#allocation14_spill] sm:$0xff] %v14957_v56  ;;  %v14965_v46 = vsel %vm1306_vm2, %v4954_v61, %v4955_v40  ;;  %v4957_v17 = vrot.slane %v14866_v6, 7  ;;  %v4958_v33 = vrot.slane %v14874_v35, 7  ;;  %v14970_v45 = vsel %vm1306_vm2, 0.0, %v4954_v61  ;;  %10318 = vmatprep.mubr.msk.f32.mxu1 %vm4158_vm5, %v14957_v56  ;;  %v16889_v56 = vld [vmem:[#allocation31_spill] sm:$0xff] }
 0xb5e   : > { %11993 = vtanh.f32 %v14834_v13  ;;  %v4833_v25 = vmul.f32 0.5, %v11972_v7  ;;  %v4863_v51 = vadd.f32 0.5, %v4831_v28  ;;  %v4892_v50 = vmul.f32 %v4860_v42, %v14758_v60 }
 0xb5f   : > { %11995 = vtanh.f32 %v14837_v44  ;;  %v14978_v14 = vmul.f32 %v4861_v3, %v14761_v57  ;;  %v14981_v6 = vsel %vm1460_vm3, %v5103_v39, %v5105_v38  ;;  %v5110_v35 = vrot.slane %v14962_v21, 1 }
 0xb60   : > { %16870 = vst [vmem:[#allocation15_spill] sm:$0xff] %v14981_v6  ;;  %v14984_v48 = vpop.eup %11987  ;;  %10319 = vmatmul.mubr.msk.f32.gmra.mrb[18].mxu1 %vm4158_vm5, %v14981_v6  ;;  %v14989_v13 = vsel %vm1460_vm3, %v5107_v63, %v5108_v52  ;;  %v5112_v60 = vrot.slane %v14970_v45, 1  ;;  %v5113_v44 = vrot.slane %v14965_v46, 1  ;;  %v14994_v57 = vsel %vm1306_vm2, %v4955_v40, 0.0 }
 0xb61   : > { %16871 = vst [vmem:[#allocation51_spill] sm:$0xff] %v14989_v13  ;;  %v14996_v7 = vpop.eup %11989  ;;  %v14999_v42 = vsel %vm1306_vm2, %v4957_v17, %v4958_v33  ;;  %v4960_v4 = vrot.slane %v14915_v18, 7  ;;  %v4961_v11 = vrot.slane %v14946_v24, 7  ;;  %v15004_v39 = vsel %vm1306_vm2, 0.0, %v4957_v17  ;;  %10321 = vmatprep.mubr.msk.f32.mxu1 %vm4158_vm5, %v14989_v13 }
 0xb62   : > { %v4834_v61 = vmul.f32 0.5, %v14884_v54  ;;  %v4835_v40 = vmul.f32 0.5, %v14892_v5  ;;  %v4864_v28 = vadd.f32 0.5, %v4832_v53  ;;  %v4894_v3 = vmul.f32 %v4862_v15, %v14764_v1 }
 0xb63   : > { %v4865_v38 = vadd.f32 0.5, %v4833_v25  ;;  %v15012_v63 = vmul.f32 %v4863_v51, %v14768_v41  ;;  %v15015_v18 = vsel %vm1460_vm3, %v5108_v52, %v5110_v35  ;;  %v5115_v24 = vrot.slane %v14994_v57, 1 }
 0xb64   : > { %16872 = vst [vmem:[#allocation52_spill] sm:$0xff] %v15015_v18  ;;  %v15018_v17 = vpop.eup %11991  ;;  %10322 = vmatmul.mubr.msk.f32.gmra.mrb[20].mxu1 %vm4158_vm5, %v15015_v18  ;;  %v15023_v54 = vsel %vm1460_vm3, %v5112_v60, %v5113_v44  ;;  %v5117_v5 = vrot.slane %v15004_v39, 1  ;;  %v5118_v1 = vrot.slane %v14999_v42, 1  ;;  %v15028_v41 = vsel %vm1306_vm2, %v4958_v33, 0.0 }
 0xb65   : > { %16873 = vst [vmem:[#allocation55_spill] sm:$0xff] %v15023_v54  ;;  %v15031_v53 = vsel %vm1306_vm2, %v4960_v4, %v4961_v11  ;;  %v4963_v15 = vrot.slane %v4892_v50, 7  ;;  %v4964_v52 = vrot.slane %v14978_v14, 7  ;;  %v15035_v25 = vsel %vm1306_vm2, 0.0, %v4960_v4  ;;  %10324 = vmatprep.mubr.msk.f32.mxu1 %vm4158_vm5, %v15023_v54 }
 0xb66   : > { %v4836_v51 = vmul.f32 0.5, %v14902_v34  ;;  %v4837_v35 = vmul.f32 0.5, %v14911_v47  ;;  %v4866_v60 = vadd.f32 0.5, %v4834_v61  ;;  %v4896_v33 = vmul.f32 %v4864_v28, %v14771_v43 }
 0xb67   : > { %v4867_v18 = vadd.f32 0.5, %v4835_v40  ;;  %v15043_v13 = vmul.f32 %v4865_v38, %v14775_v12  ;;  %v15046_v50 = vsel %vm1460_vm3, %v5113_v44, %v5115_v24  ;;  %v5120_v14 = vrot.slane %v15028_v41, 1 }
 0xb68   : > { %16874 = vst [vmem:[#allocation58_spill] sm:$0xff] %v15046_v50  ;;  %v15049_v4 = vpop.eup %11993  ;;  %10325 = vmatmul.mubr.msk.f32.gmra.mrb[22].mxu1 %vm4158_vm5, %v15046_v50  ;;  %v15054_v34 = vsel %vm1460_vm3, %v5117_v5, %v5118_v1  ;;  %v5122_v47 = vrot.slane %v15035_v25, 1  ;;  %v5123_v43 = vrot.slane %v15031_v53, 1  ;;  %v15059_v12 = vsel %vm1306_vm2, %v4961_v11, 0.0 }
 0xb69   : > { %16875 = vst [vmem:[#allocation42_spill] sm:$0xff] %v15054_v34  ;;  %v15061_v61 = vpop.eup %11995  ;;  %v15064_v44 = vsel %vm1306_vm2, %v4963_v15, %v4964_v52  ;;  %v4966_v40 = vrot.slane %v4894_v3, 7  ;;  %v4967_v28 = vrot.slane %v15012_v63, 7  ;;  %v15068_v38 = vsel %vm1306_vm2, 0.0, %v4963_v15  ;;  %10327 = vmatprep.mubr.msk.f32.mxu1 %vm4158_vm5, %v15054_v34 }
 0xb6a   : > { %v4838_v24 = vmul.f32 0.5, %v14920_v10  ;;  %v4839_v5 = vmul.f32 0.5, %v14932_v37  ;;  %v4868_v11 = vadd.f32 0.5, %v4836_v51  ;;  %v4898_v50 = vmul.f32 %v4866_v60, %v14778_v22 }
 0xb6b   : > { %v4869_v54 = vadd.f32 0.5, %v4837_v35  ;;  %v4899_v6 = vmul.f32 %v4867_v18, %v14781_v55  ;;  %v15077_v3 = vsel %vm1460_vm3, %v5118_v1, %v5120_v14  ;;  %v5125_v63 = vrot.slane %v15059_v12, 1 }
 0xb6c   : > { %16876 = vst [vmem:[#allocation45_spill] sm:$0xff] %v15077_v3  ;;  %10328 = vmatmul.mubr.msk.f32.gmra.mrb[24].mxu1 %vm4158_vm5, %v15077_v3  ;;  %v15083_v15 = vsel %vm1460_vm3, %v5122_v47, %v5123_v43  ;;  %v5127_v10 = vrot.slane %v15068_v38, 1  ;;  %v5128_v37 = vrot.slane %v15064_v44, 1  ;;  %v15088_v22 = vsel %vm1306_vm2, %v4964_v52, 0.0 }
 0xb6d   : > { %16877 = vst [vmem:[#allocation46_spill] sm:$0xff] %v15083_v15  ;;  %v15091_v55 = vsel %vm1306_vm2, %v4966_v40, %v4967_v28  ;;  %v4969_v18 = vrot.slane %v4896_v33, 7  ;;  %v4970_v1 = vrot.slane %v15043_v13, 7  ;;  %v15095_v51 = vsel %vm1306_vm2, 0.0, %v4966_v40  ;;  %10330 = vmatprep.mubr.msk.f32.mxu1 %vm4158_vm5, %v15083_v15 }
 0xb6e   : > { %v4840_v35 = vmul.f32 0.5, %v14952_v20  ;;  %v4841_v60 = vmul.f32 0.5, %v14984_v48  ;;  %v4870_v14 = vadd.f32 0.5, %v4838_v24  ;;  %v4900_v52 = vmul.f32 %v4868_v11, %v14784_v2 }
 0xb6f   : > { %v4871_v47 = vadd.f32 0.5, %v4839_v5  ;;  %v4901_v3 = vmul.f32 %v4869_v54, %v14787_v9  ;;  %v15104_v33 = vsel %vm1460_vm3, %v5123_v43, %v5125_v63  ;;  %v5130_v13 = vrot.slane %v15088_v22, 1 }
 0xb70   : > { %16878 = vst [vmem:[#allocation20_spill] sm:$0xff] %v15104_v33  ;;  %10331 = vmatmul.mubr.msk.f32.gmra.mrb[26].mxu1 %vm4158_vm5, %v15104_v33  ;;  %v15110_v40 = vsel %vm1460_vm3, %v5127_v10, %v5128_v37  ;;  %v5132_v20 = vrot.slane %v15095_v51, 1  ;;  %v5133_v48 = vrot.slane %v15091_v55, 1  ;;  %v15115_v2 = vsel %vm1306_vm2, %v4967_v28, 0.0  ;;  %v16880_v10 = vld [vmem:[#allocation18_spill] sm:$0xff] }
 0xb71   : > { %16879 = vst [vmem:[#allocation21_spill] sm:$0xff] %v15110_v40  ;;  %v15118_v9 = vsel %vm1306_vm2, %v4969_v18, %v4970_v1  ;;  %v4972_v54 = vrot.slane %v4898_v50, 7  ;;  %v4973_v43 = vrot.slane %v4899_v6, 7  ;;  %v15121_v24 = vsel %vm1306_vm2, 0.0, %v4969_v18  ;;  %10333 = vmatprep.mubr.msk.f32.mxu1 %vm4158_vm5, %v15110_v40 }
 0xb72   : > { %v4842_v5 = vmul.f32 0.5, %v14996_v7  ;;  %v4843_v11 = vmul.f32 0.5, %v15018_v17  ;;  %v4872_v63 = vadd.f32 0.5, %v4840_v35  ;;  %v4902_v33 = vmul.f32 %v4870_v14, %v16880_v10  ;;  %v16883_v35 = vld [vmem:[#allocation19_spill] sm:$0xff] }
 0xb73   : > { %v4873_v28 = vadd.f32 0.5, %v4841_v60  ;;  %v4975_v15 = vrot.slane %v4900_v52, 7  ;;  %v15129_v34 = vsel %vm1460_vm3, %v5128_v37, %v5130_v13  ;;  %v5135_v6 = vrot.slane %v15115_v2, 1 }
 0xb74   : > { %16881 = vst [vmem:[#allocation22_spill] sm:$0xff] %v15129_v34  ;;  %10334 = vmatmul.mubr.msk.f32.gmra.mrb[28].mxu1 %vm4158_vm5, %v15129_v34  ;;  %v15135_v50 = vsel %vm1460_vm3, %v5132_v20, %v5133_v48  ;;  %v5137_v7 = vrot.slane %v15121_v24, 1  ;;  %v5138_v17 = vrot.slane %v15118_v9, 1  ;;  %v15140_v18 = vsel %vm1306_vm2, %v4970_v1, 0.0 }
 0xb75   : > { %16882 = vst [vmem:[#allocation23_spill] sm:$0xff] %v15135_v50  ;;  %v4903_v60 = vmul.f32 %v4871_v47, %v16883_v35  ;;  %v15144_v37 = vsel %vm1306_vm2, %v4972_v54, %v4973_v43  ;;  %v4976_v14 = vrot.slane %v4901_v3, 7  ;;  %v15147_v52 = vsel %vm1306_vm2, 0.0, %v4972_v54  ;;  %10336 = vmatprep.mubr.msk.f32.mxu1 %vm4158_vm5, %v15135_v50  ;;  %v16887_v50 = vld [vmem:[#allocation29_spill] sm:$0xff] }
 0xb76   : > { %v4874_v13 = vadd.f32 0.5, %v4842_v5  ;;  %v4875_v20 = vadd.f32 0.5, %v4843_v11  ;;  %v4978_v10 = vrot.slane %v4902_v33, 7  ;;  %v15152_v34 = vsel %vm1306_vm2, 0.0, %v4975_v15  ;;  %v16886_v11 = vld [vmem:[#allocation28_spill] sm:$0xff] }
 0xb77   : > { %v15155_v1 = vsel %vm1460_vm3, %v5133_v48, %v5135_v6  ;;  %v5140_v47 = vrot.slane %v15140_v18, 1  ;;  %v15161_v3 = vsel %vm1460_vm3, %v5137_v7, %v5138_v17  ;;  %v5142_v54 = vrot.slane %v15147_v52, 1  ;;  %v16888_v7 = vld [vmem:[#allocation30_spill] sm:$0xff] }
 0xb78   : > { %16884 = vst [vmem:[#allocation24_spill] sm:$0xff] %v15155_v1  ;;  %10337 = vmatmul.mubr.msk.f32.gmra.mrb[30].mxu1 %vm4158_vm5, %v15155_v1  ;;  %16885 = vst [vmem:[#allocation25_spill] sm:$0xff] %v15161_v3  ;;  %v5143_v5 = vrot.slane %v15144_v37, 1  ;;  %v15166_v33 = vsel %vm1306_vm2, %v4973_v43, 0.0  ;;  %v4904_v35 = vmul.f32 %v4872_v63, %v16886_v11  ;;  %v4905_v48 = vmul.f32 %v4873_v28, %v16887_v50 }
 0xb79   : > { %v15171_v6 = vsel %vm1306_vm2, %v4975_v15, %v4976_v14  ;;  %v4979_v40 = vrot.slane %v4903_v60, 7  ;;  %10339 = vmatprep.mubr.msk.f32.mxu1 %vm4158_vm5, %v15161_v3  ;;  %v4906_v1 = vmul.f32 %v4874_v13, %v16888_v7  ;;  %v4907_v23 = vmul.f32 %v4875_v20, %v16889_v56 }
 0xb7a   : > { %v15178_v29 = vsel %vm1306_vm2, 0.0, %v4978_v10  ;;  %v15181_v43 = vsel %vm1460_vm3, %v5138_v17, %v5140_v47  ;;  %v5145_v63 = vrot.slane %v15166_v33, 1  ;;  %v5147_v28 = vrot.slane %v15152_v34, 1 }
 0xb7b   : > { %16890 = vst [vmem:[#allocation26_spill] sm:$0xff] %v15181_v43  ;;  %v15188_v15 = vsel %vm1460_vm3, %v5142_v54, %v5143_v5  ;;  %v5148_v50 = vrot.slane %v15171_v6, 1  ;;  %v15192_v56 = vsel %vm1306_vm2, %v4976_v14, 0.0  ;;  %v4844_v60 = vmul.f32 0.5, %v15049_v4 }
 0xb7c   : > { %10340 = vmatmul.mubr.msk.f32.gmra.mrb[32].mxu1 %vm4158_vm5, %v15181_v43  ;;  %16891 = vst [vmem:[#allocation27_spill] sm:$0xff] %v15188_v15  ;;  %v15196_v17 = vsel %vm1306_vm2, %v4978_v10, %v4979_v40  ;;  %v4981_v13 = vrot.slane %v4904_v35, 7  ;;  %v4982_v20 = vrot.slane %v4905_v48, 7  ;;  %v4845_v47 = vmul.f32 0.5, %v15061_v61 }
 0xb7d   : > { %10342 = vmatprep.mubr.msk.f32.mxu1 %vm4158_vm5, %v15188_v15  ;;  %v4984_v11 = vrot.slane %v4906_v1, 7  ;;  %v4876_v54 = vadd.f32 0.5, %v4844_v60  ;;  %v15202_v7 = vsel %vm1460_vm3, %v5143_v5, %v5145_v63  ;;  %v5150_v14 = vrot.slane %v15192_v56, 1 }
 0xb7e   : > { %16892 = vst [vmem:[#allocation32_spill] sm:$0xff] %v15202_v7  ;;  %v5152_v43 = vrot.slane %v15178_v29, 1  ;;  %v4877_v4 = vadd.f32 0.5, %v4845_v47  ;;  %v15209_v10 = vsel %vm1460_vm3, %v5147_v28, %v5148_v50  ;;  %v5153_v35 = vrot.slane %v15196_v17, 1  ;;  %v16894_v28 = vld [vmem:[#allocation16_spill] sm:$0xff] }
 0xb7f   : > { %16893 = vst [vmem:[#allocation33_spill] sm:$0xff] %v15209_v10  ;;  %v15213_v61 = vsel %vm1306_vm2, %v4979_v40, 0.0  ;;  %v15216_v1 = vmul.f32 %v4876_v54, %v14631_v58  ;;  %v15219_v5 = vsel %vm1306_vm2, %v4981_v13, %v4982_v20  ;;  %v4985_v48 = vrot.slane %v4907_v23, 7 }
 0xb80   : > { %10343 = vmatmul.mubr.msk.f32.gmra.mrb[34].mxu1 %vm4158_vm5, %v15202_v7  ;;  %v15222_v63 = vsel %vm1306_vm2, 0.0, %v4981_v13  ;;  %v15227_v60 = vmul.f32 %v4877_v4, %v16894_v28  ;;  %v15231_v40 = vsel %vm1460_vm3, %v5148_v50, %v5150_v14  ;;  %v5155_v58 = vrot.slane %v15213_v61, 1 }
 0xb81   : > { %10345 = vmatprep.mubr.msk.f32.mxu1 %vm4158_vm5, %v15209_v10  ;;  %v16666_v47 = vrot.slane %v15216_v1, 7  ;;  %16896 = vst [vmem:[#allocation35_spill] sm:$0xff] %v15231_v40  ;;  %v15238_v23 = vsel %vm1460_vm3, %v5152_v43, %v5153_v35  ;;  %v5157_v13 = vrot.slane %v15222_v63, 1  ;;  %v5158_v4 = vrot.slane %v15219_v5, 1 }
 0xb82   : > { %16895 = vst [vmem:[#allocation34_spill] sm:$0xff] %v15227_v60  ;;  %v16665_v54 = vrot.slane %v15227_v60, 7  ;;  %16897 = vst [vmem:[#allocation36_spill] sm:$0xff] %v15238_v23  ;;  %v15243_v28 = vsel %vm1306_vm2, %v4982_v20, 0.0  ;;  %v15246_v50 = vsel %vm1306_vm2, %v4984_v11, %v4985_v48  ;;  %v15249_v14 = vsel %vm1306_vm2, 0.0, %v4984_v11 }
 0xb83   : > { %v5160_v20 = vrot.slane %v15243_v28, 1  ;;  %v15267_v11 = vsel %vm1460_vm3, %v5157_v13, %v5158_v4  ;;  %v5163_v60 = vrot.slane %v15246_v50, 1  ;;  %v15272_v10 = vsel %vm1306_vm2, %v4985_v48, 0.0 }
 0xb84   : > { %10346 = vmatmul.mubr.msk.f32.gmra.mrb[36].mxu1 %vm4158_vm5, %v15231_v40  ;;  %v15258_v43 = vsel %vm1306_vm2, %v16666_v47, %v16665_v54  ;;  %v15261_v40 = vsel %vm1460_vm3, %v5153_v35, %v5155_v58  ;;  %16899 = vst [vmem:[#allocation38_spill] sm:$0xff] %v15267_v11  ;;  %v5165_v58 = vrot.slane %v15272_v10, 1  ;;  %v5830_v54 = vld [vmem:[%s16504_s11 + $0x90] sm:$0xff]  ;;  %v16904_v47 = vld [vmem:[#allocation10_spill] sm:$0xff]  ;;  %v5758_v7 = vrot.slane %v14863_v49, 2 }
 0xb85   : > { %10348 = vmatprep.mubr.msk.f32.mxu1 %vm4158_vm5, %v15238_v23  ;;  %16898 = vst [vmem:[#allocation37_spill] sm:$0xff] %v15261_v40  ;;  %v5162_v23 = vrot.slane %v15249_v14, 1  ;;  %v15277_v35 = vsel %vm1460_vm3, %v5158_v4, %v5160_v20  ;;  %v5831_v4 = vld [vmem:[%s16504_s11 + $0x98] sm:$0xff]  ;;  %v16903_v20 = vld [vmem:[#allocation11_spill] sm:$0xff] }
 0xb86   : > { %16900 = vst [vmem:[#allocation39_spill] sm:$0xff] %v15277_v35  ;;  %v15288_v48 = vsel %vm1460_vm3, %v5163_v60, %v5165_v58  ;;  %v5833_v58 = vld [vmem:[%s16504_s11 + $0xa8] sm:$0xff] }
 0xb87   : > { %v15283_v13 = vsel %vm1460_vm3, %v5162_v23, %v5163_v60  ;;  %16902 = vst [vmem:[#allocation41_spill] sm:$0xff] %v15288_v48  ;;  %v11093_v23 = vpack.c.bf16 %v5831_v4, %v5830_v54  ;;  %v5832_v60 = vld [vmem:[%s16504_s11 + $0xa0] sm:$0xff]  ;;  %v5834_v54 = vld [vmem:[%s16504_s11 + $0xb0] sm:$0xff]  ;;  %v5835_v4 = vld [vmem:[%s16504_s11 + $0xb8] sm:$0xff] }
 0xb88   : > { %10349 = vmatmul.mubr.msk.f32.gmra.mrb[38].mxu1 %vm4158_vm5, %v15261_v40  ;;  %16901 = vst [vmem:[#allocation40_spill] sm:$0xff] %v15283_v13 }
 0xb89   : > { %10351 = vmatprep.mubr.msk.f32.mxu1 %vm4158_vm5, %v15267_v11  ;;  %v16907_v11 = vld [vmem:[#allocation50_spill] sm:$0xff] }
 0xb8c   : > { %10352 = vmatmul.mubr.msk.f32.gmra.mrb[40].mxu1 %vm4158_vm5, %v15277_v35  ;;  %v6162_v35 = vld [vmem:[%s16504_s11 + $0xe8] sm:$0xff] }
 0xb8d   : > { %10354 = vmatprep.mubr.msk.f32.mxu1 %vm4158_vm5, %v15283_v13  ;;  %v16905_v13 = vld [vmem:[#allocation17_spill] sm:$0xff] }
 0xb90   : > { %10355 = vmatmul.mubr.msk.f32.gmra.mrb[42].mxu1 %vm4158_vm5, %v15288_v48  ;;  %v11097_v48 = vpack.c.bf16 %v5833_v58, %v5832_v60  ;;  %v6157_v60 = vld [vmem:[%s16504_s11 + $0xc0] sm:$0xff]  ;;  %v6158_v58 = vld [vmem:[%s16504_s11 + $0xc8] sm:$0xff] }
 0xb91   : > { %10373 = vmatprep.mubr.msk.f32.mxu1 %vm4158_vm5, %v16903_v20  ;;  %v6161_v20 = vld [vmem:[%s16504_s11 + $0xe0] sm:$0xff] }
 0xb94   : > { %10374 = vmatmul.mubr.msk.f32.vlgmr.msra.gmra.mrb[12].mxu1 %vm4158_vm5, %v16904_v47  ;;  %v11105_v47 = vpack.c.bf16 %v6158_v58, %v6157_v60  ;;  %v5756_v58 = vrot.slane %v14881_v62, 2  ;;  %v11113_v62 = vpack.c.bf16 %v6162_v35, %v6161_v20  ;;  %v5763_v35 = vrot.slane %v14900_v59, 2 }
 0xb95   : > { %11092 = vmatpush3.bf16.msra.mxu1 %v16905_v13  ;;  %10376 = vmatprep.mubr.msk.f32.mxu1 %vm4158_vm5, %v14860_v36  ;;  %v11101_v13 = vpack.c.bf16 %v5835_v4, %v5834_v54  ;;  %v5753_v54 = vrot.slane %v14860_v36, 2  ;;  %v5754_v4 = vrot.slane %v14877_v8, 2  ;;  %v5764_v20 = vrot.slane %v14895_v0, 2 }
 0xb96   : > { %11094 = vmatprep.subr.bf16.mxu1 %v11093_v23 }
 0xb97   : > { %v15401_v40 = vsel %vm2123_vm4, %v5753_v54, %v5754_v4  ;;  %v6163_v54 = vld [vmem:[%s16504_s11 + $0xf0] sm:$0xff] }
 0xb98   : > { %10377 = vmatmul.mubr.msk.f32.gmra.mrb[14].mxu1 %vm4158_vm5, %v14877_v8 }
 0xb99   : > { %10379 = vmatprep.mubr.msk.f32.mxu1 %vm4158_vm5, %v14863_v49  ;;  %11096 = vmatpush3.bf16.msra.mxu1 %v11093_v23  ;;  %v6160_v23 = vld [vmem:[%s16504_s11 + $0xd8] sm:$0xff] }
 0xb9a   : > { %11098 = vmatprep.subr.bf16.mxu1 %v11097_v48 }
 0xb9c   : > { %10380 = vmatmul.mubr.msk.f32.gmra.mrb[16].mxu1 %vm4158_vm5, %v14869_v19 }
 0xb9d   : > { %10382 = vmatprep.mubr.msk.f32.mxu1 %vm4158_vm5, %v14900_v59  ;;  %11100 = vmatpush3.bf16.msra.mxu1 %v11097_v48  ;;  %v6159_v48 = vld [vmem:[%s16504_s11 + $0xd0] sm:$0xff] }
 0xb9e   : > { %11102 = vmatprep.subr.bf16.mxu1 %v11101_v13  ;;  %v11109_v60 = vpack.c.bf16 %v6160_v23, %v6159_v48  ;;  %v5759_v48 = vrot.slane %v14869_v19, 2  ;;  %v15408_v23 = vsel %vm2123_vm4, %v5754_v4, %v5756_v58  ;;  %v5766_v58 = vrot.slane %v14930_v32, 2 }
 0xb9f   : > { %16908 = vst [vmem:[#allocation43_spill] sm:$0xff] %v15408_v23 }
 0xba0   : > { %10383 = vmatmul.mubr.msk.f32.gmra.mrb[18].mxu1 %vm4158_vm5, %v14895_v0 }
 0xba1   : > { %10385 = vmatprep.mubr.msk.f32.mxu1 %vm4158_vm5, %v14940_v26  ;;  %11104 = vmatpush3.bf16.msra.mxu1 %v11101_v13  ;;  %v16906_v13 = vld [vmem:[#allocation49_spill] sm:$0xff] }
 0xba2   : > { %11106 = vmatprep.subr.bf16.mxu1 %v11105_v47 }
 0xba4   : > { %10386 = vmatmul.mubr.msk.f32.gmra.mrb[20].mxu1 %vm4158_vm5, %v14935_v30 }
 0xba5   : > { %10388 = vmatprep.mubr.msk.f32.mxu1 %vm4158_vm5, %v14970_v45 }
 0xba8   : > { %10389 = vmatmul.mubr.msk.f32.gmra.mrb[22].mxu1 %vm4158_vm5, %v14965_v46 }
 0xba9   : > { %10391 = vmatprep.mubr.msk.f32.mxu1 %vm4158_vm5, %v15004_v39 }
 0xbac   : > { %10392 = vmatmul.mubr.msk.f32.gmra.mrb[24].mxu1 %vm4158_vm5, %v14999_v42 }
 0xbad   : > { %10394 = vmatprep.mubr.msk.f32.mxu1 %vm4158_vm5, %v15035_v25 }
 0xbb0   : > { %10395 = vmatmul.mubr.msk.f32.gmra.mrb[26].mxu1 %vm4158_vm5, %v15031_v53 }
 0xbb1   : > { %10397 = vmatprep.mubr.msk.f32.mxu1 %vm4158_vm5, %v15068_v38 }
 0xbb4   : > { %10398 = vmatmul.mubr.msk.f32.gmra.mrb[28].mxu1 %vm4158_vm5, %v15064_v44 }
 0xbb5   : > { %10400 = vmatprep.mubr.msk.f32.mxu1 %vm4158_vm5, %v15095_v51 }
 0xbb8   : > { %10401 = vmatmul.mubr.msk.f32.gmra.mrb[30].mxu1 %vm4158_vm5, %v15091_v55 }
 0xbb9   : > { %10403 = vmatprep.mubr.msk.f32.mxu1 %vm4158_vm5, %v15121_v24 }
 0xbbc   : > { %10404 = vmatmul.mubr.msk.f32.gmra.mrb[32].mxu1 %vm4158_vm5, %v15118_v9 }
 0xbbd   : > { %10406 = vmatprep.mubr.msk.f32.mxu1 %vm4158_vm5, %v15147_v52 }
 0xbc0   : > { %10407 = vmatmul.mubr.msk.f32.gmra.mrb[34].mxu1 %vm4158_vm5, %v15144_v37 }
 0xbc1   : > { %10409 = vmatprep.mubr.msk.f32.mxu1 %vm4158_vm5, %v15152_v34 }
 0xbc4   : > { %10410 = vmatmul.mubr.msk.f32.gmra.mrb[36].mxu1 %vm4158_vm5, %v15171_v6 }
 0xbc5   : > { %10412 = vmatprep.mubr.msk.f32.mxu1 %vm4158_vm5, %v15178_v29 }
 0xbc8   : > { %10413 = vmatmul.mubr.msk.f32.gmra.mrb[38].mxu1 %vm4158_vm5, %v15196_v17 }
 0xbc9   : > { %10415 = vmatprep.mubr.msk.f32.mxu1 %vm4158_vm5, %v15222_v63 }
 0xbcc   : > { %10416 = vmatmul.mubr.msk.f32.gmra.mrb[40].mxu1 %vm4158_vm5, %v15219_v5 }
 0xbcd   : > { %10418 = vmatprep.mubr.msk.f32.mxu1 %vm4158_vm5, %v15249_v14 }
 0xbd0   : > { %10419 = vmatmul.mubr.msk.f32.gmra.mrb[42].mxu1 %vm4158_vm5, %v15246_v50 }
 0xbd1   : > { %10437 = vmatprep.mubr.msk.f32.mxu1 %vm4158_vm5, %v16906_v13  ;;  %v5761_v13 = vrot.slane %v14890_v31, 2 }
 0xbd3   : > { %v15427_v4 = vsel %vm2123_vm4, %v5759_v48, %v5761_v13  ;;  %v5769_v13 = vrot.slane %v14935_v30, 2 }
 0xbd4   : > { %10438 = vmatmul.mubr.msk.f32.vlgmr.msra.gmra.mrb[12].mxu1 %vm4158_vm5, %v16907_v11  ;;  %v6164_v11 = vld [vmem:[%s16504_s11 + $0xf8] sm:$0xff]  ;;  %16910 = vst [vmem:[#allocation8_spill] sm:$0xff] %v15427_v4 }
 0xbd5   : > { %11108 = vmatpush3.bf16.msra.mxu1 %v11105_v47  ;;  %10440 = vmatprep.mubr.msk.f32.mxu1 %vm4158_vm5, %v15401_v40  ;;  %v15420_v47 = vsel %vm2123_vm4, %v5758_v7, %v5759_v48  ;;  %v11117_v31 = vpack.c.bf16 %v6164_v11, %v6163_v54  ;;  %v6433_v7 = vld [vmem:[%s16504_s11 + $0x100] sm:$0xff]  ;;  %v5768_v11 = vrot.slane %v14940_v26, 2  ;;  %v15448_v48 = vsel %vm2123_vm4, %v5764_v20, %v5766_v58 }
 0xbd6   : > { %11110 = vmatprep.subr.bf16.mxu1 %v11109_v60  ;;  %16909 = vst [vmem:[#allocation47_spill] sm:$0xff] %v15420_v47  ;;  %v5771_v54 = vrot.slane %v14962_v21, 2  ;;  %v5776_v21 = vrot.slane %v14994_v57, 2  ;;  %v5779_v58 = vrot.slane %v14999_v42, 2 }
 0xbd8   : > { %10441 = vmatmul.mubr.msk.f32.gmra.mrb[14].mxu1 %vm4158_vm5, %v15408_v23  ;;  %v6434_v23 = vld [vmem:[%s16504_s11 + $0x108] sm:$0xff] }
 0xbd9   : > { %10443 = vmatprep.mubr.msk.f32.mxu1 %vm4158_vm5, %v15420_v47  ;;  %11112 = vmatpush3.bf16.msra.mxu1 %v11109_v60  ;;  %v15439_v60 = vsel %vm2123_vm4, %v5763_v35, %v5764_v20  ;;  %v15445_v32 = vpack.c.bf16 %v6434_v23, %v6433_v7  ;;  %v15454_v35 = vsel %vm2123_vm4, %v5768_v11, %v5769_v13  ;;  %v5774_v47 = vrot.slane %v14965_v46, 2 }
 0xbda   : > { %11114 = vmatprep.subr.bf16.mxu1 %v11113_v62  ;;  %v5778_v20 = vrot.slane %v15004_v39, 2  ;;  %v5781_v7 = vrot.slane %v15028_v41, 2  ;;  %v5784_v11 = vrot.slane %v15031_v53, 2 }
 0xbdc   : > { %10444 = vmatmul.mubr.msk.f32.gmra.mrb[16].mxu1 %vm4158_vm5, %v15427_v4  ;;  %v5773_v4 = vrot.slane %v14970_v45, 2  ;;  %v15481_v57 = vsel %vm2123_vm4, %v5778_v20, %v5779_v58 }
 0xbdd   : > { %10446 = vmatprep.mubr.msk.f32.mxu1 %vm4158_vm5, %v15439_v60  ;;  %11116 = vmatpush3.bf16.msra.mxu1 %v11113_v62  ;;  %v15462_v62 = vsel %vm2123_vm4, %v5769_v13, %v5771_v54  ;;  %v15488_v13 = vsel %vm2123_vm4, %v5779_v58, %v5781_v7  ;;  %v5788_v54 = vrot.slane %v15068_v38, 2  ;;  %v5791_v58 = vrot.slane %v15088_v22, 2 }
 0xbde   : > { %11118 = vmatprep.subr.bf16.mxu1 %v11117_v31  ;;  %v15468_v23 = vsel %vm2123_vm4, %v5773_v4, %v5774_v47  ;;  %v5783_v4 = vrot.slane %v15035_v25, 2  ;;  %v5793_v7 = vrot.slane %v15095_v51, 2 }
 0xbe0   : > { %10447 = vmatmul.mubr.msk.f32.gmra.mrb[18].mxu1 %vm4158_vm5, %v15448_v48  ;;  %v15494_v41 = vsel %vm2123_vm4, %v5783_v4, %v5784_v11  ;;  %v5794_v4 = vrot.slane %v15091_v55, 2 }
 0xbe1   : > { %10449 = vmatprep.mubr.msk.f32.mxu1 %vm4158_vm5, %v15454_v35  ;;  %11120 = vmatpush3.bf16.msra.mxu1 %v11117_v31  ;;  %v15475_v31 = vsel %vm2123_vm4, %v5774_v47, %v5776_v21  ;;  %v5786_v47 = vrot.slane %v15059_v12, 2  ;;  %16911 = vst [vmem:[#allocation53_spill] sm:$0xff] %v15494_v41  ;;  %v5789_v21 = vrot.slane %v15064_v44, 2 }
 0xbe2   : > { %11122 = vmatprep.subr.bf16.mxu1 %v15445_v32  ;;  %v15520_v22 = vsel %vm2123_vm4, %v5793_v7, %v5794_v4  ;;  %v5804_v7 = vrot.slane %v15144_v37, 2 }
 0xbe3   : > { %v15501_v20 = vsel %vm2123_vm4, %v5784_v11, %v5786_v47  ;;  %v15507_v12 = vsel %vm2123_vm4, %v5788_v54, %v5789_v21  ;;  %v5796_v11 = vrot.slane %v15115_v2, 2  ;;  %16913 = vst [vmem:[#allocation56_spill] sm:$0xff] %v15520_v22  ;;  %v5798_v47 = vrot.slane %v15121_v24, 2 }
 0xbe4   : > { %10450 = vmatmul.mubr.msk.f32.gmra.mrb[20].mxu1 %vm4158_vm5, %v15462_v62  ;;  %16912 = vst [vmem:[#allocation54_spill] sm:$0xff] %v15507_v12  ;;  %v5799_v54 = vrot.slane %v15118_v9, 2 }
 0xbe5   : > { %10452 = vmatprep.mubr.msk.f32.mxu1 %vm4158_vm5, %v15468_v23 }
 0xbe6   : > { %v15533_v2 = vsel %vm2123_vm4, %v5798_v47, %v5799_v54  ;;  %v5809_v47 = vrot.slane %v15171_v6, 2 }
 0xbe7   : > { %16915 = vst [vmem:[#allocation59_spill] sm:$0xff] %v15533_v2 }
 0xbe8   : > { %10453 = vmatmul.mubr.msk.f32.gmra.mrb[22].mxu1 %vm4158_vm5, %v15475_v31 }
 0xbe9   : > { %10455 = vmatprep.mubr.msk.f32.mxu1 %vm4158_vm5, %v15481_v57 }
 0xbec   : > { %10456 = vmatmul.mubr.msk.f32.gmra.mrb[24].mxu1 %vm4158_vm5, %v15488_v13 }
 0xbed   : > { %10458 = vmatprep.mubr.msk.f32.mxu1 %vm4158_vm5, %v15494_v41  ;;  %v15514_v41 = vsel %vm2123_vm4, %v5789_v21, %v5791_v58  ;;  %v5801_v21 = vrot.slane %v15140_v18, 2  ;;  %v5803_v58 = vrot.slane %v15147_v52, 2 }
 0xbef   : > { %v15546_v18 = vsel %vm2123_vm4, %v5803_v58, %v5804_v7  ;;  %v5814_v58 = vrot.slane %v15196_v17, 2 }
 0xbf0   : > { %10459 = vmatmul.mubr.msk.f32.gmra.mrb[26].mxu1 %vm4158_vm5, %v15501_v20  ;;  %16916 = vst [vmem:[#allocation60_spill] sm:$0xff] %v15546_v18 }
 0xbf1   : > { %10461 = vmatprep.mubr.msk.f32.mxu1 %vm4158_vm5, %v15507_v12  ;;  %v15527_v12 = vsel %vm2123_vm4, %v5794_v4, %v5796_v11  ;;  %v5806_v4 = vrot.slane %v15166_v33, 2  ;;  %v5808_v11 = vrot.slane %v15152_v34, 2 }
 0xbf2   : > { %16914 = vst [vmem:[#allocation57_spill] sm:$0xff] %v15527_v12 }
 0xbf3   : > { %v15559_v33 = vsel %vm2123_vm4, %v5808_v11, %v5809_v47  ;;  %v5819_v11 = vrot.slane %v15219_v5, 2 }
 0xbf4   : > { %10462 = vmatmul.mubr.msk.f32.gmra.mrb[28].mxu1 %vm4158_vm5, %v15514_v41  ;;  %16918 = vst [vmem:[#allocation62_spill] sm:$0xff] %v15559_v33 }
 0xbf5   : > { %10464 = vmatprep.mubr.msk.f32.mxu1 %vm4158_vm5, %v15520_v22  ;;  %v15540_v22 = vsel %vm2123_vm4, %v5799_v54, %v5801_v21  ;;  %v5811_v54 = vrot.slane %v15192_v56, 2  ;;  %v5813_v21 = vrot.slane %v15178_v29, 2 }
 0xbf7   : > { %v15572_v56 = vsel %vm2123_vm4, %v5813_v21, %v5814_v58  ;;  %v5824_v21 = vrot.slane %v15246_v50, 2 }
 0xbf8   : > { %10465 = vmatmul.mubr.msk.f32.gmra.mrb[30].mxu1 %vm4158_vm5, %v15527_v12  ;;  %16920 = vst [vmem:[#allocation7_spill] sm:$0xff] %v15572_v56 }
 0xbf9   : > { %10467 = vmatprep.mubr.msk.f32.mxu1 %vm4158_vm5, %v15533_v2  ;;  %v15553_v2 = vsel %vm2123_vm4, %v5804_v7, %v5806_v4  ;;  %v5816_v7 = vrot.slane %v15213_v61, 2  ;;  %v5818_v4 = vrot.slane %v15222_v63, 2 }
 0xbfa   : > { %16917 = vst [vmem:[#allocation61_spill] sm:$0xff] %v15553_v2 }
 0xbfb   : > { %v15585_v61 = vsel %vm2123_vm4, %v5818_v4, %v5819_v11  ;;  %v6435_v4 = vld [vmem:[%s16504_s11 + $0x110] sm:$0xff] }
 0xbfc   : > { %10468 = vmatmul.mubr.msk.f32.gmra.mrb[32].mxu1 %vm4158_vm5, %v15540_v22  ;;  %16921 = vst [vmem:[#allocation18_spill] sm:$0xff] %v15585_v61 }
 0xbfd   : > { %10470 = vmatprep.mubr.msk.f32.mxu1 %vm4158_vm5, %v15546_v18  ;;  %v15566_v18 = vsel %vm2123_vm4, %v5809_v47, %v5811_v54  ;;  %v5821_v47 = vrot.slane %v15243_v28, 2  ;;  %v5823_v54 = vrot.slane %v15249_v14, 2 }
 0xbfe   : > { %16919 = vst [vmem:[#allocation9_spill] sm:$0xff] %v15566_v18 }
 0xbff   : > { %v15598_v28 = vsel %vm2123_vm4, %v5823_v54, %v5824_v21  ;;  %v6438_v54 = vld [vmem:[%s16504_s11 + $0x128] sm:$0xff] }
 0xc00   : > { %10471 = vmatmul.mubr.msk.f32.gmra.mrb[34].mxu1 %vm4158_vm5, %v15553_v2 }
 0xc01   : > { %10473 = vmatprep.mubr.msk.f32.mxu1 %vm4158_vm5, %v15559_v33  ;;  %v15579_v33 = vsel %vm2123_vm4, %v5814_v58, %v5816_v7  ;;  %v5826_v58 = vrot.slane %v15272_v10, 2  ;;  %v6436_v10 = vld [vmem:[%s16504_s11 + $0x118] sm:$0xff] }
 0xc03   : > { %v15603_v7 = vsel %vm2123_vm4, %v5824_v21, %v5826_v58  ;;  %v6440_v58 = vld [vmem:[%s16504_s11 + $0x138] sm:$0xff] }
 0xc04   : > { %10474 = vmatmul.mubr.msk.f32.gmra.mrb[36].mxu1 %vm4158_vm5, %v15566_v18 }
 0xc05   : > { %10476 = vmatprep.mubr.msk.f32.mxu1 %vm4158_vm5, %v15572_v56  ;;  %v15592_v56 = vsel %vm2123_vm4, %v5819_v11, %v5821_v47  ;;  %v11125_v11 = vpack.c.bf16 %v6436_v10, %v6435_v4  ;;  %v6437_v47 = vld [vmem:[%s16504_s11 + $0x120] sm:$0xff]  ;;  %v6708_v4 = vld [vmem:[%s16504_s11 + $0x148] sm:$0xff] }
 0xc06   : > { %16922 = vst [vmem:[#allocation19_spill] sm:$0xff] %v15592_v56  ;;  %v11129_v21 = vpack.c.bf16 %v6438_v54, %v6437_v47  ;;  %v6709_v54 = vld [vmem:[%s16504_s11 + $0x150] sm:$0xff] }
 0xc08   : > { %10477 = vmatmul.mubr.msk.f32.gmra.mrb[38].mxu1 %vm4158_vm5, %v15579_v33 }
 0xc09   : > { %10479 = vmatprep.mubr.msk.f32.mxu1 %vm4158_vm5, %v15585_v61 }
 0xc0c   : > { %10480 = vmatmul.mubr.msk.f32.gmra.mrb[40].mxu1 %vm4158_vm5, %v15592_v56 }
 0xc0d   : > { %10482 = vmatprep.mubr.msk.f32.mxu1 %vm4158_vm5, %v15598_v28 }
 0xc10   : > { %10483 = vmatmul.mubr.msk.f32.gmra.mrb[42].mxu1 %vm4158_vm5, %v15603_v7 }
 0xc11   : > { %10501 = vmatprep.mubr.msk.f32.mxu1 %vm4158_vm5, %v14860_v36  ;;  %v6439_v36 = vld [vmem:[%s16504_s11 + $0x130] sm:$0xff] }
 0xc14   : > { %10502 = vmatmul.mubr.msk.f32.vlgmr.msra.gmra.mrb[12].mxu1 %vm4158_vm5, %v14877_v8  ;;  %v11133_v8 = vpack.c.bf16 %v6440_v58, %v6439_v36  ;;  %v6711_v36 = vld [vmem:[%s16504_s11 + $0x160] sm:$0xff]  ;;  %v6712_v58 = vld [vmem:[%s16504_s11 + $0x168] sm:$0xff] }
 0xc15   : > { %11124 = vmatpush3.bf16.msra.mxu1 %v15445_v32  ;;  %10504 = vmatprep.mubr.msk.f32.mxu1 %vm4158_vm5, %v14863_v49  ;;  %v6707_v32 = vld [vmem:[%s16504_s11 + $0x140] sm:$0xff] }
 0xc16   : > { %11126 = vmatprep.subr.bf16.mxu1 %v11125_v11  ;;  %v11137_v10 = vpack.c.bf16 %v6708_v4, %v6707_v32  ;;  %v11145_v32 = vpack.c.bf16 %v6712_v58, %v6711_v36  ;;  %v6714_v4 = vld [vmem:[%s16504_s11 + $0x178] sm:$0xff]  ;;  %v16927_v36 = vld [vmem:[#allocation15_spill] sm:$0xff] }
 0xc17   : > { %v16928_v58 = vld [vmem:[#allocation51_spill] sm:$0xff] }
 0xc18   : > { %10505 = vmatmul.mubr.msk.f32.gmra.mrb[14].mxu1 %vm4158_vm5, %v14869_v19 }
 0xc19   : > { %10507 = vmatprep.mubr.msk.f32.mxu1 %vm4158_vm5, %v14900_v59  ;;  %11128 = vmatpush3.bf16.msra.mxu1 %v11125_v11  ;;  %v16923_v11 = vrot.slane %v15216_v1, 7 }
 0xc1a   : > { %11130 = vmatprep.subr.bf16.mxu1 %v11129_v21 }
 0xc1b   : > { %v15695_v47 = vsel %vm1306_vm2, 0.0, %v16923_v11  ;;  %v16925_v11 = vld [vmem:[#allocation48_spill] sm:$0xff] }
 0xc1c   : > { %10508 = vmatmul.mubr.msk.f32.gmra.mrb[16].mxu1 %vm4158_vm5, %v14895_v0 }
 0xc1d   : > { %10510 = vmatprep.mubr.msk.f32.mxu1 %vm4158_vm5, %v14940_v26  ;;  %11132 = vmatpush3.bf16.msra.mxu1 %v11129_v21  ;;  %v6710_v21 = vld [vmem:[%s16504_s11 + $0x158] sm:$0xff] }
 0xc1e   : > { %11134 = vmatprep.subr.bf16.mxu1 %v11133_v8  ;;  %v11141_v1 = vpack.c.bf16 %v6710_v21, %v6709_v54  ;;  %v16926_v54 = vld [vmem:[#allocation14_spill] sm:$0xff]  ;;  %v6977_v21 = vld [vmem:[%s16504_s11 + $0x188] sm:$0xff] }
 0xc20   : > { %10511 = vmatmul.mubr.msk.f32.gmra.mrb[18].mxu1 %vm4158_vm5, %v14935_v30 }
 0xc21   : > { %10513 = vmatprep.mubr.msk.f32.mxu1 %vm4158_vm5, %v14970_v45  ;;  %11136 = vmatpush3.bf16.msra.mxu1 %v11133_v8  ;;  %v16924_v8 = vld [vmem:[#allocation44_spill] sm:$0xff] }
 0xc22   : > { %11138 = vmatprep.subr.bf16.mxu1 %v11137_v10 }
 0xc24   : > { %10514 = vmatmul.mubr.msk.f32.gmra.mrb[20].mxu1 %vm4158_vm5, %v14965_v46 }
 0xc25   : > { %10516 = vmatprep.mubr.msk.f32.mxu1 %vm4158_vm5, %v15004_v39 }
 0xc28   : > { %10517 = vmatmul.mubr.msk.f32.gmra.mrb[22].mxu1 %vm4158_vm5, %v14999_v42 }
 0xc29   : > { %10519 = vmatprep.mubr.msk.f32.mxu1 %vm4158_vm5, %v15035_v25 }
 0xc2c   : > { %10520 = vmatmul.mubr.msk.f32.gmra.mrb[24].mxu1 %vm4158_vm5, %v15031_v53 }
 0xc2d   : > { %10522 = vmatprep.mubr.msk.f32.mxu1 %vm4158_vm5, %v15068_v38 }
 0xc30   : > { %10523 = vmatmul.mubr.msk.f32.gmra.mrb[26].mxu1 %vm4158_vm5, %v15064_v44 }
 0xc31   : > { %10525 = vmatprep.mubr.msk.f32.mxu1 %vm4158_vm5, %v15095_v51 }
 0xc34   : > { %10526 = vmatmul.mubr.msk.f32.gmra.mrb[28].mxu1 %vm4158_vm5, %v15091_v55 }
 0xc35   : > { %10528 = vmatprep.mubr.msk.f32.mxu1 %vm4158_vm5, %v15121_v24 }
 0xc38   : > { %10529 = vmatmul.mubr.msk.f32.gmra.mrb[30].mxu1 %vm4158_vm5, %v15118_v9 }
 0xc39   : > { %10531 = vmatprep.mubr.msk.f32.mxu1 %vm4158_vm5, %v15147_v52 }
 0xc3c   : > { %10532 = vmatmul.mubr.msk.f32.gmra.mrb[32].mxu1 %vm4158_vm5, %v15144_v37 }
 0xc3d   : > { %10534 = vmatprep.mubr.msk.f32.mxu1 %vm4158_vm5, %v15152_v34 }
 0xc40   : > { %10535 = vmatmul.mubr.msk.f32.gmra.mrb[34].mxu1 %vm4158_vm5, %v15171_v6 }
 0xc41   : > { %10537 = vmatprep.mubr.msk.f32.mxu1 %vm4158_vm5, %v15178_v29 }
 0xc44   : > { %10538 = vmatmul.mubr.msk.f32.gmra.mrb[36].mxu1 %vm4158_vm5, %v15196_v17 }
 0xc45   : > { %10540 = vmatprep.mubr.msk.f32.mxu1 %vm4158_vm5, %v15222_v63 }
 0xc48   : > { %10541 = vmatmul.mubr.msk.f32.gmra.mrb[38].mxu1 %vm4158_vm5, %v15219_v5 }
 0xc49   : > { %10543 = vmatprep.mubr.msk.f32.mxu1 %vm4158_vm5, %v15249_v14 }
 0xc4c   : > { %10544 = vmatmul.mubr.msk.f32.gmra.mrb[40].mxu1 %vm4158_vm5, %v15246_v50 }
 0xc4d   : > { %10546 = vmatprep.mubr.msk.f32.mxu1 %vm4158_vm5, %v15695_v47 }
 0xc50   : > { %10547 = vmatmul.mubr.msk.f32.gmra.mrb[42].mxu1 %vm4158_vm5, %v15258_v43 }
 0xc51   : > { %10565 = vmatprep.mubr.msk.f32.mxu1 %vm4158_vm5, %v14906_v16  ;;  %v6713_v16 = vld [vmem:[%s16504_s11 + $0x170] sm:$0xff] }
 0xc54   : > { %10566 = vmatmul.mubr.msk.f32.vlgmr.msra.gmra.mrb[12].mxu1 %vm4158_vm5, %v14909_v27  ;;  %v11149_v27 = vpack.c.bf16 %v6714_v4, %v6713_v16  ;;  %v16930_v16 = vld [vmem:[#allocation55_spill] sm:$0xff]  ;;  %v16931_v4 = vld [vmem:[#allocation58_spill] sm:$0xff] }
 0xc55   : > { %11140 = vmatpush3.bf16.msra.mxu1 %v11137_v10  ;;  %10568 = vmatprep.mubr.msk.f32.mxu1 %vm4158_vm5, %v16924_v8  ;;  %v6976_v10 = vld [vmem:[%s16504_s11 + $0x180] sm:$0xff] }
 0xc56   : > { %11142 = vmatprep.subr.bf16.mxu1 %v11141_v1 }
 0xc58   : > { %10569 = vmatmul.mubr.msk.f32.gmra.mrb[14].mxu1 %vm4158_vm5, %v16925_v11  ;;  %v16932_v11 = vld [vmem:[#allocation42_spill] sm:$0xff] }
 0xc59   : > { %10571 = vmatprep.mubr.msk.f32.mxu1 %vm4158_vm5, %v16926_v54  ;;  %11144 = vmatpush3.bf16.msra.mxu1 %v11141_v1  ;;  %v11153_v54 = vpack.c.bf16 %v6977_v21, %v6976_v10  ;;  %v16929_v1 = vld [vmem:[#allocation52_spill] sm:$0xff]  ;;  %v16936_v21 = vld [vmem:[#allocation21_spill] sm:$0xff] }
 0xc5a   : > { %11146 = vmatprep.subr.bf16.mxu1 %v11145_v32  ;;  %v16935_v10 = vld [vmem:[#allocation20_spill] sm:$0xff] }
 0xc5c   : > { %10572 = vmatmul.mubr.msk.f32.gmra.mrb[16].mxu1 %vm4158_vm5, %v16927_v36  ;;  %v16933_v36 = vld [vmem:[#allocation45_spill] sm:$0xff] }
 0xc5d   : > { %10574 = vmatprep.mubr.msk.f32.mxu1 %vm4158_vm5, %v16928_v58  ;;  %11148 = vmatpush3.bf16.msra.mxu1 %v11145_v32  ;;  %v16934_v32 = vld [vmem:[#allocation46_spill] sm:$0xff] }
 0xc5e   : > { %11150 = vmatprep.subr.bf16.mxu1 %v11149_v27 }
 0xc60   : > { %10575 = vmatmul.mubr.msk.f32.gmra.mrb[18].mxu1 %vm4158_vm5, %v16929_v1 }
 0xc61   : > { %10577 = vmatprep.mubr.msk.f32.mxu1 %vm4158_vm5, %v16930_v16  ;;  %11152 = vmatpush3.bf16.msra.mxu1 %v11149_v27  ;;  %v16937_v27 = vld [vmem:[#allocation22_spill] sm:$0xff]  ;;  %v16938_v16 = vld [vmem:[#allocation23_spill] sm:$0xff] }
 0xc62   : > { %11154 = vmatprep.subr.bf16.mxu1 %v11153_v54 }
 0xc64   : > { %10578 = vmatmul.mubr.msk.f32.gmra.mrb[20].mxu1 %vm4158_vm5, %v16931_v4  ;;  %v16939_v4 = vld [vmem:[#allocation24_spill] sm:$0xff] }
 0xc65   : > { %10580 = vmatprep.mubr.msk.f32.mxu1 %vm4158_vm5, %v16932_v11  ;;  %v16950_v11 = vld [vmem:[#allocation40_spill] sm:$0xff] }
 0xc68   : > { %10581 = vmatmul.mubr.msk.f32.gmra.mrb[22].mxu1 %vm4158_vm5, %v16933_v36  ;;  %v16940_v36 = vld [vmem:[#allocation26_spill] sm:$0xff] }
 0xc69   : > { %10583 = vmatprep.mubr.msk.f32.mxu1 %vm4158_vm5, %v16934_v32 }
 0xc6c   : > { %10584 = vmatmul.mubr.msk.f32.gmra.mrb[24].mxu1 %vm4158_vm5, %v16935_v10  ;;  %v16941_v10 = vld [vmem:[#allocation32_spill] sm:$0xff] }
 0xc6d   : > { %10586 = vmatprep.mubr.msk.f32.mxu1 %vm4158_vm5, %v16936_v21  ;;  %v16942_v21 = vld [vmem:[#allocation33_spill] sm:$0xff] }
 0xc70   : > { %10587 = vmatmul.mubr.msk.f32.gmra.mrb[26].mxu1 %vm4158_vm5, %v16937_v27  ;;  %v16943_v27 = vld [vmem:[#allocation35_spill] sm:$0xff] }
 0xc71   : > { %10589 = vmatprep.mubr.msk.f32.mxu1 %vm4158_vm5, %v16938_v16  ;;  %v16944_v16 = vld [vmem:[#allocation36_spill] sm:$0xff] }
 0xc74   : > { %10590 = vmatmul.mubr.msk.f32.gmra.mrb[28].mxu1 %vm4158_vm5, %v16939_v4  ;;  %v16945_v4 = vld [vmem:[#allocation37_spill] sm:$0xff] }
 0xc75   : > { %10592 = vmatprep.mubr.msk.f32.mxu1 %vm4158_vm5, %v15161_v3  ;;  %v16946_v3 = vld [vmem:[#allocation38_spill] sm:$0xff] }
 0xc78   : > { %10593 = vmatmul.mubr.msk.f32.gmra.mrb[30].mxu1 %vm4158_vm5, %v16940_v36  ;;  %v6429_v36 = vrot.slane %v15258_v43, 1 }
 0xc79   : > { %10595 = vmatprep.mubr.msk.f32.mxu1 %vm4158_vm5, %v15188_v15  ;;  %v6428_v15 = vrot.slane %v15695_v47, 1 }
 0xc7c   : > { %10596 = vmatmul.mubr.msk.f32.gmra.mrb[32].mxu1 %vm4158_vm5, %v16941_v10  ;;  %v16947_v10 = vld [vmem:[#allocation39_spill] sm:$0xff] }
 0xc7d   : > { %10598 = vmatprep.mubr.msk.f32.mxu1 %vm4158_vm5, %v16942_v21  ;;  %v16948_v21 = vld [vmem:[#allocation34_spill] sm:$0xff] }
 0xc7e   : > { %v16949_v32 = vrot.slane %v16948_v21, 7  ;;  %v6979_v21 = vld [vmem:[%s16504_s11 + $0x198] sm:$0xff] }
 0xc80   : > { %10599 = vmatmul.mubr.msk.f32.gmra.mrb[34].mxu1 %vm4158_vm5, %v16943_v27  ;;  %v15786_v27 = vsel %vm1306_vm2, %v16949_v32, 0.0  ;;  %v6978_v32 = vld [vmem:[%s16504_s11 + $0x190] sm:$0xff] }
 0xc81   : > { %10601 = vmatprep.mubr.msk.f32.mxu1 %vm4158_vm5, %v16944_v16  ;;  %v16951_v16 = vld [vmem:[#allocation41_spill] sm:$0xff] }
 0xc84   : > { %10602 = vmatmul.mubr.msk.f32.gmra.mrb[36].mxu1 %vm4158_vm5, %v16945_v4  ;;  %v6431_v4 = vrot.slane %v15786_v27, 1 }
 0xc85   : > { %10604 = vmatprep.mubr.msk.f32.mxu1 %vm4158_vm5, %v16946_v3  ;;  %v15794_v3 = vsel %vm1460_vm3, %v6428_v15, %v6429_v36  ;;  %v11157_v15 = vpack.c.bf16 %v6979_v21, %v6978_v32  ;;  %v6983_v32 = vld [vmem:[%s16504_s11 + $0x1b8] sm:$0xff]  ;;  %v16956_v21 = vld [vmem:[#allocation8_spill] sm:$0xff] }
 0xc86   : > { %16952 = vst [vmem:[#allocation28_spill] sm:$0xff] %v15794_v3 }
 0xc88   : > { %10605 = vmatmul.mubr.msk.f32.gmra.mrb[38].mxu1 %vm4158_vm5, %v16947_v10  ;;  %v15799_v10 = vsel %vm1460_vm3, %v6429_v36, %v6431_v4  ;;  %v6980_v36 = vld [vmem:[%s16504_s11 + $0x1a0] sm:$0xff]  ;;  %v6981_v4 = vld [vmem:[%s16504_s11 + $0x1a8] sm:$0xff] }
 0xc89   : > { %10607 = vmatprep.mubr.msk.f32.mxu1 %vm4158_vm5, %v16950_v11  ;;  %16953 = vst [vmem:[#allocation29_spill] sm:$0xff] %v15799_v10 }
 0xc8c   : > { %10608 = vmatmul.mubr.msk.f32.gmra.mrb[40].mxu1 %vm4158_vm5, %v16951_v16  ;;  %v16955_v16 = vld [vmem:[#allocation47_spill] sm:$0xff] }
 0xc8d   : > { %10610 = vmatprep.mubr.msk.f32.mxu1 %vm4158_vm5, %v15794_v3  ;;  %v16954_v3 = vld [vmem:[#allocation43_spill] sm:$0xff] }
 0xc90   : > { %10611 = vmatmul.mubr.msk.f32.gmra.mrb[42].mxu1 %vm4158_vm5, %v15799_v10  ;;  %v11161_v10 = vpack.c.bf16 %v6981_v4, %v6980_v36  ;;  %v7242_v36 = vld [vmem:[%s16504_s11 + $0x1c8] sm:$0xff] }
 0xc91   : > { %10629 = vmatprep.mubr.msk.f32.mxu1 %vm4158_vm5, %v15401_v40  ;;  %v6982_v40 = vld [vmem:[%s16504_s11 + $0x1b0] sm:$0xff]  ;;  %v7811_v4 = vld [vmem:[%s16506_s13 + $0x8] sm:$0xff] }
 0xc94   : > { %10630 = vmatmul.mubr.msk.f32.vlgmr.msra.gmra.mrb[12].mxu1 %vm4158_vm5, %v16954_v3  ;;  %v11165_v3 = vpack.c.bf16 %v6983_v32, %v6982_v40 }
 0xc95   : > { %11156 = vmatpush3.bf16.msra.mxu1 %v11153_v54  ;;  %10632 = vmatprep.mubr.msk.f32.mxu1 %vm4158_vm5, %v16955_v16  ;;  %v7241_v54 = vld [vmem:[%s16504_s11 + $0x1c0] sm:$0xff] }
 0xc96   : > { %11158 = vmatprep.subr.bf16.mxu1 %v11157_v15  ;;  %v15847_v40 = vpack.c.bf16 %v7242_v36, %v7241_v54  ;;  %v16959_v54 = vld [vmem:[#allocation56_spill] sm:$0xff]  ;;  %v16960_v36 = vld [vmem:[#allocation59_spill] sm:$0xff] }
 0xc98   : > { %10633 = vmatmul.mubr.msk.f32.gmra.mrb[14].mxu1 %vm4158_vm5, %v16956_v21 }
 0xc99   : > { %10635 = vmatprep.mubr.msk.f32.mxu1 %vm4158_vm5, %v15439_v60  ;;  %11160 = vmatpush3.bf16.msra.mxu1 %v11157_v15  ;;  %v7810_v15 = vld [vmem:[%s16506_s13] sm:$0xff] }
 0xc9a   : > { %11162 = vmatprep.subr.bf16.mxu1 %v11161_v10  ;;  %v15849_v32 = vpack.c.bf16 %v7811_v4, %v7810_v15  ;;  %v16961_v15 = vld [vmem:[#allocation60_spill] sm:$0xff]  ;;  %v16962_v4 = vld [vmem:[#allocation62_spill] sm:$0xff] }
 0xc9c   : > { %10636 = vmatmul.mubr.msk.f32.gmra.mrb[16].mxu1 %vm4158_vm5, %v15448_v48  ;;  %11202 = vmatprep.subr.bf16.mxu0 %v15849_v32 }
 0xc9d   : > { %10638 = vmatprep.mubr.msk.f32.mxu1 %vm4158_vm5, %v15454_v35  ;;  %11164 = vmatpush3.bf16.msra.mxu1 %v11161_v10  ;;  %v16957_v10 = vld [vmem:[#allocation53_spill] sm:$0xff] }
 0xc9e   : > { %11166 = vmatprep.subr.bf16.mxu1 %v11165_v3  ;;  %11204 = vmatpush3.bf16.msra.mxu0 %v15849_v32 }
 0xca0   : > { %10639 = vmatmul.mubr.msk.f32.gmra.mrb[18].mxu1 %vm4158_vm5, %v15462_v62 }
 0xca1   : > { %10641 = vmatprep.mubr.msk.f32.mxu1 %vm4158_vm5, %v15468_v23  ;;  %11168 = vmatpush3.bf16.msra.mxu1 %v11165_v3  ;;  %v16958_v3 = vld [vmem:[#allocation54_spill] sm:$0xff] }
 0xca2   : > { %11170 = vmatprep.subr.bf16.mxu1 %v15847_v40 }
 0xca4   : > { %10642 = vmatmul.mubr.msk.f32.gmra.mrb[20].mxu1 %vm4158_vm5, %v15475_v31 }
 0xca5   : > { %10644 = vmatprep.mubr.msk.f32.mxu1 %vm4158_vm5, %v15481_v57 }
 0xca8   : > { %10645 = vmatmul.mubr.msk.f32.gmra.mrb[22].mxu1 %vm4158_vm5, %v15488_v13 }
 0xca9   : > { %10647 = vmatprep.mubr.msk.f32.mxu1 %vm4158_vm5, %v16957_v10 }
 0xcac   : > { %10648 = vmatmul.mubr.msk.f32.gmra.mrb[24].mxu1 %vm4158_vm5, %v15501_v20 }
 0xcad   : > { %10650 = vmatprep.mubr.msk.f32.mxu1 %vm4158_vm5, %v16958_v3 }
 0xcb0   : > { %10651 = vmatmul.mubr.msk.f32.gmra.mrb[26].mxu1 %vm4158_vm5, %v15514_v41 }
 0xcb1   : > { %10653 = vmatprep.mubr.msk.f32.mxu1 %vm4158_vm5, %v16959_v54 }
 0xcb4   : > { %10654 = vmatmul.mubr.msk.f32.gmra.mrb[28].mxu1 %vm4158_vm5, %v15527_v12  ;;  %v7812_v12 = vld [vmem:[%s16506_s13 + $0x10] sm:$0xff] }
 0xcb5   : > { %10656 = vmatprep.mubr.msk.f32.mxu1 %vm4158_vm5, %v16960_v36  ;;  %v7813_v36 = vld [vmem:[%s16506_s13 + $0x18] sm:$0xff] }
 0xcb6   : > { %v15892_v54 = vpack.c.bf16 %v7813_v36, %v7812_v12  ;;  %v12000_v12 = vld [vmem:[%s12275_s20 + $0x10] sm:$0xff]  ;;  %v6702_v36 = vrot.slane %v15695_v47, 2 }
 0xcb8   : > { %10657 = vmatmul.mubr.msk.f32.gmra.mrb[30].mxu1 %vm4158_vm5, %v15540_v22  ;;  %11206 = vmatprep.subr.bf16.mxu0 %v15892_v54 }
 0xcb9   : > { %10659 = vmatprep.mubr.msk.f32.mxu1 %vm4158_vm5, %v16961_v15  ;;  %11208 = vmatpush3.bf16.msra.mxu0 %v15892_v54 }
 0xcbc   : > { %10660 = vmatmul.mubr.msk.f32.gmra.mrb[32].mxu1 %vm4158_vm5, %v15553_v2  ;;  %v16963_v2 = vld [vmem:[#allocation7_spill] sm:$0xff] }
 0xcbd   : > { %10662 = vmatprep.mubr.msk.f32.mxu1 %vm4158_vm5, %v16962_v4  ;;  %v11999_v4 = vld [vmem:[%s12275_s20 + $0x8] sm:$0xff] }
 0xcbe   : > { %10878 = vmatmul.mubr.msk.f32.vlgmr.msra.gmra.mrb[36].mxu0 %vm525_vm1, %v11999_v4  ;;  %v12002_v4 = vld [vmem:[%s12275_s20 + $0x20] sm:$0xff] }
 0xcbf   : > { %10880 = vmatprep.mubr.msk.f32.mxu0 %vm525_vm1, %v12000_v12  ;;  %v6705_v12 = vrot.slane %v15786_v27, 2  ;;  %v7243_v27 = vld [vmem:[%s16504_s11 + $0x1d0] sm:$0xff] }
 0xcc0   : > { %10663 = vmatmul.mubr.msk.f32.gmra.mrb[34].mxu1 %vm4158_vm5, %v15566_v18  ;;  %v12001_v18 = vld [vmem:[%s12275_s20 + $0x18] sm:$0xff] }
 0xcc1   : > { %10665 = vmatprep.mubr.msk.f32.mxu1 %vm4158_vm5, %v16963_v2  ;;  %v6703_v2 = vrot.slane %v15258_v43, 2 }
 0xcc2   : > { %10881 = vmatmul.mubr.msk.f32.gmra.mrb[38].mxu0 %vm525_vm1, %v12001_v18  ;;  %v12004_v18 = vld [vmem:[%s12275_s20 + $0x30] sm:$0xff] }
 0xcc3   : > { %10883 = vmatprep.mubr.msk.f32.mxu0 %vm525_vm1, %v12002_v4  ;;  %v15931_v4 = vsel %vm2123_vm4, %v6703_v2, %v6705_v12 }
 0xcc4   : > { %10666 = vmatmul.mubr.msk.f32.gmra.mrb[36].mxu1 %vm4158_vm5, %v15579_v33  ;;  %16964 = vst [vmem:[#allocation30_spill] sm:$0xff] %v15931_v4 }
 0xcc5   : > { %10668 = vmatprep.mubr.msk.f32.mxu1 %vm4158_vm5, %v15585_v61  ;;  %v15922_v61 = vsel %vm2123_vm4, %v6702_v36, %v6703_v2  ;;  %v7244_v36 = vld [vmem:[%s16504_s11 + $0x1d8] sm:$0xff]  ;;  %v12006_v2 = vld [vmem:[%s12275_s20 + $0x40] sm:$0xff] }
 0xcc6   : > { %v11173_v12 = vpack.c.bf16 %v7244_v36, %v7243_v27  ;;  %v12008_v27 = vld [vmem:[%s12275_s20 + $0x50] sm:$0xff] }
 0xcc7   : > { %v7247_v36 = vld [vmem:[%s16504_s11 + $0x1f0] sm:$0xff] }
 0xcc8   : > { %10669 = vmatmul.mubr.msk.f32.gmra.mrb[38].mxu1 %vm4158_vm5, %v15592_v56  ;;  %v12003_v56 = vld [vmem:[%s12275_s20 + $0x28] sm:$0xff] }
 0xcc9   : > { %10671 = vmatprep.mubr.msk.f32.mxu1 %vm4158_vm5, %v15598_v28  ;;  %10884 = vmatmul.mubr.msk.f32.gmra.mrb[40].mxu0 %vm525_vm1, %v12003_v56  ;;  %v12005_v56 = vld [vmem:[%s12275_s20 + $0x38] sm:$0xff] }
 0xcca   : > { %10886 = vmatprep.mubr.msk.f32.mxu0 %vm525_vm1, %v12004_v18  ;;  %v7245_v18 = vld [vmem:[%s16504_s11 + $0x1e0] sm:$0xff] }
 0xccc   : > { %10672 = vmatmul.mubr.msk.f32.gmra.mrb[40].mxu1 %vm4158_vm5, %v15603_v7 }
 0xccd   : > { %10674 = vmatprep.mubr.msk.f32.mxu1 %vm4158_vm5, %v15922_v61  ;;  %10887 = vmatmul.mubr.msk.f32.gmra.mrb[42].mxu0 %vm525_vm1, %v12005_v56  ;;  %v12007_v56 = vld [vmem:[%s12275_s20 + $0x48] sm:$0xff] }
 0xcce   : > { %10889 = vmatprep.mubr.msk.f32.mxu0 %vm525_vm1, %v12006_v2  ;;  %v7506_v2 = vld [vmem:[%s16504_s11 + $0x200] sm:$0xff] }
 0xcd0   : > { %10675 = vmatmul.mubr.msk.f32.gmra.mrb[42].mxu1 %vm4158_vm5, %v15931_v4  ;;  %v7246_v4 = vld [vmem:[%s16504_s11 + $0x1e8] sm:$0xff] }
 0xcd1   : > { %10693 = vmatprep.mubr.msk.f32.mxu1 %vm4158_vm5, %v14863_v49  ;;  %10890 = vmatmul.mubr.msk.f32.gmra.mrb[44].mxu0 %vm525_vm1, %v12007_v56  ;;  %v11177_v49 = vpack.c.bf16 %v7246_v4, %v7245_v18  ;;  %v12010_v4 = vld [vmem:[%s12275_s20 + $0x60] sm:$0xff]  ;;  %v12012_v18 = vld [vmem:[%s12275_s20 + $0x70] sm:$0xff]  ;;  %v12015_v56 = vld [vmem:[%s12275_s20 + $0x88] sm:$0xff] }
 0xcd2   : > { %10892 = vmatprep.mubr.msk.f32.mxu0 %vm525_vm1, %v12008_v27 }
 0xcd4   : > { %10694 = vmatmul.mubr.msk.f32.vlgmr.msra.gmra.mrb[12].mxu1 %vm4158_vm5, %v14869_v19  ;;  %v7248_v19 = vld [vmem:[%s16504_s11 + $0x1f8] sm:$0xff] }
 0xcd5   : > { %11172 = vmatpush3.bf16.msra.mxu1 %v15847_v40  ;;  %10696 = vmatprep.mubr.msk.f32.mxu1 %vm4158_vm5, %v14900_v59  ;;  %v12009_v40 = vld [vmem:[%s12275_s20 + $0x58] sm:$0xff]  ;;  %v11181_v59 = vpack.c.bf16 %v7248_v19, %v7247_v36  ;;  %v16970_v36 = vld [vmem:[#allocation55_spill] sm:$0xff] }
 0xcd6   : > { %11174 = vmatprep.subr.bf16.mxu1 %v11173_v12  ;;  %10893 = vmatmul.mubr.msk.f32.gmra.mrb[46].mxu0 %vm525_vm1, %v12009_v40  ;;  %v16971_v19 = vld [vmem:[#allocation58_spill] sm:$0xff] }
 0xcd7   : > { %10895 = vmatprep.mubr.msk.f32.mxu0 %vm525_vm1, %v12010_v4  ;;  %v16972_v40 = vld [vmem:[#allocation42_spill] sm:$0xff]  ;;  %v16976_v4 = vld [vmem:[#allocation21_spill] sm:$0xff] }
 0xcd8   : > { %10697 = vmatmul.mubr.msk.f32.gmra.mrb[14].mxu1 %vm4158_vm5, %v14895_v0  ;;  %v7507_v0 = vld [vmem:[%s16504_s11 + $0x208] sm:$0xff] }
 0xcd9   : > { %10699 = vmatprep.mubr.msk.f32.mxu1 %vm4158_vm5, %v14940_v26  ;;  %11176 = vmatpush3.bf16.msra.mxu1 %v11173_v12  ;;  %v12011_v26 = vld [vmem:[%s12275_s20 + $0x68] sm:$0xff]  ;;  %v15988_v12 = vpack.c.bf16 %v7507_v0, %v7506_v2  ;;  %v16977_v2 = vld [vmem:[#allocation22_spill] sm:$0xff]  ;;  %v16978_v0 = vld [vmem:[#allocation23_spill] sm:$0xff] }
 0xcda   : > { %11178 = vmatprep.subr.bf16.mxu1 %v11177_v49  ;;  %10896 = vmatmul.mubr.msk.f32.gmra.mrb[48].mxu0 %vm525_vm1, %v12011_v26  ;;  %v16979_v26 = vld [vmem:[#allocation24_spill] sm:$0xff] }
 0xcdb   : > { %10898 = vmatprep.mubr.msk.f32.mxu0 %vm525_vm1, %v12012_v18  ;;  %v16981_v18 = vld [vmem:[#allocation26_spill] sm:$0xff] }
 0xcdc   : > { %10700 = vmatmul.mubr.msk.f32.gmra.mrb[16].mxu1 %vm4158_vm5, %v14935_v30  ;;  %v12013_v30 = vld [vmem:[%s12275_s20 + $0x78] sm:$0xff] }
 0xcdd   : > { %10702 = vmatprep.mubr.msk.f32.mxu1 %vm4158_vm5, %v14970_v45  ;;  %11180 = vmatpush3.bf16.msra.mxu1 %v11177_v49  ;;  %v12014_v45 = vld [vmem:[%s12275_s20 + $0x80] sm:$0xff] }
 0xcde   : > { %11182 = vmatprep.subr.bf16.mxu1 %v11181_v59  ;;  %10899 = vmatmul.mubr.msk.f32.gmra.mrb[50].mxu0 %vm525_vm1, %v12013_v30  ;;  %v12026_v49 = vld [vmem:[%s12275_s20 + $0xe0] sm:$0xff] }
 0xcdf   : > { %10901 = vmatprep.mubr.msk.f32.mxu0 %vm525_vm1, %v12014_v45  ;;  %v16982_v30 = vld [vmem:[#allocation27_spill] sm:$0xff]  ;;  %v16983_v45 = vld [vmem:[#allocation32_spill] sm:$0xff] }
 0xce0   : > { %10703 = vmatmul.mubr.msk.f32.gmra.mrb[18].mxu1 %vm4158_vm5, %v14965_v46  ;;  %v12016_v46 = vld [vmem:[%s12275_s20 + $0x90] sm:$0xff] }
 0xce1   : > { %10705 = vmatprep.mubr.msk.f32.mxu1 %vm4158_vm5, %v15004_v39  ;;  %11184 = vmatpush3.bf16.msra.mxu1 %v11181_v59  ;;  %v12017_v39 = vld [vmem:[%s12275_s20 + $0x98] sm:$0xff] }
 0xce2   : > { %11186 = vmatprep.subr.bf16.mxu1 %v15988_v12  ;;  %10902 = vmatmul.mubr.msk.f32.gmra.mrb[52].mxu0 %vm525_vm1, %v12015_v56  ;;  %v16974_v59 = vld [vmem:[#allocation46_spill] sm:$0xff]  ;;  %v16984_v56 = vld [vmem:[#allocation33_spill] sm:$0xff] }
 0xce3   : > { %10904 = vmatprep.mubr.msk.f32.mxu0 %vm525_vm1, %v12016_v46  ;;  %v16985_v46 = vld [vmem:[#allocation35_spill] sm:$0xff] }
 0xce4   : > { %10706 = vmatmul.mubr.msk.f32.gmra.mrb[20].mxu1 %vm4158_vm5, %v14999_v42  ;;  %v12018_v42 = vld [vmem:[%s12275_s20 + $0xa0] sm:$0xff] }
 0xce5   : > { %10708 = vmatprep.mubr.msk.f32.mxu1 %vm4158_vm5, %v15035_v25  ;;  %v12019_v25 = vld [vmem:[%s12275_s20 + $0xa8] sm:$0xff] }
 0xce6   : > { %10905 = vmatmul.mubr.msk.f32.gmra.mrb[54].mxu0 %vm525_vm1, %v12017_v39  ;;  %v16986_v39 = vld [vmem:[#allocation36_spill] sm:$0xff] }
 0xce7   : > { %10907 = vmatprep.mubr.msk.f32.mxu0 %vm525_vm1, %v12018_v42  ;;  %v16987_v42 = vld [vmem:[#allocation37_spill] sm:$0xff] }
 0xce8   : > { %10709 = vmatmul.mubr.msk.f32.gmra.mrb[22].mxu1 %vm4158_vm5, %v15031_v53  ;;  %v12020_v53 = vld [vmem:[%s12275_s20 + $0xb0] sm:$0xff] }
 0xce9   : > { %10711 = vmatprep.mubr.msk.f32.mxu1 %vm4158_vm5, %v15068_v38  ;;  %v12021_v38 = vld [vmem:[%s12275_s20 + $0xb8] sm:$0xff] }
 0xcea   : > { %10908 = vmatmul.mubr.msk.f32.gmra.mrb[56].mxu0 %vm525_vm1, %v12019_v25  ;;  %v16988_v25 = vld [vmem:[#allocation38_spill] sm:$0xff] }
 0xceb   : > { %10910 = vmatprep.mubr.msk.f32.mxu0 %vm525_vm1, %v12020_v53  ;;  %v16989_v53 = vld [vmem:[#allocation39_spill] sm:$0xff] }
 0xcec   : > { %10712 = vmatmul.mubr.msk.f32.gmra.mrb[24].mxu1 %vm4158_vm5, %v15064_v44  ;;  %v12022_v44 = vld [vmem:[%s12275_s20 + $0xc0] sm:$0xff] }
 0xced   : > { %10714 = vmatprep.mubr.msk.f32.mxu1 %vm4158_vm5, %v15095_v51  ;;  %v12023_v51 = vld [vmem:[%s12275_s20 + $0xc8] sm:$0xff] }
 0xcee   : > { %10911 = vmatmul.mubr.msk.f32.gmra.mrb[58].mxu0 %vm525_vm1, %v12021_v38  ;;  %v16990_v38 = vld [vmem:[#allocation41_spill] sm:$0xff] }
 0xcef   : > { %10913 = vmatprep.mubr.msk.f32.mxu0 %vm525_vm1, %v12022_v44  ;;  %v16991_v44 = vld [vmem:[#allocation28_spill] sm:$0xff] }
 0xcf0   : > { %10715 = vmatmul.mubr.msk.f32.gmra.mrb[26].mxu1 %vm4158_vm5, %v15091_v55  ;;  %v12024_v55 = vld [vmem:[%s12275_s20 + $0xd0] sm:$0xff] }
 0xcf1   : > { %10717 = vmatprep.mubr.msk.f32.mxu1 %vm4158_vm5, %v15121_v24  ;;  %v12025_v24 = vld [vmem:[%s12275_s20 + $0xd8] sm:$0xff] }
 0xcf2   : > { %10914 = vmatmul.mubr.msk.f32.gmra.mrb[60].mxu0 %vm525_vm1, %v12023_v51  ;;  %v16992_v51 = vld [vmem:[#allocation29_spill] sm:$0xff] }
 0xcf3   : > { %10916 = vmatprep.mubr.msk.f32.mxu0 %vm525_vm1, %v12024_v55  ;;  %v16993_v55 = vld [vmem:[#allocation12_spill] sm:$0xff] }
 0xcf4   : > { %10718 = vmatmul.mubr.msk.f32.gmra.mrb[28].mxu1 %vm4158_vm5, %v15118_v9  ;;  %v12027_v9 = vld [vmem:[%s12275_s20 + $0xe8] sm:$0xff] }
 0xcf5   : > { %10720 = vmatprep.mubr.msk.f32.mxu1 %vm4158_vm5, %v15147_v52  ;;  %v16966_v52 = vld [vmem:[#allocation10_spill] sm:$0xff] }
 0xcf6   : > { %10917 = vmatmul.mubr.msk.f32.gmra.mrb[62].mxu0 %vm525_vm1, %v12025_v24  ;;  %v16994_v24 = vld [vmem:[#allocation13_spill] sm:$0xff] }
 0xcf7   : > { %10919 = vmatprep.mubr.msk.f32.mxu0 %vm525_vm1, %v12026_v49 }
 0xcf8   : > { %10721 = vmatmul.mubr.msk.f32.gmra.mrb[30].mxu1 %vm4158_vm5, %v15144_v37  ;;  %v7509_v37 = vld [vmem:[%s16504_s11 + $0x218] sm:$0xff] }
 0xcf9   : > { %10723 = vmatprep.mubr.msk.f32.mxu1 %vm4158_vm5, %v15152_v34  ;;  %v7508_v34 = vld [vmem:[%s16504_s11 + $0x210] sm:$0xff] }
 0xcfa   : > { %10920 = vmatmul.mubr.msk.f32.gmra.mrb[64].mxu0 %vm525_vm1, %v12027_v9 }
 0xcfc   : > { %10724 = vmatmul.mubr.msk.f32.gmra.mrb[32].mxu1 %vm4158_vm5, %v15171_v6  ;;  %v11189_v6 = vpack.c.bf16 %v7509_v37, %v7508_v34 }
 0xcfd   : > { %10726 = vmatprep.mubr.msk.f32.mxu1 %vm4158_vm5, %v15178_v29  ;;  %v16965_v29 = vld [vmem:[#allocation11_spill] sm:$0xff] }
 0xd00   : > { %10727 = vmatmul.mubr.msk.f32.gmra.mrb[34].mxu1 %vm4158_vm5, %v15196_v17  ;;  %v7510_v17 = vld [vmem:[%s16504_s11 + $0x220] sm:$0xff] }
 0xd01   : > { %10729 = vmatprep.mubr.msk.f32.mxu1 %vm4158_vm5, %v15222_v63  ;;  %v16967_v63 = vld [vmem:[#allocation48_spill] sm:$0xff] }
 0xd04   : > { %10730 = vmatmul.mubr.msk.f32.gmra.mrb[36].mxu1 %vm4158_vm5, %v15219_v5  ;;  %v7511_v5 = vld [vmem:[%s16504_s11 + $0x228] sm:$0xff] }
 0xd05   : > { %10732 = vmatprep.mubr.msk.f32.mxu1 %vm4158_vm5, %v15249_v14  ;;  %v11193_v14 = vpack.c.bf16 %v7511_v5, %v7510_v17 }
 0xd08   : > { %10733 = vmatmul.mubr.msk.f32.gmra.mrb[38].mxu1 %vm4158_vm5, %v15246_v50  ;;  %v16968_v50 = vld [vmem:[#allocation14_spill] sm:$0xff] }
 0xd09   : > { %10735 = vmatprep.mubr.msk.f32.mxu1 %vm4158_vm5, %v15695_v47  ;;  %v7513_v47 = vld [vmem:[%s16504_s11 + $0x238] sm:$0xff] }
 0xd0c   : > { %10736 = vmatmul.mubr.msk.f32.gmra.mrb[40].mxu1 %vm4158_vm5, %v15258_v43  ;;  %v7512_v43 = vld [vmem:[%s16504_s11 + $0x230] sm:$0xff] }
 0xd0d   : > { %10738 = vmatprep.mubr.msk.f32.mxu1 %vm4158_vm5, %v16965_v29  ;;  %v11197_v27 = vpack.c.bf16 %v7513_v47, %v7512_v43 }
 0xd10   : > { %10739 = vmatmul.mubr.msk.f32.gmra.mrb[42].mxu1 %vm4158_vm5, %v16966_v52 }
 0xd11   : > { %10757 = vmatprep.mubr.msk.f32.mxu1 %vm4158_vm5, %v16924_v8  ;;  %v16969_v8 = vld [vmem:[#allocation15_spill] sm:$0xff] }
 0xd14   : > { %10758 = vmatmul.mubr.msk.f32.vlgmr.msra.gmra.mrb[12].mxu1 %vm4158_vm5, %v16967_v63 }
 0xd15   : > { %11188 = vmatpush3.bf16.msra.mxu1 %v15988_v12  ;;  %10760 = vmatprep.mubr.msk.f32.mxu1 %vm4158_vm5, %v16968_v50  ;;  %v16980_v12 = vld [vmem:[#allocation25_spill] sm:$0xff] }
 0xd16   : > { %11190 = vmatprep.subr.bf16.mxu1 %v11189_v6 }
 0xd18   : > { %10761 = vmatmul.mubr.msk.f32.gmra.mrb[14].mxu1 %vm4158_vm5, %v16969_v8 }
 0xd19   : > { %10763 = vmatprep.mubr.msk.f32.mxu1 %vm4158_vm5, %v16928_v58  ;;  %11192 = vmatpush3.bf16.msra.mxu1 %v11189_v6  ;;  %v16973_v58 = vld [vmem:[#allocation45_spill] sm:$0xff] }
 0xd1a   : > { %11194 = vmatprep.subr.bf16.mxu1 %v11193_v14 }
 0xd1c   : > { %10764 = vmatmul.mubr.msk.f32.gmra.mrb[16].mxu1 %vm4158_vm5, %v16929_v1  ;;  %v16975_v1 = vld [vmem:[#allocation20_spill] sm:$0xff] }
 0xd1d   : > { %10766 = vmatprep.mubr.msk.f32.mxu1 %vm4158_vm5, %v16970_v36  ;;  %11196 = vmatpush3.bf16.msra.mxu1 %v11193_v14 }
 0xd1e   : > { %11198 = vmatprep.subr.bf16.mxu1 %v11197_v27 }
 0xd20   : > { %10767 = vmatmul.mubr.msk.f32.gmra.mrb[18].mxu1 %vm4158_vm5, %v16971_v19 }
 0xd21   : > { %10769 = vmatprep.mubr.msk.f32.mxu1 %vm4158_vm5, %v16972_v40  ;;  %11200 = vmatpush3.bf16.msra.mxu1 %v11197_v27 }
 0xd22   : > { %11209 = vmatprep.subr.bf16.mxu1 %v15849_v32 }
 0xd24   : > { %10770 = vmatmul.mubr.msk.f32.gmra.mrb[20].mxu1 %vm4158_vm5, %v16973_v58 }
 0xd25   : > { %10772 = vmatprep.mubr.msk.f32.mxu1 %vm4158_vm5, %v16974_v59 }
 0xd28   : > { %10773 = vmatmul.mubr.msk.f32.gmra.mrb[22].mxu1 %vm4158_vm5, %v16975_v1  ;;  %v16279_v1 = vld [vmem:[%s16505_s12] ss:$0 sm:$0xff] }
 0xd29   : > { %10775 = vmatprep.mubr.msk.f32.mxu1 %vm4158_vm5, %v16976_v4 }
 0xd2c   : > { %10776 = vmatmul.mubr.msk.f32.gmra.mrb[24].mxu1 %vm4158_vm5, %v16977_v2 }
 0xd2d   : > { %10778 = vmatprep.mubr.msk.f32.mxu1 %vm4158_vm5, %v16978_v0 }
 0xd30   : > { %10779 = vmatmul.mubr.msk.f32.gmra.mrb[26].mxu1 %vm4158_vm5, %v16979_v26 }
 0xd31   : > { %10781 = vmatprep.mubr.msk.f32.mxu1 %vm4158_vm5, %v16980_v12  ;;  %v16289_v12 = vld [vmem:[%s16507_s14] ss:$0 sm:$0xff] }
 0xd34   : > { %10782 = vmatmul.mubr.msk.f32.gmra.mrb[28].mxu1 %vm4158_vm5, %v16981_v18 }
 0xd35   : > { %10784 = vmatprep.mubr.msk.f32.mxu1 %vm4158_vm5, %v16982_v30 }
 0xd38   : > { %10785 = vmatmul.mubr.msk.f32.gmra.mrb[30].mxu1 %vm4158_vm5, %v16983_v45 }
 0xd39   : > { %10787 = vmatprep.mubr.msk.f32.mxu1 %vm4158_vm5, %v16984_v56 }
 0xd3c   : > { %10788 = vmatmul.mubr.msk.f32.gmra.mrb[32].mxu1 %vm4158_vm5, %v16985_v46 }
 0xd3d   : > { %10790 = vmatprep.mubr.msk.f32.mxu1 %vm4158_vm5, %v16986_v39 }
 0xd40   : > { %10791 = vmatmul.mubr.msk.f32.gmra.mrb[34].mxu1 %vm4158_vm5, %v16987_v42 }
 0xd41   : > { %10793 = vmatprep.mubr.msk.f32.mxu1 %vm4158_vm5, %v16988_v25 }
 0xd44   : > { %10794 = vmatmul.mubr.msk.f32.gmra.mrb[36].mxu1 %vm4158_vm5, %v16989_v53 }
 0xd45   : > { %10796 = vmatprep.mubr.msk.f32.mxu1 %vm4158_vm5, %v16950_v11  ;;  %v12028_v11 = vld [vmem:[%s12275_s20 + $0xf0] sm:$0xff] }
 0xd48   : > { %10797 = vmatmul.mubr.msk.f32.gmra.mrb[38].mxu1 %vm4158_vm5, %v16990_v38 }
 0xd49   : > { %10799 = vmatprep.mubr.msk.f32.mxu1 %vm4158_vm5, %v16991_v44 }
 0xd4c   : > { %10800 = vmatmul.mubr.msk.f32.gmra.mrb[40].mxu1 %vm4158_vm5, %v16992_v51 }
 0xd4d   : > { %10802 = vmatprep.mubr.msk.f32.mxu1 %vm4158_vm5, %v16993_v55 }
 0xd50   : > { %10803 = vmatmul.mubr.msk.f32.gmra.mrb[42].mxu1 %vm4158_vm5, %v16994_v24 }
 0xd51   : > { %10821 = vmatprep.mubr.msk.f32.mxu1 %vm4158_vm5, %v16955_v16  ;;  %v12029_v16 = vld [vmem:[%s12275_s20 + $0xf8] sm:$0xff]  ;;  %s16442_s20 = scalar_lea.hbm %s16508_s15, %s8916_s26 }
 0xd54   : > { %10822 = vmatmul.mubr.msk.f32.vlgmr.msra.gmra.mrb[12].mxu1 %vm4158_vm5, %v16956_v21 }
 0xd55   : > { %11211 = vmatpush3.bf16.msra.mxu1 %v15849_v32  ;;  %10824 = vmatprep.mubr.msk.f32.mxu1 %vm4158_vm5, %v15439_v60  ;;  %v16995_v60 = vld [vmem:[#allocation56_spill] sm:$0xff] }
 0xd56   : > { %11210 = vmatprep.subr.bf16.mxu1 %v15892_v54 }
 0xd58   : > { %10825 = vmatmul.mubr.msk.f32.gmra.mrb[14].mxu1 %vm4158_vm5, %v15448_v48  ;;  %v16996_v48 = vld [vmem:[#allocation57_spill] sm:$0xff] }
 0xd59   : > { %10827 = vmatprep.mubr.msk.f32.mxu1 %vm4158_vm5, %v15454_v35  ;;  %11212 = vmatpush3.bf16.msra.mxu1 %v15892_v54  ;;  %v16997_v35 = vld [vmem:[#allocation59_spill] sm:$0xff] }
 0xd5c   : > { %10828 = vmatmul.mubr.msk.f32.gmra.mrb[16].mxu1 %vm4158_vm5, %v15462_v62  ;;  %v16998_v62 = vld [vmem:[#allocation61_spill] sm:$0xff] }
 0xd5d   : > { %10830 = vmatprep.mubr.msk.f32.mxu1 %vm4158_vm5, %v15468_v23  ;;  %v16999_v23 = vld [vmem:[#allocation62_spill] sm:$0xff] }
 0xd60   : > { %10831 = vmatmul.mubr.msk.f32.gmra.mrb[18].mxu1 %vm4158_vm5, %v15475_v31  ;;  %v17000_v31 = vld [vmem:[#allocation9_spill] sm:$0xff] }
 0xd61   : > { %10833 = vmatprep.mubr.msk.f32.mxu1 %vm4158_vm5, %v15481_v57  ;;  %v17001_v57 = vld [vmem:[#allocation7_spill] sm:$0xff] }
 0xd64   : > { %10834 = vmatmul.mubr.msk.f32.gmra.mrb[20].mxu1 %vm4158_vm5, %v15488_v13  ;;  %v17002_v13 = vld [vmem:[#allocation18_spill] sm:$0xff] }
 0xd65   : > { %10836 = vmatprep.mubr.msk.f32.mxu1 %vm4158_vm5, %v16957_v10 }
 0xd68   : > { %10837 = vmatmul.mubr.msk.f32.gmra.mrb[22].mxu1 %vm4158_vm5, %v15501_v20  ;;  %v17004_v20 = vld [vmem:[#allocation30_spill] sm:$0xff] }
 0xd69   : > { %10839 = vmatprep.mubr.msk.f32.mxu1 %vm4158_vm5, %v16958_v3 }
 0xd6c   : > { %10840 = vmatmul.mubr.msk.f32.gmra.mrb[24].mxu1 %vm4158_vm5, %v15514_v41  ;;  %v17003_v41 = vld [vmem:[#allocation19_spill] sm:$0xff] }
 0xd6d   : > { %10842 = vmatprep.mubr.msk.f32.mxu1 %vm4158_vm5, %v16995_v60 }
 0xd70   : > { %10843 = vmatmul.mubr.msk.f32.gmra.mrb[26].mxu1 %vm4158_vm5, %v16996_v48 }
 0xd71   : > { %10845 = vmatprep.mubr.msk.f32.mxu1 %vm4158_vm5, %v16997_v35 }
 0xd74   : > { %10846 = vmatmul.mubr.msk.f32.gmra.mrb[28].mxu1 %vm4158_vm5, %v15540_v22  ;;  %v17005_v22 = vld [vmem:[#allocation49_spill] sm:$0xff] }
 0xd75   : > { %10848 = vmatprep.mubr.msk.f32.mxu1 %vm4158_vm5, %v16961_v15 }
 0xd78   : > { %10849 = vmatmul.mubr.msk.f32.gmra.mrb[30].mxu1 %vm4158_vm5, %v16998_v62 }
 0xd79   : > { %10851 = vmatprep.mubr.msk.f32.mxu1 %vm4158_vm5, %v16999_v23 }
 0xd7c   : > { %10852 = vmatmul.mubr.msk.f32.gmra.mrb[32].mxu1 %vm4158_vm5, %v17000_v31 }
 0xd7d   : > { %10854 = vmatprep.mubr.msk.f32.mxu1 %vm4158_vm5, %v17001_v57 }
 0xd80   : > { %10855 = vmatmul.mubr.msk.f32.gmra.mrb[34].mxu1 %vm4158_vm5, %v15579_v33  ;;  %v17006_v33 = vld [vmem:[#allocation50_spill] sm:$0xff] }
 0xd81   : > { %10857 = vmatprep.mubr.msk.f32.mxu1 %vm4158_vm5, %v17002_v13 }
 0xd84   : > { %10858 = vmatmul.mubr.msk.f32.gmra.mrb[36].mxu1 %vm4158_vm5, %v17003_v41 }
 0xd85   : > { %10860 = vmatprep.mubr.msk.f32.mxu1 %vm4158_vm5, %v15598_v28 }
 0xd88   : > { %10861 = vmatmul.mubr.msk.f32.gmra.mrb[38].mxu1 %vm4158_vm5, %v15603_v7 }
 0xd89   : > { %10863 = vmatprep.mubr.msk.f32.mxu1 %vm4158_vm5, %v15922_v61 }
 0xd8c   : > { %10864 = vmatmul.mubr.msk.f32.gmra.mrb[40].mxu1 %vm4158_vm5, %v17004_v20 }
 0xd8d   : > { %10866 = vmatprep.mubr.msk.f32.mxu1 %vm4158_vm5, %v17005_v22 }
 0xd90   : > { %10867 = vmatmul.mubr.msk.f32.gmra.mrb[42].mxu1 %vm4158_vm5, %v17006_v33 }
 0xd91   : > { %10922 = vmatprep.mubr.msk.f32.mxu1 %vm525_vm1, %v12028_v11  ;;  %v10879_v28 = vpop.f32.mrb[36].mxu0 }
 0xd92   : > { %v7983_v7 = vpop.f32.mrb[37].mxu0 }
 0xd95   : > { %v10882_v21 = vpop.f32.mrb[38].mxu0 }
 0xd96   : > { %v7993_v32 = vpop.f32.mrb[39].mxu0 }
 0xd98   : > { %10923 = vmatmul.mubr.msk.f32.vlgmr.msra.gmra.mrb[42].mxu1 %vm525_vm1, %v12029_v16 }
 0xd9c   : > { %v10885_v61 = vpop.f32.mrb[40].mxu0 }
 0xd9d   : > { %v8003_v10 = vpop.f32.mrb[41].mxu0 }
 0xda0   : > { %v16228_v3 = vpop.f32.mrb[42].mxu0 }
 0xda1   : > { %v16230_v54 = vpop.f32.mrb[43].mxu0 }
 0xda4   : > { %v16232_v15 = vpop.f32.mrb[44].mxu0 }
 0xda5   : > { %v16234_v49 = vpop.f32.mrb[45].mxu0 }
 0xda9   : > { %v16236_v9 = vpop.f32.mrb[46].mxu0 }
 0xdaa   : > { %v16238_v29 = vpop.f32.mrb[47].mxu0 }
 0xdad   : > { %v16240_v34 = vpop.f32.mrb[48].mxu0 }
 0xdae   : > { %v16242_v37 = vpop.f32.mrb[49].mxu0 }
 0xdb1   : > { %v16244_v52 = vpop.f32.mrb[50].mxu0 }
 0xdb2   : > { %v16246_v6 = vpop.f32.mrb[51].mxu0 }
 0xdb5   : > { %v16248_v17 = vpop.f32.mrb[52].mxu0 }
 0xdb6   : > { %v16250_v5 = vpop.f32.mrb[53].mxu0 }
 0xdb9   : > { %v16252_v63 = vpop.f32.mrb[54].mxu0 }
 0xdba   : > { %v16254_v50 = vpop.f32.mrb[55].mxu0 }
 0xdbd   : > { %v16256_v14 = vpop.f32.mrb[56].mxu0 }
 0xdbe   : > { %v16258_v43 = vpop.f32.mrb[57].mxu0 }
 0xdc1   : > { %v16260_v47 = vpop.f32.mrb[58].mxu0 }
 0xdc2   : > { %v16262_v8 = vpop.f32.mrb[59].mxu0 }
 0xdc5   : > { %v16264_v27 = vpop.f32.mrb[60].mxu0 }
 0xdc6   : > { %v16266_v36 = vpop.f32.mrb[61].mxu0 }
 0xdc9   : > { %v16268_v19 = vpop.f32.mrb[62].mxu0 }
 0xdca   : > { %v16270_v40 = vpop.f32.mrb[63].mxu0 }
 0xdcd   : > { %v16272_v58 = vpop.f32.mrb[64].mxu0 }
 0xdce   : > { %v16274_v59 = vpop.f32.mrb[65].mxu0 }
 0xe27   : > { %v10823_v4 = vpop.f32.mrb[12].mxu1 }
 0xe28   : > { %v11213_v2 = vadd.f32 %v10823_v4, %v16279_v1  ;;  %v7580_v0 = vpop.f32.mrb[13].mxu1 }
 0xe29   : > { %v11216_v26 = vadd.f32 %v16279_v1, %v7580_v0 }
 0xe2a   : > { %v11214_v18 = vadd.f32 %v11213_v2, %v10879_v28 }
 0xe2b   : > { %v11217_v30 = vadd.f32 %v11216_v26, %v7983_v7  ;;  %v10826_v45 = vpop.f32.mrb[14].mxu1 }
 0xe2c   : > { %v11215_v56 = vadd.f32 %v11214_v18, %v16289_v12  ;;  %v11219_v46 = vadd.f32 %v10826_v45, %v16279_v1  ;;  %v7590_v39 = vpop.f32.mrb[15].mxu1 }
 0xe2d   : > { %v11218_v42 = vadd.f32 %v11217_v30, %v16289_v12  ;;  %v11222_v25 = vadd.f32 %v16279_v1, %v7590_v39 }
 0xe2e   : > { %8175 = vst.msk [vmem:[%s16295_s25 + $0x8] sm:$0xff] %vm4158_vm5, %v11215_v56  ;;  %v11220_v53 = vadd.f32 %v11219_v46, %v16289_v12 }
 0xe2f   : > { %8174 = vst.msk [vmem:[%s16295_s25] sm:$0xff] %vm4158_vm5, %v11218_v42  ;;  %v10829_v38 = vpop.f32.mrb[16].mxu1  ;;  %v11223_v44 = vadd.f32 %v11222_v25, %v16289_v12 }
 0xe30   : > { %v11225_v51 = vadd.f32 %v10829_v38, %v16279_v1  ;;  %v11221_v55 = vadd.f32 %v11220_v53, %v10882_v21  ;;  %v7600_v24 = vpop.f32.mrb[17].mxu1 }
 0xe31   : > { %v11228_v60 = vadd.f32 %v16279_v1, %v7600_v24  ;;  %v11224_v48 = vadd.f32 %v11223_v44, %v7993_v32 }
 0xe32   : > { %8177 = vst.msk [vmem:[%s16295_s25 + $0x18] sm:$0xff] %vm4158_vm5, %v11221_v55  ;;  %v11226_v35 = vadd.f32 %v11225_v51, %v16289_v12 }
 0xe33   : > { %8176 = vst.msk [vmem:[%s16295_s25 + $0x10] sm:$0xff] %vm4158_vm5, %v11224_v48  ;;  %v10832_v62 = vpop.f32.mrb[18].mxu1  ;;  %v11229_v23 = vadd.f32 %v11228_v60, %v16289_v12 }
 0xe34   : > { %v11231_v31 = vadd.f32 %v10832_v62, %v16279_v1  ;;  %v11227_v57 = vadd.f32 %v11226_v35, %v10885_v61  ;;  %v7610_v13 = vpop.f32.mrb[19].mxu1 }
 0xe35   : > { %v11234_v41 = vadd.f32 %v16279_v1, %v7610_v13  ;;  %v11230_v20 = vadd.f32 %v11229_v23, %v8003_v10 }
 0xe36   : > { %8179 = vst.msk [vmem:[%s16295_s25 + $0x28] sm:$0xff] %vm4158_vm5, %v11227_v57  ;;  %v11232_v22 = vadd.f32 %v11231_v31, %v16289_v12 }
 0xe37   : > { %8178 = vst.msk [vmem:[%s16295_s25 + $0x20] sm:$0xff] %vm4158_vm5, %v11230_v20  ;;  %v10835_v33 = vpop.f32.mrb[20].mxu1  ;;  %v11235_v11 = vadd.f32 %v11234_v41, %v16289_v12 }
 0xe38   : > { %v11237_v16 = vadd.f32 %v10835_v33, %v16279_v1  ;;  %v11233_v28 = vadd.f32 %v11232_v22, %v16228_v3  ;;  %v7620_v7 = vpop.f32.mrb[21].mxu1 }
 0xe39   : > { %v11240_v21 = vadd.f32 %v16279_v1, %v7620_v7  ;;  %v11236_v32 = vadd.f32 %v11235_v11, %v16230_v54 }
 0xe3a   : > { %8181 = vst.msk [vmem:[%s16295_s25 + $0x38] sm:$0xff] %vm4158_vm5, %v11233_v28  ;;  %v11238_v61 = vadd.f32 %v11237_v16, %v16289_v12 }
 0xe3b   : > { %8180 = vst.msk [vmem:[%s16295_s25 + $0x30] sm:$0xff] %vm4158_vm5, %v11236_v32  ;;  %v10838_v10 = vpop.f32.mrb[22].mxu1  ;;  %v11241_v4 = vadd.f32 %v11240_v21, %v16289_v12 }
 0xe3c   : > { %v11243_v2 = vadd.f32 %v10838_v10, %v16279_v1  ;;  %v11239_v3 = vadd.f32 %v11238_v61, %v16232_v15  ;;  %v7630_v0 = vpop.f32.mrb[23].mxu1 }
 0xe3d   : > { %v11246_v26 = vadd.f32 %v16279_v1, %v7630_v0  ;;  %v11242_v54 = vadd.f32 %v11241_v4, %v16234_v49 }
 0xe3e   : > { %8183 = vst.msk [vmem:[%s16295_s25 + $0x48] sm:$0xff] %vm4158_vm5, %v11239_v3  ;;  %v11244_v18 = vadd.f32 %v11243_v2, %v16289_v12 }
 0xe3f   : > { %8182 = vst.msk [vmem:[%s16295_s25 + $0x40] sm:$0xff] %vm4158_vm5, %v11242_v54  ;;  %v10841_v30 = vpop.f32.mrb[24].mxu1  ;;  %v11247_v45 = vadd.f32 %v11246_v26, %v16289_v12 }
 0xe40   : > { %v11249_v56 = vadd.f32 %v10841_v30, %v16279_v1  ;;  %v11245_v15 = vadd.f32 %v11244_v18, %v16236_v9  ;;  %v7640_v46 = vpop.f32.mrb[25].mxu1 }
 0xe41   : > { %v11252_v39 = vadd.f32 %v16279_v1, %v7640_v46  ;;  %v11248_v49 = vadd.f32 %v11247_v45, %v16238_v29 }
 0xe42   : > { %8185 = vst.msk [vmem:[%s16295_s25 + $0x58] sm:$0xff] %vm4158_vm5, %v11245_v15  ;;  %v11250_v42 = vadd.f32 %v11249_v56, %v16289_v12 }
 0xe43   : > { %8184 = vst.msk [vmem:[%s16295_s25 + $0x50] sm:$0xff] %vm4158_vm5, %v11248_v49  ;;  %v10844_v25 = vpop.f32.mrb[26].mxu1  ;;  %v11253_v53 = vadd.f32 %v11252_v39, %v16289_v12 }
 0xe44   : > { %v11255_v38 = vadd.f32 %v10844_v25, %v16279_v1  ;;  %v11251_v9 = vadd.f32 %v11250_v42, %v16240_v34  ;;  %v7650_v44 = vpop.f32.mrb[27].mxu1 }
 0xe45   : > { %v11258_v51 = vadd.f32 %v16279_v1, %v7650_v44  ;;  %v11254_v29 = vadd.f32 %v11253_v53, %v16242_v37 }
 0xe46   : > { %8187 = vst.msk [vmem:[%s16295_s25 + $0x68] sm:$0xff] %vm4158_vm5, %v11251_v9  ;;  %v11256_v55 = vadd.f32 %v11255_v38, %v16289_v12 }
 0xe47   : > { %8186 = vst.msk [vmem:[%s16295_s25 + $0x60] sm:$0xff] %vm4158_vm5, %v11254_v29  ;;  %v10847_v24 = vpop.f32.mrb[28].mxu1  ;;  %v11259_v60 = vadd.f32 %v11258_v51, %v16289_v12 }
 0xe48   : > { %v11261_v48 = vadd.f32 %v10847_v24, %v16279_v1  ;;  %v11257_v34 = vadd.f32 %v11256_v55, %v16244_v52  ;;  %v7660_v35 = vpop.f32.mrb[29].mxu1 }
 0xe49   : > { %v11264_v62 = vadd.f32 %v16279_v1, %v7660_v35  ;;  %v11260_v37 = vadd.f32 %v11259_v60, %v16246_v6 }
 0xe4a   : > { %8189 = vst.msk [vmem:[%s16295_s25 + $0x78] sm:$0xff] %vm4158_vm5, %v11257_v34  ;;  %v11262_v23 = vadd.f32 %v11261_v48, %v16289_v12 }
 0xe4b   : > { %8188 = vst.msk [vmem:[%s16295_s25 + $0x70] sm:$0xff] %vm4158_vm5, %v11260_v37  ;;  %v10850_v31 = vpop.f32.mrb[30].mxu1  ;;  %v11265_v57 = vadd.f32 %v11264_v62, %v16289_v12 }
 0xe4c   : > { %v11267_v13 = vadd.f32 %v10850_v31, %v16279_v1  ;;  %v11263_v52 = vadd.f32 %v11262_v23, %v16248_v17  ;;  %v7670_v41 = vpop.f32.mrb[31].mxu1 }
 0xe4d   : > { %v11270_v20 = vadd.f32 %v16279_v1, %v7670_v41  ;;  %v11266_v6 = vadd.f32 %v11265_v57, %v16250_v5 }
 0xe4e   : > { %8191 = vst.msk [vmem:[%s16295_s25 + $0x88] sm:$0xff] %vm4158_vm5, %v11263_v52  ;;  %v11268_v22 = vadd.f32 %v11267_v13, %v16289_v12 }
 0xe4f   : > { %8190 = vst.msk [vmem:[%s16295_s25 + $0x80] sm:$0xff] %vm4158_vm5, %v11266_v6  ;;  %v10853_v33 = vpop.f32.mrb[32].mxu1  ;;  %v11271_v11 = vadd.f32 %v11270_v20, %v16289_v12 }
 0xe50   : > { %v11273_v16 = vadd.f32 %v10853_v33, %v16279_v1  ;;  %v11269_v17 = vadd.f32 %v11268_v22, %v16252_v63  ;;  %v7680_v28 = vpop.f32.mrb[33].mxu1 }
 0xe51   : > { %v11276_v7 = vadd.f32 %v16279_v1, %v7680_v28  ;;  %v11272_v5 = vadd.f32 %v11271_v11, %v16254_v50 }
 0xe52   : > { %8193 = vst.msk [vmem:[%s16295_s25 + $0x98] sm:$0xff] %vm4158_vm5, %v11269_v17  ;;  %v11274_v21 = vadd.f32 %v11273_v16, %v16289_v12 }
 0xe53   : > { %8192 = vst.msk [vmem:[%s16295_s25 + $0x90] sm:$0xff] %vm4158_vm5, %v11272_v5  ;;  %v10856_v32 = vpop.f32.mrb[34].mxu1  ;;  %v11277_v61 = vadd.f32 %v11276_v7, %v16289_v12 }
 0xe54   : > { %v11279_v10 = vadd.f32 %v10856_v32, %v16279_v1  ;;  %v11275_v63 = vadd.f32 %v11274_v21, %v16256_v14  ;;  %v7690_v4 = vpop.f32.mrb[35].mxu1 }
 0xe55   : > { %v11282_v2 = vadd.f32 %v16279_v1, %v7690_v4  ;;  %v11278_v50 = vadd.f32 %v11277_v61, %v16258_v43 }
 0xe56   : > { %8195 = vst.msk [vmem:[%s16295_s25 + $0xa8] sm:$0xff] %vm4158_vm5, %v11275_v63  ;;  %v11280_v3 = vadd.f32 %v11279_v10, %v16289_v12 }
 0xe57   : > { %8194 = vst.msk [vmem:[%s16295_s25 + $0xa0] sm:$0xff] %vm4158_vm5, %v11278_v50  ;;  %v10859_v0 = vpop.f32.mrb[36].mxu1  ;;  %v11283_v26 = vadd.f32 %v11282_v2, %v16289_v12 }
 0xe58   : > { %v11285_v54 = vadd.f32 %v10859_v0, %v16279_v1  ;;  %v11281_v14 = vadd.f32 %v11280_v3, %v16260_v47  ;;  %v7700_v18 = vpop.f32.mrb[37].mxu1 }
 0xe59   : > { %v11288_v30 = vadd.f32 %v16279_v1, %v7700_v18  ;;  %v11284_v43 = vadd.f32 %v11283_v26, %v16262_v8 }
 0xe5a   : > { %8197 = vst.msk [vmem:[%s16295_s25 + $0xb8] sm:$0xff] %vm4158_vm5, %v11281_v14  ;;  %v11286_v45 = vadd.f32 %v11285_v54, %v16289_v12 }
 0xe5b   : > { %8196 = vst.msk [vmem:[%s16295_s25 + $0xb0] sm:$0xff] %vm4158_vm5, %v11284_v43  ;;  %v10862_v56 = vpop.f32.mrb[38].mxu1  ;;  %v11289_v15 = vadd.f32 %v11288_v30, %v16289_v12 }
 0xe5c   : > { %v11291_v46 = vadd.f32 %v10862_v56, %v16279_v1  ;;  %v11287_v47 = vadd.f32 %v11286_v45, %v16264_v27  ;;  %v7710_v39 = vpop.f32.mrb[39].mxu1 }
 0xe5d   : > { %v11294_v49 = vadd.f32 %v16279_v1, %v7710_v39  ;;  %v11290_v8 = vadd.f32 %v11289_v15, %v16266_v36 }
 0xe5e   : > { %8199 = vst.msk [vmem:[%s16295_s25 + $0xc8] sm:$0xff] %vm4158_vm5, %v11287_v47  ;;  %v11292_v42 = vadd.f32 %v11291_v46, %v16289_v12 }
 0xe5f   : > { %8198 = vst.msk [vmem:[%s16295_s25 + $0xc0] sm:$0xff] %vm4158_vm5, %v11290_v8  ;;  %v10865_v25 = vpop.f32.mrb[40].mxu1  ;;  %v11295_v53 = vadd.f32 %v11294_v49, %v16289_v12 }
 0xe60   : > { %v11297_v27 = vadd.f32 %v10865_v25, %v16279_v1  ;;  %v11293_v38 = vadd.f32 %v11292_v42, %v16268_v19  ;;  %v7720_v9 = vpop.f32.mrb[41].mxu1 }
 0xe61   : > { %v11300_v36 = vadd.f32 %v16279_v1, %v7720_v9  ;;  %v11296_v44 = vadd.f32 %v11295_v53, %v16270_v40  ;;  %v11305_v40 = vadd.f32 %v16289_v12, %v16279_v1 }
 0xe62   : > { %8201 = vst.msk [vmem:[%s16295_s25 + $0xd8] sm:$0xff] %vm4158_vm5, %v11293_v38  ;;  %v11298_v51 = vadd.f32 %v11297_v27, %v16289_v12 }
 0xe63   : > { %8200 = vst.msk [vmem:[%s16295_s25 + $0xd0] sm:$0xff] %vm4158_vm5, %v11296_v44  ;;  %v11301_v29 = vadd.f32 %v11300_v36, %v16289_v12 }
 0xe64   : > { %v11299_v55 = vadd.f32 %v11298_v51, %v16272_v58 }
 0xe65   : > { %v11302_v19 = vadd.f32 %v11301_v29, %v16274_v59 }
 0xe66   : > { %8203 = vst.msk [vmem:[%s16295_s25 + $0xe8] sm:$0xff] %vm4158_vm5, %v11299_v55 }
 0xe67   : > { %8202 = vst.msk [vmem:[%s16295_s25 + $0xe0] sm:$0xff] %vm4158_vm5, %v11302_v19 }
 0xe6b   : > { %v10924_v24 = vpop.f32.mrb[42].mxu1 }
 0xe6c   : > { %v11304_v60 = vadd.f32 %v11305_v40, %v10924_v24  ;;  %v8133_v48 = vpop.f32.mrb[43].mxu1 }
 0xe6d   : > { %v11306_v58 = vadd.f32 %v11305_v40, %v8133_v48 }
 0xe6e   : > { %8205 = vst.msk [vmem:[%s16295_s25 + $0xf8] sm:$0xff] %vm4158_vm5, %v11304_v60 }
 0xe6f   : > { %8204 = vst.msk [vmem:[%s16295_s25 + $0xf0] sm:$0xff] %vm4158_vm5, %v11306_v58 }
 0xe70   : > { %12043 = shalt.err (!%p12040_p3)
}
 0xe71   : > { %s12044_s2 = scalar_lea.hbm %s16442_s20, 4096  ;;  %s12048_s0 = scalar_lea.hbm %s16508_s15, 8192 }
 0xe72   : > { %p12045_p4 = scmp.ne.s32.totalorder %s16442_s20, %s12044_s2  ;;  %p12049_p9 = scmp.lt.u32.totalorder %s16442_s20, %s16508_s15 }
 0xe73   : > { %p12050_p10 = scmp.lt.u32.totalorder %s12048_s0, %s12044_s2  ;;  %p12052_p12 = scmp.lt.u32.totalorder %s12044_s2, %s16442_s20 }
 0xe74   : > { %p12046_p7 = pnand %p12045_p4, %p12218_p5 }
 0xe75   : > { %p12051_p11 = por %p12050_p10, %p12049_p9 }
 0xe76   : > { %p12047_p8 = pneg %p12046_p7 }
 0xe77   : > { %p12053_p13 = por %p12052_p12, %p12051_p11 }
 0xe79   : > { %p12054_p0 = pnand %p12053_p13, %p12047_p8 }
 0xe7b   : > { %12057 = shalt.err (!%p12054_p0)
}
 0xe7c   : > { %s12098_s1 = smov 128   ;;  %s12099_s23 = smov 8  }
 0xe7d   : > { %11821 = dma.vmem_to_hbm [thread:$0]  (%p12218_p5), %s16444_s30, 4096, %s16442_s20, %s16452_s22, %s12098_s1, %s12098_s1, %s12099_s23  }
 0xe7e PF: > { %p11827_p1 = scmp.ge.s32.totalorder %s12092_s21, 2  ;;  %s8235_s27 = sand.u32 1, %s12080_s18  }
 0xe7f   : > { %s8236_s2 = scalar_lea.sflag [#allocation3], %s8235_s27 }
 0xe80   : > { %p11824_p2 = pnand %p11827_p1, %p12222_p6 }
 0xe82   : > { %12075 = dma.done.wait (!%p11824_p2), %s8236_s2, 4096  }
 0xe83   : > { %12077 = vsyncadd (!%p11824_p2), %s8236_s2, 4294963200  ;;  %s17007_s25 = sld [smem:[#allocation5_spill]]  ;;  %s17008_s20 = sld [smem:[#allocation6_spill]] }
 0xe84   : > { %p25_p3 = scmp.ge.s32.totalorder %s12205_s24, 4   ;;  %s17009_s18 = smov %s12084_s19 }
 0xe85   : > { %s17011_s21 = smov %s12205_s24 }
 0xe86   :  { %27 = sbr.rel (!%p25_p3) target bundleno = 7 (0x7), region = 115 }
 0xe89   : > { %s17010_s19 = smov %s17007_s25 }
 0xe8d   :  { %8241 = vsyncpa [#allocation3], 1 }
 0xe8e   :  { %8243 = vsyncpa [#allocation3 + $0x1], 1 }

</bundles_post_ra>
